<compile_context>
chip_gen: v6e
topology: v6e:2x2x1
jax: 0.10.0
libtpu: 0.0.40
codegen_flags: <defaults>
</compile_context>

<pallas_src>
import math
import jax
import jax.numpy as jnp
from jax.experimental import pallas as pl
from jax.experimental.pallas import tpu as pltpu

# ----------------------------- model config ---------------------------------
D_MODEL = 32
NHEAD = 4
HEAD_DIM = D_MODEL // NHEAD
DIM_FF = 64
EPS = 1e-5          # nn.LayerNorm default eps

# small video shape: b=2, c=d_model, t=2, w=4, h=4  -> L = 1 + t*w*h = 33
B, T, W, H = 2, 2, 4, 4
SEQ_LEN = 1 + T * W * H
ROWS = B * SEQ_LEN
ORIG_SHAPE = (B, D_MODEL, T, W, H)

_BIAS_W = max(D_MODEL, 3 * D_MODEL, DIM_FF)   # 96: width of the packed bias slab


def _layernorm(x, gamma, beta):
    mu = jnp.mean(x, axis=-1, keepdims=True)
    xc = x - mu
    var = jnp.mean(xc * xc, axis=-1, keepdims=True)
    return xc * jax.lax.rsqrt(var + EPS) * gamma + beta


# ------------------------------- kernel -------------------------------------
def encoder_layer_kernel(x_ref, wa_ref, w2_ref, bias_ref, o_ref):
    x = x_ref[...]                       # (B*L, D) fp32, batch-major rows
    wa = wa_ref[...]                     # (D, 6D) = [wqkv(3D) | wo(D) | w1(FF)]
    w2 = w2_ref[...]                     # (FF, D)
    bias = bias_ref[...]                 # (8, 96) packed biases / LN params

    # static slices out of the packed slabs (zero-runtime-cost views)
    g1 = bias[0:1, :D_MODEL]
    be1 = bias[1:2, :D_MODEL]
    g2 = bias[2:3, :D_MODEL]
    be2 = bias[3:4, :D_MODEL]
    bqkv = bias[4:5, :3 * D_MODEL]       # Q part pre-scaled by 1/sqrt(head_dim)
    bo = bias[5:6, :D_MODEL]
    bf1 = bias[6:7, :DIM_FF]
    bf2 = bias[7:8, :D_MODEL]

    wqkv = wa[:, :3 * D_MODEL]           # Q columns pre-scaled
    wo = wa[:, 3 * D_MODEL:4 * D_MODEL]
    w1 = wa[:, 4 * D_MODEL:4 * D_MODEL + DIM_FF]

    # ---------------- pre-norm + fused QKV projection ----------------------
    xn = _layernorm(x, g1, be1)
    qkv = jnp.dot(xn, wqkv, preferred_element_type=jnp.float32) + bqkv   # (B*L, 3D)
    q = qkv[:, :D_MODEL].reshape(B, SEQ_LEN, D_MODEL)
    k = qkv[:, D_MODEL:2 * D_MODEL].reshape(B, SEQ_LEN, D_MODEL)
    v = qkv[:, 2 * D_MODEL:].reshape(B, SEQ_LEN, D_MODEL)

    # ------- attention: batched over B per head, per-head out-proj accumulate
    attn = jnp.zeros((ROWS, D_MODEL), jnp.float32)
    for h in range(NHEAD):               # static loop over heads
        cs = slice(h * HEAD_DIM, (h + 1) * HEAD_DIM)
        s = jnp.einsum('bqd,bkd->bqk', q[:, :, cs], k[:, :, cs],
                       preferred_element_type=jnp.float32)        # (B, L, L)
        s = s - jnp.max(s, axis=-1, keepdims=True)
        p = jnp.exp(s)
        denom = jnp.sum(p, axis=-1, keepdims=True)
        oh = jnp.einsum('bqk,bkd->bqd', p, v[:, :, cs],
                        preferred_element_type=jnp.float32)       # (B, L, hd)
        oh = oh * pl.reciprocal(denom, approx=True)               # EUP, not VALU
        attn = attn + jnp.dot(oh.reshape(ROWS, HEAD_DIM), wo[cs, :],
                              preferred_element_type=jnp.float32)
    attn = attn + bo

    src = x + attn                       # residual (dropout1 = identity)

    # ------------------------- pre-norm + MLP ------------------------------
    xn2 = _layernorm(src, g2, be2)
    h1 = jnp.maximum(
        jnp.dot(xn2, w1, preferred_element_type=jnp.float32) + bf1, 0.0)
    h2 = jnp.dot(h1, w2, preferred_element_type=jnp.float32) + bf2

    o_ref[...] = src + h2                # residual (dropout2 = identity)


# --------------------------- parameter packing -------------------------------
def _pad_row(vec, width):
    return jnp.pad(vec, (0, width - vec.shape[0]))[None, :]


def pack_params(params):
    """Fold the attention scale into the Q projection and pack into 3 slabs."""
    scale = 1.0 / math.sqrt(HEAD_DIM)
    wqkv = params["wqkv"]
    wqkv_s = jnp.concatenate([wqkv[:, :D_MODEL] * scale, wqkv[:, D_MODEL:]], axis=1)
    w_a = jnp.concatenate([wqkv_s, params["wo"], params["w1"]], axis=1)   # (D, 6D)

    bqkv = params["bqkv"]
    bqkv_s = jnp.concatenate([bqkv[:D_MODEL] * scale, bqkv[D_MODEL:]])
    rows = [params["g1"], params["b1"], params["g2"], params["b2"],
            bqkv_s, params["bo"], params["bf1"], params["bf2"]]
    bias = jnp.concatenate([_pad_row(r, _BIAS_W) for r in rows], axis=0)  # (8, 96)
    return w_a, params["w2"], bias


# ------------------------------- wrapper -------------------------------------
def transformer_encoder_layer(src_lbd, params):
    """src_lbd: (L, B, D) seq-first, like the PyTorch module. Returns (L, B, D)."""
    l, b, d = src_lbd.shape
    x = jnp.transpose(src_lbd, (1, 0, 2)).reshape(b * l, d)   # (B*L, D)
    w_a, w2, bias = pack_params(params)

    out = pl.pallas_call(
        encoder_layer_kernel,
        out_shape=jax.ShapeDtypeStruct((b * l, d), jnp.float32),
        grid_spec=pltpu.PrefetchScalarGridSpec(
            num_scalar_prefetch=0,
            grid=(1,),                                        # one step, whole batch
            in_specs=[
                pl.BlockSpec((b * l, d), lambda i: (0, 0)),
                pl.BlockSpec(w_a.shape, lambda i: (0, 0)),
                pl.BlockSpec(w2.shape, lambda i: (0, 0)),
                pl.BlockSpec(bias.shape, lambda i: (0, 0)),
            ],
            out_specs=pl.BlockSpec((b * l, d), lambda i: (0, 0)),
        ),
        compiler_params=pltpu.CompilerParams(
            dimension_semantics=("arbitrary",)),
    )(x, w_a, w2, bias)

    return jnp.transpose(out.reshape(b, l, d), (1, 0, 2))     # back to (L, B, D)


# --------------------------- pure-JAX reference ------------------------------
def reference(src_lbd, params):
    x = jnp.transpose(src_lbd, (1, 0, 2))          # (B, L, D)

    def ln(y, g, bb):
        mu = jnp.mean(y, axis=-1, keepdims=True)
        yc = y - mu
        var = jnp.mean(yc * yc, axis=-1, keepdims=True)
        return yc * jax.lax.rsqrt(var + EPS) * g + bb

    def one(xb):
        xn = ln(xb, params["g1"], params["b1"])
        qkv = xn @ params["wqkv"] + params["bqkv"]
        q, k, v = qkv[:, :D_MODEL], qkv[:, D_MODEL:2 * D_MODEL], qkv[:, 2 * D_MODEL:]
        scale = 1.0 / math.sqrt(HEAD_DIM)
        outs = []
        for h in range(NHEAD):
            sl = slice(h * HEAD_DIM, (h + 1) * HEAD_DIM)
            s = (q[:, sl] * scale) @ k[:, sl].T
            p = jax.nn.softmax(s, axis=-1)
            outs.append(p @ v[:, sl])
        attn = jnp.concatenate(outs, axis=-1) @ params["wo"] + params["bo"]
        src = xb + attn
        xn2 = ln(src, params["g2"], params["b2"])
        h1 = jnp.maximum(xn2 @ params["w1"] + params["bf1"], 0.0)
        return src + (h1 @ params["w2"] + params["bf2"])

    out = jax.vmap(one)(x)
    return jnp.transpose(out, (1, 0, 2))


# --------------------------------- main --------------------------------------
def make_params(key):
    ks = jax.random.split(key, 8)
    f32 = jnp.float32
    return {
        # LayerNorm params
        "g1": jnp.ones((D_MODEL,), f32),
        "b1": jnp.zeros((D_MODEL,), f32),
        "g2": jnp.ones((D_MODEL,), f32),
        "b2": jnp.zeros((D_MODEL,), f32),
        # attention in_proj (already transposed: x @ W) and out_proj
        "wqkv": jax.random.normal(ks[0], (D_MODEL, 3 * D_MODEL), f32) * 0.05,
        "bqkv": jax.random.normal(ks[1], (3 * D_MODEL,), f32) * 0.01,
        "wo":   jax.random.normal(ks[2], (D_MODEL, D_MODEL), f32) * 0.05,
        "bo":   jax.random.normal(ks[3], (D_MODEL,), f32) * 0.01,
        # MLP
        "w1":  jax.random.normal(ks[4], (D_MODEL, DIM_FF), f32) * 0.05,
        "bf1": jax.random.normal(ks[5], (DIM_FF,), f32) * 0.01,
        "w2":  jax.random.normal(ks[6], (DIM_FF, D_MODEL), f32) * 0.05,
        "bf2": jax.random.normal(ks[7], (D_MODEL,), f32) * 0.01,
    }


if __name__ == "__main__":
    key = jax.random.PRNGKey(0)
    kp, kx = jax.random.split(key)
    params = make_params(kp)

    # src: (L, B, d_model) seq-first, L = 1 + t*w*h
    src = jax.random.normal(kx, (SEQ_LEN, B, D_MODEL), jnp.float32)

    out = transformer_encoder_layer(src, params)
    out = jax.block_until_ready(out)

    ref = reference(src, params)
    assert out.shape == (SEQ_LEN, B, D_MODEL)
    # tolerance accounts for pl.reciprocal(approx=True) in the softmax denominator
    assert jnp.allclose(out, ref, atol=2e-3, rtol=2e-3), (
        float(jnp.max(jnp.abs(out - ref))))

    # module returns (src, pos, orig_shape); pos=None, orig_shape unchanged here
    result = (out, None, ORIG_SHAPE)
    print("KERNEL_OK")
</pallas_src>

<mosaic_0001>
module attributes {stable_mosaic.version = 11 : i64} {
  func.func @encoder_layer_kernel(%arg0: i32, %arg1: memref<66x32xf32, #tpu.memory_space<vmem>>, %arg2: memref<32x192xf32, #tpu.memory_space<vmem>>, %arg3: memref<64x32xf32, #tpu.memory_space<vmem>>, %arg4: memref<8x96xf32, #tpu.memory_space<vmem>>, %arg5: memref<66x32xf32, #tpu.memory_space<vmem>>) attributes {dimension_semantics = [#tpu.dimension_semantics<arbitrary>], iteration_bounds = array<i64: 1>, scalar_prefetch = 0 : i64, scratch_operands = 0 : i64, tpu.core_type = #tpu.core_type<tc>, window_params = [{pipeline_mode = #tpu.pipeline_mode<synchronous>, transform_indices = @transform_0, window_bounds = array<i64: 66, 32>}, {pipeline_mode = #tpu.pipeline_mode<synchronous>, transform_indices = @transform_1, window_bounds = array<i64: 32, 192>}, {pipeline_mode = #tpu.pipeline_mode<synchronous>, transform_indices = @transform_2, window_bounds = array<i64: 64, 32>}, {pipeline_mode = #tpu.pipeline_mode<synchronous>, transform_indices = @transform_3, window_bounds = array<i64: 8, 96>}, {pipeline_mode = #tpu.pipeline_mode<synchronous>, transform_indices = @transform_4, window_bounds = array<i64: 66, 32>}]} {
    %c0 = arith.constant 0 : index
    %c0_0 = arith.constant 0 : index
    %0 = vector.load %arg1[%c0, %c0_0] : memref<66x32xf32, #tpu.memory_space<vmem>>, vector<66x32xf32>
    %c0_1 = arith.constant 0 : index
    %c0_2 = arith.constant 0 : index
    %1 = vector.load %arg2[%c0_1, %c0_2] : memref<32x192xf32, #tpu.memory_space<vmem>>, vector<32x192xf32>
    %c0_3 = arith.constant 0 : index
    %c0_4 = arith.constant 0 : index
    %2 = vector.load %arg3[%c0_3, %c0_4] : memref<64x32xf32, #tpu.memory_space<vmem>>, vector<64x32xf32>
    %c0_5 = arith.constant 0 : index
    %c0_6 = arith.constant 0 : index
    %3 = vector.load %arg4[%c0_5, %c0_6] : memref<8x96xf32, #tpu.memory_space<vmem>>, vector<8x96xf32>
    %4 = vector.extract_strided_slice %3 {offsets = [0, 0], sizes = [1, 32], strides = [1, 1]} : vector<8x96xf32> to vector<1x32xf32>
    %5 = vector.extract_strided_slice %3 {offsets = [1, 0], sizes = [1, 32], strides = [1, 1]} : vector<8x96xf32> to vector<1x32xf32>
    %6 = vector.extract_strided_slice %3 {offsets = [2, 0], sizes = [1, 32], strides = [1, 1]} : vector<8x96xf32> to vector<1x32xf32>
    %7 = vector.extract_strided_slice %3 {offsets = [3, 0], sizes = [1, 32], strides = [1, 1]} : vector<8x96xf32> to vector<1x32xf32>
    %8 = vector.extract_strided_slice %3 {offsets = [4, 0], sizes = [1, 96], strides = [1, 1]} : vector<8x96xf32> to vector<1x96xf32>
    %9 = vector.extract_strided_slice %3 {offsets = [5, 0], sizes = [1, 32], strides = [1, 1]} : vector<8x96xf32> to vector<1x32xf32>
    %10 = vector.extract_strided_slice %3 {offsets = [6, 0], sizes = [1, 64], strides = [1, 1]} : vector<8x96xf32> to vector<1x64xf32>
    %11 = vector.extract_strided_slice %3 {offsets = [7, 0], sizes = [1, 32], strides = [1, 1]} : vector<8x96xf32> to vector<1x32xf32>
    %12 = vector.extract_strided_slice %1 {offsets = [0, 0], sizes = [32, 96], strides = [1, 1]} : vector<32x192xf32> to vector<32x96xf32>
    %13 = vector.extract_strided_slice %1 {offsets = [0, 96], sizes = [32, 32], strides = [1, 1]} : vector<32x192xf32> to vector<32x32xf32>
    %14 = vector.extract_strided_slice %1 {offsets = [0, 128], sizes = [32, 64], strides = [1, 1]} : vector<32x192xf32> to vector<32x64xf32>
    %cst = arith.constant dense<0.000000e+00> : vector<66xf32>
    %15 = vector.multi_reduction <add>, %0, %cst [1] : vector<66x32xf32> to vector<66xf32>
    %16 = vector.shape_cast %15 : vector<66xf32> to vector<66x1xf32>
    %cst_7 = arith.constant 3.200000e+01 : f32
    %17 = vector.broadcast %cst_7 : f32 to vector<66x1xf32>
    %18 = arith.divf %16, %17 : vector<66x1xf32>
    %19 = vector.broadcast %18 : vector<66x1xf32> to vector<66x32xf32>
    %20 = arith.subf %0, %19 : vector<66x32xf32>
    %21 = arith.mulf %20, %20 : vector<66x32xf32>
    %cst_8 = arith.constant dense<0.000000e+00> : vector<66xf32>
    %22 = vector.multi_reduction <add>, %21, %cst_8 [1] : vector<66x32xf32> to vector<66xf32>
    %23 = vector.shape_cast %22 : vector<66xf32> to vector<66x1xf32>
    %cst_9 = arith.constant 3.200000e+01 : f32
    %24 = vector.broadcast %cst_9 : f32 to vector<66x1xf32>
    %25 = arith.divf %23, %24 : vector<66x1xf32>
    %cst_10 = arith.constant 9.99999974E-6 : f32
    %26 = vector.broadcast %cst_10 : f32 to vector<66x1xf32>
    %27 = arith.addf %25, %26 : vector<66x1xf32>
    %28 = math.rsqrt %27 : vector<66x1xf32>
    %29 = vector.broadcast %28 : vector<66x1xf32> to vector<66x32xf32>
    %30 = arith.mulf %20, %29 : vector<66x32xf32>
    %31 = vector.broadcast %4 : vector<1x32xf32> to vector<66x32xf32>
    %32 = arith.mulf %30, %31 : vector<66x32xf32>
    %33 = vector.broadcast %5 : vector<1x32xf32> to vector<66x32xf32>
    %34 = arith.addf %32, %33 : vector<66x32xf32>
    %cst_11 = arith.constant dense<0.000000e+00> : vector<66x96xf32>
    %35 = tpu.matmul %34, %12, %cst_11 {dimension_numbers = #tpu.dot_dimension_numbers<[1], [0], [0], [1], [0, 0, 1, 1], [], []>} : vector<66x32xf32>, vector<32x96xf32>, vector<66x96xf32> -> vector<66x96xf32>
    %36 = vector.broadcast %8 : vector<1x96xf32> to vector<66x96xf32>
    %37 = arith.addf %35, %36 : vector<66x96xf32>
    %38 = vector.extract_strided_slice %37 {offsets = [0, 0], sizes = [66, 32], strides = [1, 1]} : vector<66x96xf32> to vector<66x32xf32>
    %39 = vector.shape_cast %38 : vector<66x32xf32> to vector<2x33x32xf32>
    %40 = vector.extract_strided_slice %37 {offsets = [0, 32], sizes = [66, 32], strides = [1, 1]} : vector<66x96xf32> to vector<66x32xf32>
    %41 = vector.shape_cast %40 : vector<66x32xf32> to vector<2x33x32xf32>
    %42 = vector.extract_strided_slice %37 {offsets = [0, 64], sizes = [66, 32], strides = [1, 1]} : vector<66x96xf32> to vector<66x32xf32>
    %43 = vector.shape_cast %42 : vector<66x32xf32> to vector<2x33x32xf32>
    %cst_12 = arith.constant 0.000000e+00 : f32
    %44 = vector.broadcast %cst_12 : f32 to vector<66x32xf32>
    %45 = vector.extract_strided_slice %39 {offsets = [0, 0, 0], sizes = [2, 33, 8], strides = [1, 1, 1]} : vector<2x33x32xf32> to vector<2x33x8xf32>
    %46 = vector.extract_strided_slice %41 {offsets = [0, 0, 0], sizes = [2, 33, 8], strides = [1, 1, 1]} : vector<2x33x32xf32> to vector<2x33x8xf32>
    "tpu.trace_start"() <{level = 10 : i32, message = "bqd,bkd->bqk"}> : () -> ()
    %cst_13 = arith.constant dense<0.000000e+00> : vector<2x33x33xf32>
    %47 = tpu.matmul %45, %46, %cst_13 {dimension_numbers = #tpu.dot_dimension_numbers<[2], [2], [1], [1], [0, 0, 0, 1, 1, 1], [0], [0]>} : vector<2x33x8xf32>, vector<2x33x8xf32>, vector<2x33x33xf32> -> vector<2x33x33xf32>
    "tpu.trace_stop"() : () -> ()
    %cst_14 = arith.constant dense<0xFF800000> : vector<2x33xf32>
    %48 = vector.multi_reduction <maximumf>, %47, %cst_14 [2] : vector<2x33x33xf32> to vector<2x33xf32>
    %49 = vector.shape_cast %48 : vector<2x33xf32> to vector<2x33x1xf32>
    %50 = vector.broadcast %49 : vector<2x33x1xf32> to vector<2x33x33xf32>
    %51 = arith.subf %47, %50 : vector<2x33x33xf32>
    %52 = math.exp %51 : vector<2x33x33xf32>
    %cst_15 = arith.constant dense<0.000000e+00> : vector<2x33xf32>
    %53 = vector.multi_reduction <add>, %52, %cst_15 [2] : vector<2x33x33xf32> to vector<2x33xf32>
    %54 = vector.shape_cast %53 : vector<2x33xf32> to vector<2x33x1xf32>
    %55 = vector.extract_strided_slice %43 {offsets = [0, 0, 0], sizes = [2, 33, 8], strides = [1, 1, 1]} : vector<2x33x32xf32> to vector<2x33x8xf32>
    "tpu.trace_start"() <{level = 10 : i32, message = "bqk,bkd->bqd"}> : () -> ()
    %cst_16 = arith.constant dense<0.000000e+00> : vector<2x33x8xf32>
    %56 = tpu.matmul %52, %55, %cst_16 {dimension_numbers = #tpu.dot_dimension_numbers<[2], [1], [1], [2], [0, 0, 0, 1, 1, 2], [0], [0]>} : vector<2x33x33xf32>, vector<2x33x8xf32>, vector<2x33x8xf32> -> vector<2x33x8xf32>
    "tpu.trace_stop"() : () -> ()
    %57 = tpu.reciprocal %54 {approx = true} : vector<2x33x1xf32> -> vector<2x33x1xf32>
    %58 = vector.broadcast %57 : vector<2x33x1xf32> to vector<2x33x8xf32>
    %59 = arith.mulf %56, %58 : vector<2x33x8xf32>
    %60 = vector.shape_cast %59 : vector<2x33x8xf32> to vector<66x8xf32>
    %61 = vector.extract_strided_slice %13 {offsets = [0, 0], sizes = [8, 32], strides = [1, 1]} : vector<32x32xf32> to vector<8x32xf32>
    %cst_17 = arith.constant dense<0.000000e+00> : vector<66x32xf32>
    %62 = tpu.matmul %60, %61, %cst_17 {dimension_numbers = #tpu.dot_dimension_numbers<[1], [0], [0], [1], [0, 0, 1, 1], [], []>} : vector<66x8xf32>, vector<8x32xf32>, vector<66x32xf32> -> vector<66x32xf32>
    %63 = arith.addf %44, %62 : vector<66x32xf32>
    %64 = vector.extract_strided_slice %39 {offsets = [0, 0, 8], sizes = [2, 33, 8], strides = [1, 1, 1]} : vector<2x33x32xf32> to vector<2x33x8xf32>
    %65 = vector.extract_strided_slice %41 {offsets = [0, 0, 8], sizes = [2, 33, 8], strides = [1, 1, 1]} : vector<2x33x32xf32> to vector<2x33x8xf32>
    "tpu.trace_start"() <{level = 10 : i32, message = "bqd,bkd->bqk"}> : () -> ()
    %cst_18 = arith.constant dense<0.000000e+00> : vector<2x33x33xf32>
    %66 = tpu.matmul %64, %65, %cst_18 {dimension_numbers = #tpu.dot_dimension_numbers<[2], [2], [1], [1], [0, 0, 0, 1, 1, 1], [0], [0]>} : vector<2x33x8xf32>, vector<2x33x8xf32>, vector<2x33x33xf32> -> vector<2x33x33xf32>
    "tpu.trace_stop"() : () -> ()
    %cst_19 = arith.constant dense<0xFF800000> : vector<2x33xf32>
    %67 = vector.multi_reduction <maximumf>, %66, %cst_19 [2] : vector<2x33x33xf32> to vector<2x33xf32>
    %68 = vector.shape_cast %67 : vector<2x33xf32> to vector<2x33x1xf32>
    %69 = vector.broadcast %68 : vector<2x33x1xf32> to vector<2x33x33xf32>
    %70 = arith.subf %66, %69 : vector<2x33x33xf32>
    %71 = math.exp %70 : vector<2x33x33xf32>
    %cst_20 = arith.constant dense<0.000000e+00> : vector<2x33xf32>
    %72 = vector.multi_reduction <add>, %71, %cst_20 [2] : vector<2x33x33xf32> to vector<2x33xf32>
    %73 = vector.shape_cast %72 : vector<2x33xf32> to vector<2x33x1xf32>
    %74 = vector.extract_strided_slice %43 {offsets = [0, 0, 8], sizes = [2, 33, 8], strides = [1, 1, 1]} : vector<2x33x32xf32> to vector<2x33x8xf32>
    "tpu.trace_start"() <{level = 10 : i32, message = "bqk,bkd->bqd"}> : () -> ()
    %cst_21 = arith.constant dense<0.000000e+00> : vector<2x33x8xf32>
    %75 = tpu.matmul %71, %74, %cst_21 {dimension_numbers = #tpu.dot_dimension_numbers<[2], [1], [1], [2], [0, 0, 0, 1, 1, 2], [0], [0]>} : vector<2x33x33xf32>, vector<2x33x8xf32>, vector<2x33x8xf32> -> vector<2x33x8xf32>
    "tpu.trace_stop"() : () -> ()
    %76 = tpu.reciprocal %73 {approx = true} : vector<2x33x1xf32> -> vector<2x33x1xf32>
    %77 = vector.broadcast %76 : vector<2x33x1xf32> to vector<2x33x8xf32>
    %78 = arith.mulf %75, %77 : vector<2x33x8xf32>
    %79 = vector.shape_cast %78 : vector<2x33x8xf32> to vector<66x8xf32>
    %80 = vector.extract_strided_slice %13 {offsets = [8, 0], sizes = [8, 32], strides = [1, 1]} : vector<32x32xf32> to vector<8x32xf32>
    %cst_22 = arith.constant dense<0.000000e+00> : vector<66x32xf32>
    %81 = tpu.matmul %79, %80, %cst_22 {dimension_numbers = #tpu.dot_dimension_numbers<[1], [0], [0], [1], [0, 0, 1, 1], [], []>} : vector<66x8xf32>, vector<8x32xf32>, vector<66x32xf32> -> vector<66x32xf32>
    %82 = arith.addf %63, %81 : vector<66x32xf32>
    %83 = vector.extract_strided_slice %39 {offsets = [0, 0, 16], sizes = [2, 33, 8], strides = [1, 1, 1]} : vector<2x33x32xf32> to vector<2x33x8xf32>
    %84 = vector.extract_strided_slice %41 {offsets = [0, 0, 16], sizes = [2, 33, 8], strides = [1, 1, 1]} : vector<2x33x32xf32> to vector<2x33x8xf32>
    "tpu.trace_start"() <{level = 10 : i32, message = "bqd,bkd->bqk"}> : () -> ()
    %cst_23 = arith.constant dense<0.000000e+00> : vector<2x33x33xf32>
    %85 = tpu.matmul %83, %84, %cst_23 {dimension_numbers = #tpu.dot_dimension_numbers<[2], [2], [1], [1], [0, 0, 0, 1, 1, 1], [0], [0]>} : vector<2x33x8xf32>, vector<2x33x8xf32>, vector<2x33x33xf32> -> vector<2x33x33xf32>
    "tpu.trace_stop"() : () -> ()
    %cst_24 = arith.constant dense<0xFF800000> : vector<2x33xf32>
    %86 = vector.multi_reduction <maximumf>, %85, %cst_24 [2] : vector<2x33x33xf32> to vector<2x33xf32>
    %87 = vector.shape_cast %86 : vector<2x33xf32> to vector<2x33x1xf32>
    %88 = vector.broadcast %87 : vector<2x33x1xf32> to vector<2x33x33xf32>
    %89 = arith.subf %85, %88 : vector<2x33x33xf32>
    %90 = math.exp %89 : vector<2x33x33xf32>
    %cst_25 = arith.constant dense<0.000000e+00> : vector<2x33xf32>
    %91 = vector.multi_reduction <add>, %90, %cst_25 [2] : vector<2x33x33xf32> to vector<2x33xf32>
    %92 = vector.shape_cast %91 : vector<2x33xf32> to vector<2x33x1xf32>
    %93 = vector.extract_strided_slice %43 {offsets = [0, 0, 16], sizes = [2, 33, 8], strides = [1, 1, 1]} : vector<2x33x32xf32> to vector<2x33x8xf32>
    "tpu.trace_start"() <{level = 10 : i32, message = "bqk,bkd->bqd"}> : () -> ()
    %cst_26 = arith.constant dense<0.000000e+00> : vector<2x33x8xf32>
    %94 = tpu.matmul %90, %93, %cst_26 {dimension_numbers = #tpu.dot_dimension_numbers<[2], [1], [1], [2], [0, 0, 0, 1, 1, 2], [0], [0]>} : vector<2x33x33xf32>, vector<2x33x8xf32>, vector<2x33x8xf32> -> vector<2x33x8xf32>
    "tpu.trace_stop"() : () -> ()
    %95 = tpu.reciprocal %92 {approx = true} : vector<2x33x1xf32> -> vector<2x33x1xf32>
    %96 = vector.broadcast %95 : vector<2x33x1xf32> to vector<2x33x8xf32>
    %97 = arith.mulf %94, %96 : vector<2x33x8xf32>
    %98 = vector.shape_cast %97 : vector<2x33x8xf32> to vector<66x8xf32>
    %99 = vector.extract_strided_slice %13 {offsets = [16, 0], sizes = [8, 32], strides = [1, 1]} : vector<32x32xf32> to vector<8x32xf32>
    %cst_27 = arith.constant dense<0.000000e+00> : vector<66x32xf32>
    %100 = tpu.matmul %98, %99, %cst_27 {dimension_numbers = #tpu.dot_dimension_numbers<[1], [0], [0], [1], [0, 0, 1, 1], [], []>} : vector<66x8xf32>, vector<8x32xf32>, vector<66x32xf32> -> vector<66x32xf32>
    %101 = arith.addf %82, %100 : vector<66x32xf32>
    %102 = vector.extract_strided_slice %39 {offsets = [0, 0, 24], sizes = [2, 33, 8], strides = [1, 1, 1]} : vector<2x33x32xf32> to vector<2x33x8xf32>
    %103 = vector.extract_strided_slice %41 {offsets = [0, 0, 24], sizes = [2, 33, 8], strides = [1, 1, 1]} : vector<2x33x32xf32> to vector<2x33x8xf32>
    "tpu.trace_start"() <{level = 10 : i32, message = "bqd,bkd->bqk"}> : () -> ()
    %cst_28 = arith.constant dense<0.000000e+00> : vector<2x33x33xf32>
    %104 = tpu.matmul %102, %103, %cst_28 {dimension_numbers = #tpu.dot_dimension_numbers<[2], [2], [1], [1], [0, 0, 0, 1, 1, 1], [0], [0]>} : vector<2x33x8xf32>, vector<2x33x8xf32>, vector<2x33x33xf32> -> vector<2x33x33xf32>
    "tpu.trace_stop"() : () -> ()
    %cst_29 = arith.constant dense<0xFF800000> : vector<2x33xf32>
    %105 = vector.multi_reduction <maximumf>, %104, %cst_29 [2] : vector<2x33x33xf32> to vector<2x33xf32>
    %106 = vector.shape_cast %105 : vector<2x33xf32> to vector<2x33x1xf32>
    %107 = vector.broadcast %106 : vector<2x33x1xf32> to vector<2x33x33xf32>
    %108 = arith.subf %104, %107 : vector<2x33x33xf32>
    %109 = math.exp %108 : vector<2x33x33xf32>
    %cst_30 = arith.constant dense<0.000000e+00> : vector<2x33xf32>
    %110 = vector.multi_reduction <add>, %109, %cst_30 [2] : vector<2x33x33xf32> to vector<2x33xf32>
    %111 = vector.shape_cast %110 : vector<2x33xf32> to vector<2x33x1xf32>
    %112 = vector.extract_strided_slice %43 {offsets = [0, 0, 24], sizes = [2, 33, 8], strides = [1, 1, 1]} : vector<2x33x32xf32> to vector<2x33x8xf32>
    "tpu.trace_start"() <{level = 10 : i32, message = "bqk,bkd->bqd"}> : () -> ()
    %cst_31 = arith.constant dense<0.000000e+00> : vector<2x33x8xf32>
    %113 = tpu.matmul %109, %112, %cst_31 {dimension_numbers = #tpu.dot_dimension_numbers<[2], [1], [1], [2], [0, 0, 0, 1, 1, 2], [0], [0]>} : vector<2x33x33xf32>, vector<2x33x8xf32>, vector<2x33x8xf32> -> vector<2x33x8xf32>
    "tpu.trace_stop"() : () -> ()
    %114 = tpu.reciprocal %111 {approx = true} : vector<2x33x1xf32> -> vector<2x33x1xf32>
    %115 = vector.broadcast %114 : vector<2x33x1xf32> to vector<2x33x8xf32>
    %116 = arith.mulf %113, %115 : vector<2x33x8xf32>
    %117 = vector.shape_cast %116 : vector<2x33x8xf32> to vector<66x8xf32>
    %118 = vector.extract_strided_slice %13 {offsets = [24, 0], sizes = [8, 32], strides = [1, 1]} : vector<32x32xf32> to vector<8x32xf32>
    %cst_32 = arith.constant dense<0.000000e+00> : vector<66x32xf32>
    %119 = tpu.matmul %117, %118, %cst_32 {dimension_numbers = #tpu.dot_dimension_numbers<[1], [0], [0], [1], [0, 0, 1, 1], [], []>} : vector<66x8xf32>, vector<8x32xf32>, vector<66x32xf32> -> vector<66x32xf32>
    %120 = arith.addf %101, %119 : vector<66x32xf32>
    %121 = vector.broadcast %9 : vector<1x32xf32> to vector<66x32xf32>
    %122 = arith.addf %120, %121 : vector<66x32xf32>
    %123 = arith.addf %0, %122 : vector<66x32xf32>
    %cst_33 = arith.constant dense<0.000000e+00> : vector<66xf32>
    %124 = vector.multi_reduction <add>, %123, %cst_33 [1] : vector<66x32xf32> to vector<66xf32>
    %125 = vector.shape_cast %124 : vector<66xf32> to vector<66x1xf32>
    %cst_34 = arith.constant 3.200000e+01 : f32
    %126 = vector.broadcast %cst_34 : f32 to vector<66x1xf32>
    %127 = arith.divf %125, %126 : vector<66x1xf32>
    %128 = vector.broadcast %127 : vector<66x1xf32> to vector<66x32xf32>
    %129 = arith.subf %123, %128 : vector<66x32xf32>
    %130 = arith.mulf %129, %129 : vector<66x32xf32>
    %cst_35 = arith.constant dense<0.000000e+00> : vector<66xf32>
    %131 = vector.multi_reduction <add>, %130, %cst_35 [1] : vector<66x32xf32> to vector<66xf32>
    %132 = vector.shape_cast %131 : vector<66xf32> to vector<66x1xf32>
    %cst_36 = arith.constant 3.200000e+01 : f32
    %133 = vector.broadcast %cst_36 : f32 to vector<66x1xf32>
    %134 = arith.divf %132, %133 : vector<66x1xf32>
    %cst_37 = arith.constant 9.99999974E-6 : f32
    %135 = vector.broadcast %cst_37 : f32 to vector<66x1xf32>
    %136 = arith.addf %134, %135 : vector<66x1xf32>
    %137 = math.rsqrt %136 : vector<66x1xf32>
    %138 = vector.broadcast %137 : vector<66x1xf32> to vector<66x32xf32>
    %139 = arith.mulf %129, %138 : vector<66x32xf32>
    %140 = vector.broadcast %6 : vector<1x32xf32> to vector<66x32xf32>
    %141 = arith.mulf %139, %140 : vector<66x32xf32>
    %142 = vector.broadcast %7 : vector<1x32xf32> to vector<66x32xf32>
    %143 = arith.addf %141, %142 : vector<66x32xf32>
    %cst_38 = arith.constant dense<0.000000e+00> : vector<66x64xf32>
    %144 = tpu.matmul %143, %14, %cst_38 {dimension_numbers = #tpu.dot_dimension_numbers<[1], [0], [0], [1], [0, 0, 1, 1], [], []>} : vector<66x32xf32>, vector<32x64xf32>, vector<66x64xf32> -> vector<66x64xf32>
    %145 = vector.broadcast %10 : vector<1x64xf32> to vector<66x64xf32>
    %146 = arith.addf %144, %145 : vector<66x64xf32>
    %cst_39 = arith.constant 0.000000e+00 : f32
    %147 = vector.broadcast %cst_39 : f32 to vector<66x64xf32>
    %148 = arith.maximumf %146, %147 : vector<66x64xf32>
    %cst_40 = arith.constant dense<0.000000e+00> : vector<66x32xf32>
    %149 = tpu.matmul %148, %2, %cst_40 {dimension_numbers = #tpu.dot_dimension_numbers<[1], [0], [0], [1], [0, 0, 1, 1], [], []>} : vector<66x64xf32>, vector<64x32xf32>, vector<66x32xf32> -> vector<66x32xf32>
    %150 = vector.broadcast %11 : vector<1x32xf32> to vector<66x32xf32>
    %151 = arith.addf %149, %150 : vector<66x32xf32>
    %152 = arith.addf %123, %151 : vector<66x32xf32>
    %c0_41 = arith.constant 0 : index
    %c0_42 = arith.constant 0 : index
    %153 = vector.load %arg5[%c0_41, %c0_42] : memref<66x32xf32, #tpu.memory_space<vmem>>, vector<66x32xf32>
    tpu.vector_store %arg5[%c0_41, %c0_42], %152 {strides = array<i32>} : memref<66x32xf32, #tpu.memory_space<vmem>>, vector<66x32xf32>,
    return
  }
  func.func @transform_0(%arg0: i32) -> (i32, i32) {
    %c0_i32 = arith.constant 0 : i32
    %c0_i32_0 = arith.constant 0 : i32
    %c0_i32_1 = arith.constant 0 : i32
    return %c0_i32, %c0_i32_0 : i32, i32
  }
  func.func @transform_1(%arg0: i32) -> (i32, i32) {
    %c0_i32 = arith.constant 0 : i32
    %c0_i32_0 = arith.constant 0 : i32
    %c0_i32_1 = arith.constant 0 : i32
    return %c0_i32, %c0_i32_0 : i32, i32
  }
  func.func @transform_2(%arg0: i32) -> (i32, i32) {
    %c0_i32 = arith.constant 0 : i32
    %c0_i32_0 = arith.constant 0 : i32
    %c0_i32_1 = arith.constant 0 : i32
    return %c0_i32, %c0_i32_0 : i32, i32
  }
  func.func @transform_3(%arg0: i32) -> (i32, i32) {
    %c0_i32 = arith.constant 0 : i32
    %c0_i32_0 = arith.constant 0 : i32
    %c0_i32_1 = arith.constant 0 : i32
    return %c0_i32, %c0_i32_0 : i32, i32
  }
  func.func @transform_4(%arg0: i32) -> (i32, i32) {
    %c0_i32 = arith.constant 0 : i32
    %c0_i32_0 = arith.constant 0 : i32
    %c0_i32_1 = arith.constant 0 : i32
    return %c0_i32, %c0_i32_0 : i32, i32
  }
}

</mosaic_0001>

<bundles_post_ra>
// kernel: tpu_custom_call.1
= control target key start
LH: loop header
LB: loop body
LE: loop exit
PB: predicated region body
PF: predicated region fallthrough
CT: control target
= control target key end

     0   :  { %vm43_vm0 = vcmask 261120   ;;  %vm68_vm1 = vcmask 254976   ;;  %v11707_v63 = vmov 0.0   ;;  %vm9317_vm2 = vmmov 0   ;;  %s9319_s17 = smov 96   ;;  %s9320_s18 = smov 64   ;;  %s11702_s0 = inlined_call_operand.vmem [shape: f32[66,32], index: 0, kind: input, shape index: {}]   ;;  %s11703_s1 = inlined_call_operand.vmem [shape: f32[32,192], index: 1, kind: input, shape index: {}]   ;;  %s11704_s3 = inlined_call_operand.vmem [shape: f32[8,96], index: 3, kind: input, shape index: {}]   ;;  %s11705_s2 = inlined_call_operand.vmem [shape: f32[64,32], index: 2, kind: input, shape index: {}]   ;;  %s11706_s4 = inlined_call_operand.vmem [shape: f32[66,32], index: 4, kind: output, shape index: {}]  }
   0x1   :  { %v17_v0 = vld [vmem:[%s11702_s0] sm:$0xff]  ;;  %v19_v1 = vld [vmem:[%s11702_s0 + $0x10] sm:$0xff]  ;;  %v18_v2 = vld [vmem:[%s11702_s0 + $0x8] sm:$0xff]  ;;  %8452 = vmatprep.subr.mxu0 %v11707_v63  ;;  %8487 = vmatprep.subr.mxu1 %v11707_v63  ;;  %s9321_s19 = smov 88   ;;  %s9322_s20 = smov 120   ;;  %vm973_vm3 = vcmask 64512  }
   0x2   :  { %v44_v3 = vsel %vm43_vm0, %v17_v0, 0.0  ;;  %v50_v4 = vsel %vm43_vm0, %v19_v1, 0.0  ;;  %v20_v5 = vld [vmem:[%s11702_s0 + $0x18] sm:$0xff]  ;;  %v47_v6 = vsel %vm43_vm0, %v18_v2, 0.0  ;;  %v21_v8 = vld [vmem:[%s11702_s0 + $0x20] sm:$0xff]  ;;  %v22_v9 = vld [vmem:[%s11702_s0 + $0x28] sm:$0xff]  ;;  %8460 = vmatprep.mubr.msk.f32.mxu0 %vm9317_vm2, %v11707_v63  ;;  %8497 = vmatprep.mubr.msk.f32.mxu1 %vm9317_vm2, %v11707_v63 }
   0x3   :  { %45 = vadd.xlane.f32.xlu0 %v44_v3  ;;  %51 = vadd.xlane.f32.xlu1 %v50_v4  ;;  %v53_v7 = vsel %vm43_vm0, %v20_v5, 0.0  ;;  %v56_v10 = vsel %vm43_vm0, %v21_v8, 0.0  ;;  %v59_v11 = vsel %vm43_vm0, %v22_v9, 0.0  ;;  %v23_v12 = vld [vmem:[%s11702_s0 + $0x30] sm:$0xff]  ;;  %v24_v13 = vld [vmem:[%s11702_s0 + $0x38] sm:$0xff]  ;;  %v26_v3 = vld [vmem:[%s11703_s1] sm:$0xff] }
   0x4   :  { %v62_v14 = vsel %vm43_vm0, %v23_v12, 0.0  ;;  %v65_v15 = vsel %vm43_vm0, %v24_v13, 0.0  ;;  %v25_v16 = vld [vmem:[%s11702_s0 + $0x40] sm:$0x3]  ;;  %vm1535_vm4 = vcmask 1040384   ;;  %vm1414_vm5 = vcmask 269312  }
   0x5   :  { %v69_v17 = vsel %vm68_vm1, %v25_v16, 0.0  ;;  %vm1427_vm6 = vcmask 262144   ;;  %s9323_s21 = smov 56   ;;  %s9324_s24 = smov 32   ;;  %vm7818_vm7 = vcmask 523264  }
   0x6   :  { %s9325_s25 = smov 80   ;;  %s9326_s28 = smov 112  }
   0x7   :  { %48 = vadd.xlane.f32.xlu0 %v47_v6  ;;  %54 = vadd.xlane.f32.xlu1 %v53_v7  ;;  %s9327_s29 = smov 48   ;;  %s9328_s6 = smov 72  }
   0x8   :  { %s9329_s7 = smov 104   ;;  %s9330_s8 = smov 40  }
   0xb   :  { %57 = vadd.xlane.f32.xlu0 %v56_v10  ;;  %60 = vadd.xlane.f32.xlu1 %v59_v11  ;;  %v163_v11 = vlaneseq }
   0xf   :  { %63 = vadd.xlane.f32.xlu0 %v62_v14  ;;  %66 = vadd.xlane.f32.xlu1 %v65_v15 }
  0x13   :  { %70 = vadd.xlane.f32.xlu0 %v69_v17 }
  0x8c   :  { %v46_v18 = vpop.xlane.xlu0 %45  ;;  %v52_v19 = vpop.xlane.xlu1 %51 }
  0x8d   :  { %v73_v20 = vmul.f32 0.03125, %v46_v18  ;;  %v75_v21 = vmul.f32 0.03125, %v52_v19  ;;  %v9459_v18 = vshrl.u32 %v163_v11, 7 }
  0x8f   :  { %v9392_v22 = vsub.f32 %v17_v0, %v73_v20  ;;  %v9394_v23 = vsub.f32 %v19_v1, %v75_v21  ;;  %v32_v0 = vld [vmem:[%s11703_s1 + $0x30] sm:$0xff]  ;;  %v30_v1 = vld [vmem:[%s11703_s1 + $0x20] sm:$0xff]  ;;  %11711 = vst [vmem:[#allocation2_spill] sm:$0xff] %v9459_v18 }
  0x90   :  { %v49_v24 = vpop.xlane.xlu0 %48  ;;  %v55_v25 = vpop.xlane.xlu1 %54  ;;  %8453 = vmatpush3.msra.mxu0 %v32_v0 }
  0x91   :  { %v74_v26 = vmul.f32 0.03125, %v49_v24  ;;  %v76_v27 = vmul.f32 0.03125, %v55_v25  ;;  %v91_v28 = vmul.f32 %v9392_v22, %v9392_v22  ;;  %v93_v29 = vmul.f32 %v9394_v23, %v9394_v23  ;;  %8454 = vmatprep.subr.mxu0 %v11707_v63 }
  0x92   :  { %8455 = vmatpush3.msra.mxu0 %v30_v1 }
  0x93   :  { %v9400_v30 = vsub.f32 %v18_v2, %v74_v26  ;;  %v9402_v31 = vsub.f32 %v20_v5, %v76_v27  ;;  %v100_v32 = vsel %vm43_vm0, %v91_v28, 0.0  ;;  %v106_v35 = vsel %vm43_vm0, %v93_v29, 0.0  ;;  %8456 = vmatprep.subr.mxu0 %v11707_v63  ;;  %v28_v2 = vld [vmem:[%s11703_s1 + $0x10] sm:$0xff]  ;;  %v9465_v27 = vld [vmem:[%s11704_s3] sm:$0xff] }
  0x94   :  { %101 = vadd.xlane.f32.xlu1 %v100_v32  ;;  %v58_v33 = vpop.xlane.xlu0 %57  ;;  %v61_v34 = vpop.xlane.xlu1 %60  ;;  %8457 = vmatpush3.msra.mxu0 %v28_v2  ;;  %v165_v26 = vsub.s32 0, %v9459_v18  ;;  %v178_v28 = vsub.s32 1, %v9459_v18 }
  0x95   :  { %v77_v36 = vmul.f32 0.03125, %v58_v33  ;;  %v78_v37 = vmul.f32 0.03125, %v61_v34  ;;  %v92_v38 = vmul.f32 %v9400_v30, %v9400_v30  ;;  %v94_v39 = vmul.f32 %v9402_v31, %v9402_v31  ;;  %8458 = vmatprep.subr.mxu0 %v11707_v63 }
  0x96   :  { %8459 = vmatpush3.msra.mxu0 %v26_v3  ;;  %v166_v34 = vrot.slane %v9465_v27, %v165_v26 }
  0x97   :  { %v9410_v40 = vsub.f32 %v21_v8, %v77_v36  ;;  %v9412_v41 = vsub.f32 %v22_v9, %v78_v37  ;;  %v103_v42 = vsel %vm43_vm0, %v92_v38, 0.0  ;;  %v109_v45 = vsel %vm43_vm0, %v94_v39, 0.0  ;;  %8537 = vmatprep.subr.mxu0 %v11707_v63 }
  0x98   :  { %107 = vadd.xlane.f32.xlu1 %v106_v35  ;;  %104 = vadd.xlane.f32.xlu0 %v103_v42  ;;  %v64_v43 = vpop.xlane.xlu0 %63  ;;  %v67_v44 = vpop.xlane.xlu1 %66  ;;  %v179_v37 = vrot.slane %v9465_v27, %v178_v28 }
  0x99   :  { %v79_v46 = vmul.f32 0.03125, %v64_v43  ;;  %v80_v47 = vmul.f32 0.03125, %v67_v44  ;;  %v95_v48 = vmul.f32 %v9410_v40, %v9410_v40  ;;  %v96_v49 = vmul.f32 %v9412_v41, %v9412_v41 }
  0x9b   :  { %v9420_v50 = vsub.f32 %v23_v12, %v79_v46  ;;  %v9422_v51 = vsub.f32 %v24_v13, %v80_v47  ;;  %v112_v52 = vsel %vm43_vm0, %v95_v48, 0.0  ;;  %v115_v55 = vsel %vm43_vm0, %v96_v49, 0.0 }
  0x9c   :  { %110 = vadd.xlane.f32.xlu0 %v109_v45  ;;  %113 = vadd.xlane.f32.xlu1 %v112_v52  ;;  %v71_v53 = vpop.xlane.xlu0 %70 }
  0x9d   :  { %v81_v54 = vmul.f32 0.03125, %v71_v53  ;;  %v97_v56 = vmul.f32 %v9420_v50, %v9420_v50  ;;  %v98_v57 = vmul.f32 %v9422_v51, %v9422_v51 }
  0x9f   :  { %v9430_v58 = vsub.f32 %v25_v16, %v81_v54  ;;  %v118_v59 = vsel %vm43_vm0, %v97_v56, 0.0  ;;  %v121_v60 = vsel %vm43_vm0, %v98_v57, 0.0 }
  0xa0   :  { %116 = vadd.xlane.f32.xlu0 %v115_v55  ;;  %119 = vadd.xlane.f32.xlu1 %v118_v59 }
  0xa1   :  { %v99_v61 = vmul.f32 %v9430_v58, %v9430_v58 }
  0xa3   :  { %v124_v62 = vsel %vm68_vm1, %v99_v61, 0.0 }
  0xa4   :  { %122 = vadd.xlane.f32.xlu0 %v121_v60  ;;  %125 = vadd.xlane.f32.xlu1 %v124_v62 }
 0x11d   :  { %v102_v4 = vpop.xlane.xlu1 %101 }
 0x11e   :  { %v127_v5 = vmul.f32 0.03125, %v102_v4 }
 0x120   :  { %v136_v6 = vadd.f32 1e-05, %v127_v5 }
 0x121   :  { %v108_v7 = vpop.xlane.xlu1 %107  ;;  %v105_v8 = vpop.xlane.xlu0 %104 }
 0x122   :  { %9106 = vrsqrt.f32 %v136_v6  ;;  %v129_v9 = vmul.f32 0.03125, %v108_v7  ;;  %v128_v10 = vmul.f32 0.03125, %v105_v8 }
 0x124   :  { %v138_v12 = vadd.f32 1e-05, %v129_v9  ;;  %v137_v13 = vadd.f32 1e-05, %v128_v10 }
 0x125   :  { %v114_v14 = vpop.xlane.xlu1 %113  ;;  %v111_v15 = vpop.xlane.xlu0 %110 }
 0x126   :  { %9108 = vrsqrt.f32 %v138_v12  ;;  %v131_v16 = vmul.f32 0.03125, %v114_v14  ;;  %v130_v17 = vmul.f32 0.03125, %v111_v15  ;;  %v9318_v12 = vmov 1966171168  }
 0x127   :  { %9110 = vrsqrt.f32 %v137_v13  ;;  %v191_v13 = vsub.s32 4, %v9459_v18 }
 0x128   :  { %v139_v19 = vadd.f32 1e-05, %v130_v17  ;;  %v140_v20 = vadd.f32 1e-05, %v131_v16 }
 0x129   :  { %v117_v21 = vpop.xlane.xlu0 %116  ;;  %v120_v24 = vpop.xlane.xlu1 %119  ;;  %v9508_v15 = vrot.slane %v9465_v27, %v191_v13 }
 0x12a   :  { %v132_v25 = vmul.f32 0.03125, %v117_v21  ;;  %9112 = vrsqrt.f32 %v139_v19  ;;  %v133_v29 = vmul.f32 0.03125, %v120_v24 }
 0x12b   :  { %9114 = vrsqrt.f32 %v140_v20 }
 0x12c   :  { %v141_v32 = vadd.f32 1e-05, %v132_v25  ;;  %v142_v38 = vadd.f32 1e-05, %v133_v29 }
 0x12d   :  { %v123_v33 = vpop.xlane.xlu0 %122  ;;  %v126_v39 = vpop.xlane.xlu1 %125 }
 0x12e   :  { %9116 = vrsqrt.f32 %v141_v32  ;;  %v134_v42 = vmul.f32 0.03125, %v123_v33  ;;  %v135_v46 = vmul.f32 0.03125, %v126_v39 }
 0x12f   :  { %v9107_v35 = vpop.eup %9106  ;;  %9118 = vrsqrt.f32 %v142_v38 }
 0x130   :  { %v154_v36 = vmul.f32 %v9107_v35, %v9392_v22  ;;  %v143_v48 = vadd.f32 1e-05, %v134_v42  ;;  %v144_v54 = vadd.f32 1e-05, %v135_v46 }
 0x132   :  { %v167_v43 = vmul.f32 %v166_v34, %v154_v36  ;;  %9120 = vrsqrt.f32 %v143_v48 }
 0x133   :  { %v9109_v44 = vpop.eup %9108  ;;  %9122 = vrsqrt.f32 %v144_v54 }
 0x134   :  { %v9111_v45 = vpop.eup %9110  ;;  %v180_v47 = vadd.f32 %v179_v37, %v167_v43  ;;  %v156_v52 = vmul.f32 %v9109_v44, %v9394_v23 }
 0x135   :  { %v155_v49 = vmul.f32 %v9111_v45, %v9400_v30 }
 0x136   :  { %8461 = vmatmul.mubr.msk.f32.vlgmr.msra.gmra.mxu0 %vm43_vm0, %v180_v47  ;;  %v169_v56 = vmul.f32 %v166_v34, %v156_v52 }
 0x137   :  { %8463 = vmatprep.mubr.msk.f32.mxu0 %vm9317_vm2, %v11707_v63  ;;  %v168_v22 = vmul.f32 %v166_v34, %v155_v49  ;;  %v9113_v53 = vpop.eup %9112 }
 0x138   :  { %v157_v57 = vmul.f32 %v9113_v53, %v9402_v31  ;;  %v9115_v59 = vpop.eup %9114  ;;  %v182_v23 = vadd.f32 %v179_v37, %v169_v56 }
 0x139   :  { %v181_v55 = vadd.f32 %v179_v37, %v168_v22  ;;  %v158_v60 = vmul.f32 %v9115_v59, %v9410_v40 }
 0x13a   :  { %v170_v30 = vmul.f32 %v166_v34, %v157_v57 }
 0x13b   :  { %8464 = vmatmul.mubr.msk.f32.gmra.mxu0 %vm43_vm0, %v181_v55  ;;  %v9117_v61 = vpop.eup %9116  ;;  %v171_v0 = vmul.f32 %v166_v34, %v158_v60 }
 0x13c   :  { %8466 = vmatprep.mubr.msk.f32.mxu0 %vm9317_vm2, %v11707_v63  ;;  %v183_v62 = vadd.f32 %v179_v37, %v170_v30  ;;  %v159_v31 = vmul.f32 %v9117_v61, %v9412_v41  ;;  %v9119_v1 = vpop.eup %9118 }
 0x13d   :  { %v184_v2 = vadd.f32 %v179_v37, %v171_v0  ;;  %v160_v40 = vmul.f32 %v9119_v1, %v9420_v50 }
 0x13e   :  { %v172_v3 = vmul.f32 %v166_v34, %v159_v31 }
 0x13f   :  { %8467 = vmatmul.mubr.msk.f32.gmra.mxu0 %vm43_vm0, %v182_v23  ;;  %v9121_v4 = vpop.eup %9120  ;;  %v173_v6 = vmul.f32 %v166_v34, %v160_v40 }
 0x140   :  { %8469 = vmatprep.mubr.msk.f32.mxu0 %vm9317_vm2, %v11707_v63  ;;  %v185_v5 = vadd.f32 %v179_v37, %v172_v3  ;;  %v161_v41 = vmul.f32 %v9121_v4, %v9422_v51  ;;  %v9123_v7 = vpop.eup %9122 }
 0x141   :  { %v186_v8 = vadd.f32 %v179_v37, %v173_v6  ;;  %v162_v50 = vmul.f32 %v9123_v7, %v9430_v58  ;;  %v341_v58 = vunpack.c.l.s4 %v9318_v12 }
 0x142   :  { %v174_v9 = vmul.f32 %v166_v34, %v161_v41 }
 0x143   :  { %8470 = vmatmul.mubr.msk.f32.gmra.mxu0 %vm43_vm0, %v183_v62  ;;  %v175_v11 = vmul.f32 %v166_v34, %v162_v50  ;;  %v342_v14 = vunpack.c.0.s8 %v341_v58 }
 0x144   :  { %8472 = vmatprep.mubr.msk.f32.mxu0 %vm9317_vm2, %v11707_v63  ;;  %v187_v10 = vadd.f32 %v179_v37, %v174_v9 }
 0x145   :  { %v188_v51 = vadd.f32 %v179_v37, %v175_v11  ;;  %v9511_v16 = vsub.s32 %v342_v14, %v9459_v18 }
 0x147   :  { %8473 = vmatmul.mubr.msk.f32.gmra.mxu0 %vm43_vm0, %v184_v2 }
 0x148   :  { %8475 = vmatprep.mubr.msk.f32.mxu0 %vm9317_vm2, %v11707_v63 }
 0x14b   :  { %8476 = vmatmul.mubr.msk.f32.gmra.mxu0 %vm43_vm0, %v185_v5 }
 0x14c   :  { %8478 = vmatprep.mubr.msk.f32.mxu0 %vm9317_vm2, %v11707_v63 }
 0x14f   :  { %8479 = vmatmul.mubr.msk.f32.gmra.mxu0 %vm43_vm0, %v186_v8 }
 0x150   :  { %8481 = vmatprep.mubr.msk.f32.mxu0 %vm9317_vm2, %v11707_v63 }
 0x153   :  { %8482 = vmatmul.mubr.msk.f32.gmra.mxu0 %vm43_vm0, %v187_v10 }
 0x154   :  { %8484 = vmatprep.mubr.msk.f32.mxu0 %vm9317_vm2, %v11707_v63 }
 0x157   :  { %8485 = vmatmul.mubr.msk.f32.gmra.mxu0 %vm43_vm0, %v188_v51 }
 0x158   :  { %8547 = vmatprep.mubr.msk.f32.mxu0 %vm9317_vm2, %v11707_v63 }
 0x1f6   :  { %v286_v17 = vpop.f32.mrf.mxu0 }
 0x1f7   :  { %v287_v19 = vadd.f32 %v286_v17, %v9508_v15 }
 0x1f8   :  { %v8462_v20 = vpop.f32.mrf.mxu0 }
 0x1f9   :  { %v339_v21 = vcombine.high %v287_v19, %v287_v19  ;;  %v346_v24 = vrot.slane %v287_v19, %v9511_v16 }
 0x1fb   :  { %v353_v25 = vrot.slane %v339_v21, %v9511_v16  ;;  %v354_v26 = vcombine.high %v346_v24, %v346_v24  ;;  %v291_v28 = vpop.f32.mrf.mxu0  ;;  %v362_v38 = vrot.slane %v346_v24, %v9511_v16 }
 0x1fc   :  { %v292_v29 = vadd.f32 %v291_v28, %v9508_v15 }
 0x1fd   :  { %v355_v32 = vcombine.high %v353_v25, %v353_v25  ;;  %v8465_v33 = vpop.f32.mrf.mxu0  ;;  %v376_v27 = vrot.slane %v354_v26, %v9511_v16  ;;  %v369_v44 = vrot.slane %v353_v25, %v9511_v16 }
 0x1fe   :  { %v388_v34 = vcombine.high %v292_v29, %v292_v29  ;;  %v395_v35 = vrot.slane %v292_v29, %v9511_v16 }
 0x1ff   :  { %v383_v36 = vrot.slane %v355_v32, %v9511_v16  ;;  %v296_v37 = vpop.f32.mrf.mxu0  ;;  %v753_v46 = vcombine.low %v362_v38, %v376_v27  ;;  %v7987_v47 = vcombine.high %v362_v38, %v376_v27 }
 0x200   :  { %v402_v39 = vrot.slane %v388_v34, %v9511_v16  ;;  %v403_v42 = vcombine.high %v395_v35, %v395_v35  ;;  %v297_v43 = vadd.f32 %v296_v37, %v9508_v15  ;;  %v411_v60 = vrot.slane %v395_v35, %v9511_v16 }
 0x201   :  { %v8468_v45 = vpop.f32.mrf.mxu0  ;;  %v755_v49 = vcombine.low %v369_v44, %v383_v36  ;;  %v7988_v52 = vcombine.high %v369_v44, %v383_v36  ;;  %v763_v23 = vrot.slane %v753_v46, %v9511_v16  ;;  %v770_v30 = vrot.slane %v7987_v47, %v9511_v16 }
 0x202   :  { %v437_v48 = vcombine.high %v297_v43, %v297_v43  ;;  %v444_v22 = vrot.slane %v297_v43, %v9511_v16  ;;  %v404_v54 = vcombine.high %v402_v39, %v402_v39  ;;  %v425_v55 = vrot.slane %v403_v42, %v9511_v16 }
 0x203   :  { %v301_v53 = vpop.f32.mrf.mxu0  ;;  %v777_v61 = vrot.slane %v755_v49, %v9511_v16  ;;  %v784_v62 = vrot.slane %v7988_v52, %v9511_v16  ;;  %v785_v7 = vcombine.low %v763_v23, %v770_v30  ;;  %v418_v8 = vrot.slane %v402_v39, %v9511_v16 }
 0x204   :  { %v451_v56 = vrot.slane %v437_v48, %v9511_v16  ;;  %v452_v57 = vcombine.high %v444_v22, %v444_v22  ;;  %v432_v1 = vrot.slane %v404_v54, %v9511_v16  ;;  %v802_v2 = vcombine.low %v411_v60, %v425_v55 }
 0x205   :  { %v8471_v59 = vpop.f32.mrf.mxu0  ;;  %v302_v3 = vadd.f32 %v301_v53, %v9508_v15  ;;  %v7989_v40 = vcombine.high %v411_v60, %v425_v55  ;;  %v786_v10 = vcombine.low %v777_v61, %v784_v62  ;;  %v460_v11 = vrot.slane %v444_v22, %v9511_v16 }
 0x206   :  { %v453_v0 = vcombine.high %v451_v56, %v451_v56  ;;  %v467_v4 = vrot.slane %v451_v56, %v9511_v16  ;;  %v474_v5 = vrot.slane %v452_v57, %v9511_v16  ;;  %v804_v13 = vcombine.low %v418_v8, %v432_v1 }
 0x207   :  { %v306_v31 = vpop.f32.mrf.mxu0  ;;  %v486_v9 = vcombine.high %v302_v3, %v302_v3  ;;  %v493_v50 = vrot.slane %v302_v3, %v9511_v16  ;;  %v7990_v14 = vcombine.high %v418_v8, %v432_v1  ;;  %v9542_v20 = vrot.slane %v802_v2, %v9511_v16 }
 0x208   :  { %v481_v6 = vrot.slane %v453_v0, %v9511_v16  ;;  %v9545_v21 = vrot.slane %v7989_v40, %v9511_v16  ;;  %v851_v24 = vcombine.low %v460_v11, %v474_v5  ;;  %v307_v25 = vadd.f32 %v306_v31, %v9508_v15 }
 0x209   :  { %v8474_v41 = vpop.f32.mrf.mxu0  ;;  %v500_v17 = vrot.slane %v486_v9, %v9511_v16  ;;  %v501_v19 = vcombine.high %v493_v50, %v493_v50  ;;  %v7991_v28 = vcombine.high %v460_v11, %v474_v5  ;;  %v509_v32 = vrot.slane %v493_v50, %v9511_v16 }
 0x20a   :  { %v853_v51 = vcombine.low %v467_v4, %v481_v6  ;;  %v7992_v12 = vcombine.high %v467_v4, %v481_v6  ;;  %v535_v35 = vcombine.high %v307_v25, %v307_v25  ;;  %v542_v36 = vrot.slane %v307_v25, %v9511_v16 }
 0x20b   :  { %v311_v58 = vpop.f32.mrf.mxu0  ;;  %v502_v29 = vcombine.high %v500_v17, %v500_v17  ;;  %v523_v33 = vrot.slane %v501_v19, %v9511_v16  ;;  %v516_v38 = vrot.slane %v500_v17, %v9511_v16  ;;  %v826_v54 = vrot.slane %v804_v13, %v9511_v16 }
 0x20c   :  { %v875_v27 = vrot.slane %v853_v51, %v9511_v16  ;;  %v882_v34 = vrot.slane %v7992_v12, %v9511_v16  ;;  %v549_v44 = vrot.slane %v535_v35, %v9511_v16  ;;  %v550_v45 = vcombine.high %v542_v36, %v542_v36 }
 0x20d   :  { %v8477_v26 = vpop.f32.mrf.mxu0  ;;  %v530_v39 = vrot.slane %v502_v29, %v9511_v16  ;;  %v900_v42 = vcombine.low %v509_v32, %v523_v33  ;;  %v7993_v43 = vcombine.high %v509_v32, %v523_v33  ;;  %v558_v46 = vrot.slane %v542_v36, %v9511_v16 }
 0x20e   :  { %v312_v47 = vadd.f32 %v311_v58, %v9508_v15  ;;  %v833_v55 = vrot.slane %v7990_v14, %v9511_v16  ;;  %v861_v56 = vrot.slane %v851_v24, %v9511_v16  ;;  %v868_v57 = vrot.slane %v7991_v28, %v9511_v16 }
 0x20f   :  { %v316_v37 = vpop.f32.mrf.mxu0  ;;  %v902_v49 = vcombine.low %v516_v38, %v530_v39  ;;  %v7994_v52 = vcombine.high %v516_v38, %v530_v39  ;;  %v910_v22 = vrot.slane %v900_v42, %v9511_v16  ;;  %v917_v53 = vrot.slane %v7993_v43, %v9511_v16 }
 0x210   :  { %v793_v23 = vrot.slane %v785_v7, %v9511_v16  ;;  %v800_v62 = vrot.slane %v786_v10, %v9511_v16  ;;  %v884_v0 = vcombine.low %v875_v27, %v882_v34  ;;  %v551_v31 = vcombine.high %v549_v44, %v549_v44 }
 0x211   :  { %v8480_v48 = vpop.f32.mrf.mxu0  ;;  %v924_v30 = vrot.slane %v902_v49, %v9511_v16  ;;  %v931_v60 = vrot.slane %v7994_v52, %v9511_v16  ;;  %v932_v61 = vcombine.low %v910_v22, %v917_v53  ;;  %v955_v1 = vrot.slane %v558_v46, %v9511_v16 }
 0x212   :  { %v834_v3 = vcombine.low %v9542_v20, %v9545_v21  ;;  %v572_v4 = vrot.slane %v550_v45, %v9511_v16  ;;  %v584_v5 = vcombine.high %v312_v47, %v312_v47  ;;  %v835_v6 = vcombine.low %v826_v54, %v833_v55 }
 0x213   :  { %v321_v59 = vpop.f32.mrf.mxu0  ;;  %v933_v40 = vcombine.low %v924_v30, %v931_v60  ;;  %v883_v41 = vcombine.low %v861_v56, %v868_v57  ;;  %v565_v7 = vrot.slane %v549_v44, %v9511_v16  ;;  %v9574_v8 = vrot.slane %v955_v1, %v9511_v16 }
 0x214   :  { %v940_v50 = vrot.slane %v932_v61, %v9511_v16  ;;  %v591_v11 = vrot.slane %v312_v47, %v9511_v16  ;;  %v598_v51 = vrot.slane %v584_v5, %v9511_v16  ;;  %v898_v12 = vrot.slane %v884_v0, %v9511_v16 }
 0x215   :  { %v8483_v2 = vpop.f32.mrf.mxu0  ;;  %v947_v10 = vrot.slane %v933_v40, %v9511_v16  ;;  %v579_v58 = vrot.slane %v551_v31, %v9511_v16  ;;  %v317_v13 = vadd.f32 %v316_v37, %v9508_v15  ;;  %971 = vrot.lane.b32.xlu0 %v9574_v8, %s9319_s17  ;;  %v9587_v17 = vcombine.low %v793_v23, %v800_v62 }
 0x216   :  { %v580_v20 = vcombine.high %v558_v46, %v558_v46  ;;  %v582_v21 = vcombine.high %v572_v4, %v572_v4  ;;  %v891_v24 = vrot.slane %v883_v41, %v9511_v16  ;;  %v599_v25 = vcombine.high %v591_v11, %v591_v11 }
 0x217   :  { %v9576_v9 = vpop.f32.mrf.mxu0  ;;  %v9589_v19 = vcombine.low %v940_v50, %v947_v10  ;;  %v633_v26 = vcombine.high %v317_v13, %v317_v13  ;;  %v640_v28 = vrot.slane %v317_v13, %v9511_v16  ;;  %v842_v29 = vrot.slane %v834_v3, %v9511_v16 }
 0x218   :  { %v849_v32 = vrot.slane %v835_v6, %v9511_v16  ;;  %v581_v33 = vcombine.high %v565_v7, %v565_v7  ;;  %v600_v27 = vcombine.high %v598_v51, %v598_v51  ;;  %v9597_v34 = vcombine.low %v891_v24, %v898_v12 }
 0x219   :  { %v8486_v14 = vpop.f32.mrf.mxu0  ;;  %969 = vrot.lane.b32.xlu1 %v9589_v19, %s9319_s17  ;;  %v583_v35 = vcombine.high %v579_v58, %v579_v58  ;;  %v647_v36 = vrot.slane %v633_v26, %v9511_v16  ;;  %v648_v37 = vcombine.high %v640_v28, %v640_v28  ;;  %963 = vrot.lane.b32.xlu0 %v9587_v17, %s9319_s17 }
 0x21a   :  { %v9602_v38 = vcombine.low %v572_v4, %v580_v20  ;;  %v9604_v39 = vcombine.low %v582_v21, %v565_v7  ;;  %v607_v42 = vrot.slane %v591_v11, %v9511_v16  ;;  %v614_v43 = vrot.slane %v598_v51, %v9511_v16 }
 0x21b   :  { %v621_v44 = vrot.slane %v599_v25, %v9511_v16  ;;  %v649_v45 = vcombine.high %v647_v36, %v647_v36  ;;  %v656_v46 = vrot.slane %v640_v28, %v9511_v16  ;;  %v663_v47 = vrot.slane %v647_v36, %v9511_v16 }
 0x21c   :  { %v1086_v48 = vcombine.low %v579_v58, %v581_v33  ;;  %v628_v49 = vrot.slane %v600_v27, %v9511_v16  ;;  %v670_v52 = vrot.slane %v648_v37, %v9511_v16  ;;  %v322_v22 = vadd.f32 %v321_v59, %v9508_v15 }
 0x21d   :  { %967 = vrot.lane.b32.xlu1 %v9597_v34, %s9319_s17  ;;  %v1087_v53 = vcombine.low %v583_v35, %v607_v42  ;;  %v677_v54 = vrot.slane %v649_v45, %v9511_v16  ;;  %v678_v55 = vcombine.high %v656_v46, %v656_v46  ;;  %v9617_v56 = vcombine.low %v842_v29, %v849_v32 }
 0x21e   :  { %v630_v57 = vcombine.high %v614_v43, %v614_v43  ;;  %v680_v23 = vcombine.high %v670_v52, %v670_v52  ;;  %v1094_v30 = vrot.slane %v9602_v38, %v9511_v16  ;;  %v1101_v60 = vrot.slane %v9604_v39, %v9511_v16 }
 0x21f   :  { %v631_v61 = vcombine.high %v621_v44, %v621_v44  ;;  %v679_v62 = vcombine.high %v663_v47, %v663_v47  ;;  %v629_v59 = vcombine.high %v607_v42, %v607_v42  ;;  %v1108_v0 = vrot.slane %v1086_v48, %v9511_v16 }
 0x220   :  { %v632_v31 = vcombine.high %v628_v49, %v628_v49  ;;  %v682_v1 = vcombine.high %v322_v22, %v322_v22  ;;  %v1115_v2 = vrot.slane %v1087_v53, %v9511_v16  ;;  %v1182_v3 = vcombine.low %v670_v52, %v678_v55 }
 0x221   :  { %965 = vrot.lane.b32.xlu1 %v9617_v56, %s9319_s17  ;;  %v681_v40 = vcombine.high %v677_v54, %v677_v54  ;;  %v689_v4 = vrot.slane %v322_v22, %v9511_v16  ;;  %v1135_v5 = vcombine.low %v628_v49, %v630_v57  ;;  %v1183_v6 = vcombine.low %v680_v23, %v663_v47 }
 0x222   :  { %v696_v41 = vrot.slane %v682_v1, %v9511_v16  ;;  %v327_v7 = vadd.f32 %v9576_v9, %v9508_v15  ;;  %v1134_v50 = vcombine.low %v631_v61, %v614_v43  ;;  %v1184_v10 = vcombine.low %v677_v54, %v679_v62 }
 0x223   :  { %v697_v11 = vcombine.high %v689_v4, %v689_v4  ;;  %v705_v51 = vrot.slane %v689_v4, %v9511_v16  ;;  %v1136_v12 = vcombine.low %v632_v31, %v656_v46  ;;  %v1192_v20 = vrot.slane %v1182_v3, %v9511_v16 }
 0x224   :  { %v698_v58 = vcombine.high %v696_v41, %v696_v41  ;;  %v712_v13 = vrot.slane %v696_v41, %v9511_v16  ;;  %v737_v14 = vrot.slane %v327_v7, %v9511_v16  ;;  %v1199_v26 = vrot.slane %v1183_v6, %v9511_v16 }
 0x225   :  { %v719_v21 = vrot.slane %v697_v11, %v9511_v16  ;;  %v727_v24 = vcombine.high %v705_v51, %v705_v51  ;;  %v1185_v25 = vcombine.low %v681_v40, %v705_v51  ;;  %v1206_v32 = vrot.slane %v1184_v10, %v9511_v16 }
 0x226   :  { %v726_v15 = vrot.slane %v698_v58, %v9511_v16  ;;  %v728_v9 = vcombine.high %v712_v13, %v712_v13  ;;  %v738_v28 = vcombine.high %v737_v14, %v737_v14  ;;  %v745_v37 = vrot.slane %v737_v14, %v9511_v16 }
 0x227   :  { %v729_v29 = vcombine.high %v719_v21, %v719_v21  ;;  %v1213_v33 = vrot.slane %v1185_v25, %v9511_v16  ;;  %v1231_v27 = vcombine.low %v719_v21, %v727_v24  ;;  %v1117_v39 = vcombine.low %v1108_v0, %v1115_v2 }
 0x228   :  { %v1233_v35 = vcombine.low %v726_v15, %v728_v9  ;;  %v730_v36 = vcombine.high %v726_v15, %v726_v15  ;;  %v752_v38 = vrot.slane %v738_v28, %v9511_v16  ;;  %v1133_v42 = vcombine.low %v621_v44, %v629_v59 }
 0x229   :  { %v1215_v43 = vcombine.low %v1206_v32, %v1213_v33  ;;  %v1232_v45 = vcombine.low %v729_v29, %v712_v13  ;;  %v1164_v46 = vrot.slane %v1136_v12, %v9511_v16  ;;  %v1214_v47 = vcombine.low %v1192_v20, %v1199_v26 }
 0x22a   :  { %v1234_v48 = vcombine.low %v730_v36, %v745_v37  ;;  %v1286_v49 = vrot.slane %v752_v38, %v9511_v16  ;;  %v1150_v52 = vrot.slane %v1134_v50, %v9511_v16  ;;  %v1157_v22 = vrot.slane %v1135_v5, %v9511_v16 }
 0x22b   :  { %v1241_v53 = vrot.slane %v1231_v27, %v9511_v16  ;;  %v1248_v54 = vrot.slane %v1232_v45, %v9511_v16  ;;  %v1229_v55 = vrot.slane %v1215_v43, %v9511_v16  ;;  %v1255_v44 = vrot.slane %v1233_v35, %v9511_v16 }
 0x22c   :  { %v1262_v57 = vrot.slane %v1234_v48, %v9511_v16  ;;  %v9652_v23 = vrot.slane %v1286_v49, %v9511_v16  ;;  %v1116_v61 = vcombine.low %v1094_v30, %v1101_v60  ;;  %v1143_v59 = vrot.slane %v1133_v42, %v9511_v16 }
 0x22d   :  { %v1263_v62 = vcombine.low %v1241_v53, %v1248_v54  ;;  %v1166_v0 = vcombine.low %v1157_v22, %v1164_v46  ;;  %v1222_v31 = vrot.slane %v1214_v47, %v9511_v16  ;;  %v1131_v2 = vrot.slane %v1117_v39, %v9511_v16 }
 0x22e   :  { %v1264_v1 = vcombine.low %v1255_v44, %v1262_v57  ;;  %1302 = vrot.lane.b32.xlu1 %v9652_v23, %s9319_s17  ;;  %v1165_v3 = vcombine.low %v1143_v59, %v1150_v52  ;;  %v1124_v30 = vrot.slane %v1116_v61, %v9511_v16 }
 0x22f   :  { %v9659_v40 = vcombine.low %v1222_v31, %v1229_v55  ;;  %v1271_v4 = vrot.slane %v1263_v62, %v9511_v16  ;;  %v1180_v60 = vrot.slane %v1166_v0, %v9511_v16 }
 0x230   :  { %v1278_v5 = vrot.slane %v1264_v1, %v9511_v16  ;;  %v9669_v41 = vcombine.low %v1124_v30, %v1131_v2  ;;  %v1173_v7 = vrot.slane %v1165_v3, %v9511_v16 }
 0x232   :  { %v9665_v6 = vcombine.low %v1271_v4, %v1278_v5  ;;  %1298 = vrot.lane.b32.xlu1 %v9659_v40, %s9319_s17  ;;  %v9674_v50 = vcombine.low %v1173_v7, %v1180_v60 }
 0x234   :  { %1300 = vrot.lane.b32.xlu0 %v9665_v6, %s9319_s17 }
 0x236   :  { %1294 = vrot.lane.b32.xlu1 %v9669_v41, %s9319_s17 }
 0x238   :  { %1296 = vrot.lane.b32.xlu0 %v9674_v50, %s9319_s17 }
 0x23a   :  { %1512 = vrot.lane.b32.xlu1 %v9589_v19, %s9320_s18 }
 0x23c   :  { %1514 = vrot.lane.b32.xlu0 %v9574_v8, %s9320_s18 }
 0x23e   :  { %1506 = vrot.lane.b32.xlu1 %v9587_v17, %s9320_s18 }
 0x240   :  { %1510 = vrot.lane.b32.xlu0 %v9597_v34, %s9320_s18 }
 0x242   :  { %2213 = vrot.lane.b32.xlu1 %v9597_v34, %s9321_s19 }
 0x244   :  { %1508 = vrot.lane.b32.xlu0 %v9617_v56, %s9320_s18 }
 0x246   :  { %2211 = vrot.lane.b32.xlu1 %v9617_v56, %s9321_s19 }
 0x248   :  { %2217 = vrot.lane.b32.xlu0 %v9574_v8, %s9321_s19 }
 0x24a   :  { %1632 = vrot.lane.b32.xlu1 %v9659_v40, %s9320_s18 }
 0x24c   :  { %2215 = vrot.lane.b32.xlu0 %v9589_v19, %s9321_s19 }
 0x24e   :  { %1630 = vrot.lane.b32.xlu1 %v9674_v50, %s9320_s18 }
 0x250   :  { %1636 = vrot.lane.b32.xlu0 %v9652_v23, %s9320_s18 }
 0x252   :  { %2209 = vrot.lane.b32.xlu1 %v9587_v17, %s9321_s19 }
 0x254   :  { %1628 = vrot.lane.b32.xlu0 %v9669_v41, %s9320_s18 }
 0x256   :  { %2199 = vrot.lane.b32.xlu1 %v9587_v17, %s9322_s20 }
 0x258   :  { %2347 = vrot.lane.b32.xlu0 %v9652_v23, %s9321_s19 }
 0x25a   :  { %2201 = vrot.lane.b32.xlu1 %v9617_v56, %s9322_s20 }
 0x25c   :  { %2343 = vrot.lane.b32.xlu0 %v9659_v40, %s9321_s19 }
 0x25e   :  { %2203 = vrot.lane.b32.xlu1 %v9597_v34, %s9322_s20 }
 0x260   :  { %2345 = vrot.lane.b32.xlu0 %v9665_v6, %s9321_s19 }
 0x262   :  { %1634 = vrot.lane.b32.xlu1 %v9665_v6, %s9320_s18 }
 0x287   :  { %v972_v10 = vpop.permute.xlu0 %971 }
 0x288   :  { %8488 = vmatpush3.xpose.msk.msra.mxu1 %vm973_vm3, %v972_v10 }
 0x289   :  { %8489 = vmatprep.subr.mxu1 %v11707_v63 }
 0x28b   :  { %v970_v11 = vpop.permute.xlu1 %969  ;;  %v964_v58 = vpop.permute.xlu0 %963 }
 0x28c   :  { %8490 = vmatpush3.xpose.msk.msra.mxu1 %vm973_vm3, %v970_v11 }
 0x28d   :  { %8491 = vmatprep.subr.mxu1 %v11707_v63 }
 0x28f   :  { %v968_v51 = vpop.permute.xlu1 %967 }
 0x290   :  { %8492 = vmatpush3.xpose.msk.msra.mxu1 %vm973_vm3, %v968_v51 }
 0x291   :  { %8493 = vmatprep.subr.mxu1 %v11707_v63 }
 0x293   :  { %v966_v12 = vpop.permute.xlu1 %965 }
 0x294   :  { %8494 = vmatpush3.xpose.msk.msra.mxu1 %vm973_vm3, %v966_v12 }
 0x295   :  { %8495 = vmatprep.subr.mxu1 %v11707_v63 }
 0x298   :  { %8496 = vmatpush3.xpose.msk.msra.mxu1 %vm973_vm3, %v964_v58 }
 0x299   :  { %8512 = vmatprep.subr.mxu1 %v11707_v63 }
 0x29b   :  { %8498 = vmatmul.mubr.msk.f32.vlgmr.msra.gmra.mxu1 %vm973_vm3, %v9587_v17 }
 0x29c   :  { %8500 = vmatprep.mubr.msk.f32.mxu1 %vm9317_vm2, %v11707_v63 }
 0x29f   :  { %8501 = vmatmul.mubr.msk.f32.gmra.mxu1 %vm973_vm3, %v9617_v56 }
 0x2a0   :  { %v1303_v13 = vpop.permute.xlu1 %1302  ;;  %8503 = vmatprep.mubr.msk.f32.mxu1 %vm9317_vm2, %v11707_v63 }
 0x2a1   :  { %8513 = vmatpush3.xpose.msk.msra.mxu1 %vm973_vm3, %v1303_v13 }
 0x2a2   :  { %8514 = vmatprep.subr.mxu1 %v11707_v63 }
 0x2a3   :  { %8504 = vmatmul.mubr.msk.f32.gmra.mxu1 %vm973_vm3, %v9597_v34 }
 0x2a4   :  { %v1299_v14 = vpop.permute.xlu1 %1298  ;;  %8506 = vmatprep.mubr.msk.f32.mxu1 %vm9317_vm2, %v11707_v63 }
 0x2a6   :  { %v1301_v20 = vpop.permute.xlu0 %1300 }
 0x2a7   :  { %8515 = vmatpush3.xpose.msk.msra.mxu1 %vm973_vm3, %v1301_v20 }
 0x2a8   :  { %v1295_v21 = vpop.permute.xlu1 %1294  ;;  %8516 = vmatprep.subr.mxu1 %v11707_v63  ;;  %8507 = vmatmul.mubr.msk.f32.gmra.mxu1 %vm973_vm3, %v9589_v19 }
 0x2a9   :  { %8509 = vmatprep.mubr.msk.f32.mxu1 %vm9317_vm2, %v11707_v63 }
 0x2aa   :  { %v1297_v24 = vpop.permute.xlu0 %1296 }
 0x2ab   :  { %8517 = vmatpush3.xpose.msk.msra.mxu1 %vm973_vm3, %v1299_v14 }
 0x2ac   :  { %v1513_v25 = vpop.permute.xlu1 %1512  ;;  %8518 = vmatprep.subr.mxu1 %v11707_v63  ;;  %8510 = vmatmul.mubr.msk.f32.gmra.mxu1 %vm973_vm3, %v9574_v8 }
 0x2ad   :  { %8522 = vmatprep.mubr.msk.f32.mxu1 %vm9317_vm2, %v11707_v63 }
 0x2ae   :  { %v1515_v26 = vpop.permute.xlu0 %1514 }
 0x2af   :  { %8538 = vmatpush3.msk.msra.mxu0 %vm1535_vm4, %v1515_v26  ;;  %8519 = vmatpush3.xpose.msk.msra.mxu1 %vm973_vm3, %v1297_v24 }
 0x2b0   :  { %v1507_v15 = vpop.permute.xlu1 %1506  ;;  %8539 = vmatprep.subr.mxu0 %v11707_v63  ;;  %8520 = vmatprep.subr.mxu1 %v11707_v63 }
 0x2b1   :  { %8540 = vmatpush3.msra.mxu0 %v1513_v25 }
 0x2b2   :  { %8541 = vmatprep.subr.mxu0 %v11707_v63  ;;  %v1511_v9 = vpop.permute.xlu0 %1510 }
 0x2b3   :  { %8542 = vmatpush3.msra.mxu0 %v1511_v9  ;;  %8521 = vmatpush3.xpose.msk.msra.mxu1 %vm973_vm3, %v1295_v21 }
 0x2b4   :  { %v9754_v28 = vpop.permute.xlu1 %2213  ;;  %8543 = vmatprep.subr.mxu0 %v11707_v63  ;;  %8562 = vmatprep.subr.mxu1 %v11707_v63 }
 0x2b6   :  { %v1509_v29 = vpop.permute.xlu0 %1508  ;;  %8523 = vmatmul.mubr.msk.f32.vlgmr.msra.gmra.mxu1 %vm973_vm3, %v9669_v41 }
 0x2b7   :  { %8544 = vmatpush3.msra.mxu0 %v1509_v29  ;;  %8525 = vmatprep.mubr.msk.f32.mxu1 %vm9317_vm2, %v11707_v63 }
 0x2b8   :  { %v9762_v32 = vpop.permute.xlu1 %2211  ;;  %8545 = vmatprep.subr.mxu0 %v11707_v63 }
 0x2b9   :  { %8546 = vmatpush3.msra.mxu0 %v1507_v15 }
 0x2ba   :  { %v9765_v33 = vpop.permute.xlu0 %2217  ;;  %8526 = vmatmul.mubr.msk.f32.gmra.mxu1 %vm973_vm3, %v9674_v50  ;;  %8587 = vmatprep.subr.mxu0 %v11707_v63 }
 0x2bb   :  { %8528 = vmatprep.mubr.msk.f32.mxu1 %vm9317_vm2, %v11707_v63 }
 0x2bc   :  { %v1633_v27 = vpop.permute.xlu1 %1632 }
 0x2be   :  { %v9772_v35 = vpop.permute.xlu0 %2215  ;;  %8529 = vmatmul.mubr.msk.f32.gmra.mxu1 %vm973_vm3, %v9659_v40 }
 0x2bf   :  { %8531 = vmatprep.mubr.msk.f32.mxu1 %vm9317_vm2, %v11707_v63 }
 0x2c0   :  { %v1631_v36 = vpop.permute.xlu1 %1630 }
 0x2c2   :  { %v1637_v37 = vpop.permute.xlu0 %1636  ;;  %8532 = vmatmul.mubr.msk.f32.gmra.mxu1 %vm973_vm3, %v9665_v6 }
 0x2c3   :  { %8563 = vmatpush3.msk.msra.mxu1 %vm1535_vm4, %v1637_v37  ;;  %8534 = vmatprep.mubr.msk.f32.mxu1 %vm9317_vm2, %v11707_v63 }
 0x2c4   :  { %v9783_v38 = vpop.permute.xlu1 %2209  ;;  %8564 = vmatprep.subr.mxu1 %v11707_v63 }
 0x2c6   :  { %8535 = vmatmul.mubr.msk.f32.gmra.mxu1 %vm973_vm3, %v9652_v23  ;;  %v1629_v46 = vpop.permute.xlu0 %1628 }
 0x2c7   :  { %8572 = vmatprep.mubr.msk.f32.mxu1 %vm9317_vm2, %v11707_v63 }
 0x2c8   :  { %v9790_v39 = vpop.permute.xlu1 %2199 }
 0x2ca   :  { %v9848_v20 = vpop.permute.xlu0 %2347 }
 0x2cc   :  { %v9792_v42 = vpop.permute.xlu1 %2201 }
 0x2ce   :  { %v9856_v21 = vpop.permute.xlu0 %2343 }
 0x2d0   :  { %v9794_v43 = vpop.permute.xlu1 %2203 }
 0x2d2   :  { %v9860_v24 = vpop.permute.xlu0 %2345 }
 0x2d4   :  { %v1635_v45 = vpop.permute.xlu1 %1634 }
 0x2d5   :  { %8565 = vmatpush3.msra.mxu1 %v1635_v45 }
 0x2d6   :  { %8566 = vmatprep.subr.mxu1 %v11707_v63 }
 0x2d7   :  { %8567 = vmatpush3.msra.mxu1 %v1633_v27 }
 0x2d8   :  { %8568 = vmatprep.subr.mxu1 %v11707_v63 }
 0x2d9   :  { %8569 = vmatpush3.msra.mxu1 %v1631_v36 }
 0x2da   :  { %8570 = vmatprep.subr.mxu1 %v11707_v63 }
 0x2db   :  { %8571 = vmatpush3.msra.mxu1 %v1629_v46 }
 0x2dc   :  { %8612 = vmatprep.subr.mxu1 %v11707_v63 }
 0x35b   :  { %v1060_v47 = vpop.f32.mrf.mxu1 }
 0x35c   :  { %v1415_v48 = vsel %vm1414_vm5, %v1060_v47, -inf }
 0x35d   :  { %1416 = vmax.xlane.f32.xlu0 %v1415_v48  ;;  %v8499_v49 = vpop.f32.mrf.mxu1 }
 0x35f   :  { %v1065_v52 = vpop.f32.mrf.mxu1 }
 0x360   :  { %v1418_v22 = vsel %vm1414_vm5, %v1065_v52, -inf }
 0x361   :  { %1419 = vmax.xlane.f32.xlu1 %v1418_v22  ;;  %v8502_v53 = vpop.f32.mrf.mxu1 }
 0x363   :  { %v1070_v54 = vpop.f32.mrf.mxu1 }
 0x364   :  { %v1421_v55 = vsel %vm1414_vm5, %v1070_v54, -inf }
 0x365   :  { %1422 = vmax.xlane.f32.xlu0 %v1421_v55  ;;  %v8505_v44 = vpop.f32.mrf.mxu1 }
 0x368   :  { %v1075_v57 = vpop.f32.mrf.mxu1 }
 0x369   :  { %v1424_v61 = vsel %vm1414_vm5, %v1075_v57, -inf }
 0x36a   :  { %1425 = vmax.xlane.f32.xlu0 %v1424_v61  ;;  %v8508_v62 = vpop.f32.mrf.mxu1 }
 0x36c   :  { %v9804_v59 = vpop.f32.mrf.mxu1 }
 0x36d   :  { %v1428_v0 = vsel %vm1427_vm6, %v9804_v59, -inf }
 0x36e   :  { %1429 = vmax.xlane.f32.xlu0 %v1428_v0  ;;  %v8511_v31 = vpop.f32.mrf.mxu1 }
 0x376   :  { %v9808_v1 = vpop.f32.mrf.mxu1 }
 0x377   :  { %v1431_v2 = vsel %vm1414_vm5, %v9808_v1, -inf }
 0x378   :  { %1432 = vmax.xlane.f32.xlu1 %v1431_v2  ;;  %v8524_v3 = vpop.f32.mrf.mxu1 }
 0x37a   :  { %v9812_v4 = vpop.f32.mrf.mxu1 }
 0x37b   :  { %v1434_v5 = vsel %vm1414_vm5, %v9812_v4, -inf }
 0x37c   :  { %1435 = vmax.xlane.f32.xlu1 %v1434_v5  ;;  %v8527_v30 = vpop.f32.mrf.mxu1 }
 0x37e   :  { %v9816_v60 = vpop.f32.mrf.mxu1 }
 0x37f   :  { %v1437_v7 = vsel %vm1414_vm5, %v9816_v60, -inf }
 0x380   :  { %1438 = vmax.xlane.f32.xlu0 %v1437_v7  ;;  %v8530_v10 = vpop.f32.mrf.mxu1 }
 0x382   :  { %v9820_v11 = vpop.f32.mrf.mxu1 }
 0x383   :  { %v1440_v13 = vsel %vm1414_vm5, %v9820_v11, -inf }
 0x384   :  { %v8533_v51 = vpop.f32.mrf.mxu1 }
 0x386   :  { %v9822_v12 = vpop.f32.mrf.mxu1 }
 0x387   :  { %v1443_v14 = vsel %vm1427_vm6, %v9822_v12, -inf }
 0x388   :  { %v8536_v58 = vpop.f32.mrf.mxu1 }
 0x38d   :  { %2205 = vrot.lane.b32.xlu1 %v9589_v19, %s9322_s20 }
 0x396   :  { %2341 = vrot.lane.b32.xlu0 %v9674_v50, %s9321_s19 }
 0x3b1   :  { %1441 = vmax.xlane.f32.xlu1 %v1440_v13 }
 0x3b5   :  { %1444 = vmax.xlane.f32.xlu0 %v1443_v14 }
 0x3c2   :  { %2207 = vrot.lane.b32.xlu1 %v9574_v8, %s9322_s20 }
 0x3c6   :  { %2329 = vrot.lane.b32.xlu1 %v9669_v41, %s9322_s20 }
 0x3ca   :  { %2333 = vrot.lane.b32.xlu1 %v9659_v40, %s9322_s20 }
 0x3cb   :  { %2339 = vrot.lane.b32.xlu0 %v9669_v41, %s9321_s19 }
 0x3ce   :  { %2337 = vrot.lane.b32.xlu1 %v9652_v23, %s9322_s20 }
 0x3cf   :  { %2331 = vrot.lane.b32.xlu0 %v9674_v50, %s9322_s20 }
 0x3d2   :  { %2555 = vrot.lane.b32.xlu1 %v9589_v19, %s9323_s21 }
 0x3d3   :  { %2335 = vrot.lane.b32.xlu0 %v9665_v6, %s9322_s20 }
 0x3d6   :  { %2549 = vrot.lane.b32.xlu1 %v9587_v17, %s9323_s21 }
 0x3d7   :  { %2557 = vrot.lane.b32.xlu0 %v9574_v8, %s9323_s21 }
 0x3db   :  { %2553 = vrot.lane.b32.xlu0 %v9597_v34, %s9323_s21 }
 0x3df   :  { %2551 = vrot.lane.b32.xlu0 %v9617_v56, %s9323_s21 }
 0x3e3   :  { %2678 = vrot.lane.b32.xlu0 %v9652_v23, %s9323_s21 }
 0x3e6   :  { %v1417_v25 = vpop.xlane.xlu0 %1416 }
 0x3e7   :  { %v1446_v26 = vsub.f32 %v1060_v47, %v1417_v25 }
 0x3e9   :  { %v1456_v15 = vmul.f32 1.442695, %v1446_v26 }
 0x3ea   :  { %v1420_v9 = vpop.xlane.xlu1 %1419 }
 0x3eb   :  { %9124 = vpow2.f32 %v1456_v15  ;;  %v1447_v29 = vsub.f32 %v1065_v52, %v1420_v9 }
 0x3ed   :  { %v1458_v27 = vmul.f32 1.442695, %v1447_v29 }
 0x3ee   :  { %v1423_v36 = vpop.xlane.xlu0 %1422 }
 0x3ef   :  { %9126 = vpow2.f32 %v1458_v27  ;;  %v1448_v37 = vsub.f32 %v1070_v54, %v1423_v36 }
 0x3f1   :  { %v1460_v45 = vmul.f32 1.442695, %v1448_v37 }
 0x3f3   :  { %9128 = vpow2.f32 %v1460_v45  ;;  %v1426_v46 = vpop.xlane.xlu0 %1425 }
 0x3f4   :  { %v1449_v48 = vsub.f32 %v1075_v57, %v1426_v46 }
 0x3f6   :  { %v1462_v49 = vmul.f32 1.442695, %v1449_v48 }
 0x3f7   :  { %v1430_v22 = vpop.xlane.xlu0 %1429 }
 0x3f8   :  { %v9864_v53 = vpop.eup %9124  ;;  %9130 = vpow2.f32 %v1462_v49  ;;  %v1450_v55 = vsub.f32 %v9804_v59, %v1430_v22 }
 0x3f9   :  { %8548 = vmatmul.mubr.msk.f32.vlgmr.msra.gmra.mxu0 %vm1414_vm5, %v9864_v53 }
 0x3fa   :  { %v1464_v47 = vmul.f32 1.442695, %v1450_v55  ;;  %8588 = vmatpush3.xpose.msk.msra.mxu0 %vm973_vm3, %v9765_v33  ;;  %8550 = vmatprep.mubr.msk.f32.mxu0 %vm9317_vm2, %v11707_v63 }
 0x3fb   :  { %8589 = vmatprep.subr.mxu0 %v11707_v63 }
 0x3fc   :  { %v9874_v52 = vpop.eup %9126  ;;  %9132 = vpow2.f32 %v1464_v47 }
 0x3fd   :  { %8551 = vmatmul.mubr.msk.f32.gmra.mxu0 %vm1414_vm5, %v9874_v52 }
 0x3fe   :  { %8590 = vmatpush3.xpose.msk.msra.mxu0 %vm973_vm3, %v9772_v35  ;;  %8553 = vmatprep.mubr.msk.f32.mxu0 %vm9317_vm2, %v11707_v63 }
 0x3ff   :  { %8591 = vmatprep.subr.mxu0 %v11707_v63 }
 0x400   :  { %v9883_v33 = vpop.eup %9128 }
 0x401   :  { %v1433_v54 = vpop.xlane.xlu1 %1432  ;;  %8554 = vmatmul.mubr.msk.f32.gmra.mxu0 %vm1414_vm5, %v9883_v33 }
 0x402   :  { %v1451_v44 = vsub.f32 %v9808_v1, %v1433_v54  ;;  %8592 = vmatpush3.xpose.msk.msra.mxu0 %vm973_vm3, %v9754_v28  ;;  %8556 = vmatprep.mubr.msk.f32.mxu0 %vm9317_vm2, %v11707_v63 }
 0x403   :  { %8593 = vmatprep.subr.mxu0 %v11707_v63 }
 0x404   :  { %v1466_v35 = vmul.f32 1.442695, %v1451_v44 }
 0x405   :  { %v9893_v57 = vpop.eup %9130  ;;  %v1436_v61 = vpop.xlane.xlu1 %1435 }
 0x406   :  { %9134 = vpow2.f32 %v1466_v35  ;;  %v1452_v62 = vsub.f32 %v9812_v4, %v1436_v61  ;;  %8557 = vmatmul.mubr.msk.f32.gmra.mxu0 %vm1414_vm5, %v9893_v57 }
 0x407   :  { %8594 = vmatpush3.xpose.msk.msra.mxu0 %vm973_vm3, %v9762_v32  ;;  %8559 = vmatprep.mubr.msk.f32.mxu0 %vm9317_vm2, %v11707_v63 }
 0x408   :  { %v1468_v28 = vmul.f32 1.442695, %v1452_v62  ;;  %8595 = vmatprep.subr.mxu0 %v11707_v63 }
 0x409   :  { %v9903_v59 = vpop.eup %9132  ;;  %v1439_v0 = vpop.xlane.xlu0 %1438 }
 0x40a   :  { %9136 = vpow2.f32 %v1468_v28  ;;  %v1453_v31 = vsub.f32 %v9816_v60, %v1439_v0  ;;  %8560 = vmatmul.mubr.msk.f32.gmra.mxu0 %vm1414_vm5, %v9903_v59 }
 0x40b   :  { %8596 = vmatpush3.xpose.msk.msra.mxu0 %vm973_vm3, %v9783_v38  ;;  %8597 = vmatprep.mubr.msk.f32.mxu0 %vm9317_vm2, %v11707_v63 }
 0x40c   :  { %v1470_v32 = vmul.f32 1.442695, %v1453_v31  ;;  %8637 = vmatprep.subr.mxu0 %v11707_v63 }
 0x40e   :  { %9138 = vpow2.f32 %v1470_v32  ;;  %8598 = vmatmul.mubr.msk.f32.vlgmr.msra.gmra.mxu0 %vm973_vm3, %v9790_v39  ;;  %v2206_v39 = vpop.permute.xlu1 %2205 }
 0x40f   :  { %8600 = vmatprep.mubr.msk.f32.mxu0 %vm9317_vm2, %v11707_v63 }
 0x412   :  { %8601 = vmatmul.mubr.msk.f32.gmra.mxu0 %vm973_vm3, %v9792_v42 }
 0x413   :  { %v9919_v1 = vpop.eup %9134  ;;  %8603 = vmatprep.mubr.msk.f32.mxu0 %vm9317_vm2, %v11707_v63 }
 0x414   :  { %8573 = vmatmul.mubr.msk.f32.vlgmr.msra.gmra.mxu1 %vm1414_vm5, %v9919_v1 }
 0x415   :  { %8613 = vmatpush3.xpose.msk.msra.mxu1 %vm973_vm3, %v9848_v20  ;;  %8575 = vmatprep.mubr.msk.f32.mxu1 %vm9317_vm2, %v11707_v63 }
 0x416   :  { %8614 = vmatprep.subr.mxu1 %v11707_v63  ;;  %8604 = vmatmul.mubr.msk.f32.gmra.mxu0 %vm973_vm3, %v9794_v43  ;;  %v2342_v43 = vpop.permute.xlu0 %2341 }
 0x417   :  { %v9932_v38 = vpop.eup %9136  ;;  %8606 = vmatprep.mubr.msk.f32.mxu0 %vm9317_vm2, %v11707_v63 }
 0x418   :  { %8576 = vmatmul.mubr.msk.f32.gmra.mxu1 %vm1414_vm5, %v9932_v38 }
 0x419   :  { %8615 = vmatpush3.xpose.msk.msra.mxu1 %vm973_vm3, %v9860_v24  ;;  %8578 = vmatprep.mubr.msk.f32.mxu1 %vm9317_vm2, %v11707_v63 }
 0x41a   :  { %8616 = vmatprep.subr.mxu1 %v11707_v63  ;;  %8607 = vmatmul.mubr.msk.f32.gmra.mxu0 %vm973_vm3, %v2206_v39 }
 0x41b   :  { %v9944_v42 = vpop.eup %9138  ;;  %8609 = vmatprep.mubr.msk.f32.mxu0 %vm9317_vm2, %v11707_v63 }
 0x41c   :  { %8579 = vmatmul.mubr.msk.f32.gmra.mxu1 %vm1414_vm5, %v9944_v42 }
 0x41d   :  { %8617 = vmatpush3.xpose.msk.msra.mxu1 %vm973_vm3, %v9856_v21  ;;  %8581 = vmatprep.mubr.msk.f32.mxu1 %vm9317_vm2, %v11707_v63 }
 0x41e   :  { %8618 = vmatprep.subr.mxu1 %v11707_v63 }
 0x421   :  { %8619 = vmatpush3.xpose.msk.msra.mxu1 %vm973_vm3, %v2342_v43 }
 0x422   :  { %8620 = vmatprep.subr.mxu1 %v11707_v63 }
 0x43a   :  { %v1442_v2 = vpop.xlane.xlu1 %1441 }
 0x43b   :  { %v1454_v3 = vsub.f32 %v9820_v11, %v1442_v2 }
 0x43d   :  { %v1472_v4 = vmul.f32 1.442695, %v1454_v3 }
 0x43e   :  { %v2208_v5 = vpop.permute.xlu1 %2207  ;;  %v1445_v30 = vpop.xlane.xlu0 %1444 }
 0x43f   :  { %9140 = vpow2.f32 %v1472_v4  ;;  %v1455_v60 = vsub.f32 %v9822_v12, %v1445_v30  ;;  %8610 = vmatmul.mubr.msk.f32.gmra.mxu0 %vm973_vm3, %v2208_v5 }
 0x440   :  { %8647 = vmatprep.mubr.msk.f32.mxu0 %vm9317_vm2, %v11707_v63 }
 0x441   :  { %v1474_v7 = vmul.f32 1.442695, %v1455_v60 }
 0x442   :  { %v2330_v10 = vpop.permute.xlu1 %2329  ;;  %v2340_v51 = vpop.permute.xlu0 %2339 }
 0x443   :  { %9142 = vpow2.f32 %v1474_v7  ;;  %8621 = vmatpush3.xpose.msk.msra.mxu1 %vm973_vm3, %v2340_v51 }
 0x444   :  { %9081 = vmatprep.subr.mxu1 %v11707_v63 }
 0x446   :  { %v2334_v11 = vpop.permute.xlu1 %2333  ;;  %v2332_v58 = vpop.permute.xlu0 %2331 }
 0x44a   :  { %v2338_v13 = vpop.permute.xlu1 %2337  ;;  %v2336_v14 = vpop.permute.xlu0 %2335 }
 0x44c   :  { %v9964_v20 = vpop.eup %9140 }
 0x44d   :  { %8582 = vmatmul.mubr.msk.f32.gmra.mxu1 %vm1414_vm5, %v9964_v20 }
 0x44e   :  { %v2558_v12 = vpop.permute.xlu0 %2557  ;;  %8584 = vmatprep.mubr.msk.f32.mxu1 %vm9317_vm2, %v11707_v63  ;;  %v2556_v24 = vpop.permute.xlu1 %2555 }
 0x44f   :  { %8638 = vmatpush3.msk.msra.mxu0 %vm1535_vm4, %v2558_v12 }
 0x450   :  { %v9971_v21 = vpop.eup %9142  ;;  %8639 = vmatprep.subr.mxu0 %v11707_v63 }
 0x451   :  { %8585 = vmatmul.mubr.msk.f32.gmra.mxu1 %vm1414_vm5, %v9971_v21  ;;  %8640 = vmatpush3.msra.mxu0 %v2556_v24 }
 0x452   :  { %8641 = vmatprep.subr.mxu0 %v11707_v63  ;;  %v2554_v25 = vpop.permute.xlu0 %2553  ;;  %8622 = vmatprep.mubr.msk.f32.mxu1 %vm9317_vm2, %v11707_v63  ;;  %v2550_v15 = vpop.permute.xlu1 %2549 }
 0x453   :  { %8642 = vmatpush3.msra.mxu0 %v2554_v25 }
 0x454   :  { %8643 = vmatprep.subr.mxu0 %v11707_v63 }
 0x455   :  { %8623 = vmatmul.mubr.msk.f32.vlgmr.msra.gmra.mxu1 %vm973_vm3, %v2330_v10 }
 0x456   :  { %v2552_v26 = vpop.permute.xlu0 %2551  ;;  %8625 = vmatprep.mubr.msk.f32.mxu1 %vm9317_vm2, %v11707_v63 }
 0x457   :  { %8644 = vmatpush3.msra.mxu0 %v2552_v26 }
 0x458   :  { %8645 = vmatprep.subr.mxu0 %v11707_v63 }
 0x459   :  { %8626 = vmatmul.mubr.msk.f32.gmra.mxu1 %vm973_vm3, %v2332_v58  ;;  %8646 = vmatpush3.msra.mxu0 %v2550_v15 }
 0x45a   :  { %v9985_v9 = vpop.permute.xlu0 %2678  ;;  %8628 = vmatprep.mubr.msk.f32.mxu1 %vm9317_vm2, %v11707_v63  ;;  %8662 = vmatprep.subr.mxu0 %v11707_v63 }
 0x45b   :  { %9086 = vmatpush3.msk.msra.mxu1 %vm1535_vm4, %v9985_v9 }
 0x45c   :  { %9082 = vmatprep.subr.mxu1 %v11707_v63 }
 0x45d   :  { %8629 = vmatmul.mubr.msk.f32.gmra.mxu1 %vm973_vm3, %v2334_v11 }
 0x45e   :  { %8631 = vmatprep.mubr.msk.f32.mxu1 %vm9317_vm2, %v11707_v63 }
 0x461   :  { %8632 = vmatmul.mubr.msk.f32.gmra.mxu1 %vm973_vm3, %v2336_v14 }
 0x462   :  { %8634 = vmatprep.mubr.msk.f32.mxu1 %vm9317_vm2, %v11707_v63 }
 0x465   :  { %8635 = vmatmul.mubr.msk.f32.gmra.mxu1 %vm973_vm3, %v2338_v13 }
 0x466   :  { %8678 = vmatprep.mubr.msk.f32.mxu1 %vm9317_vm2, %v11707_v63 }
 0x4b9   :  { %v10002_v29 = vpop.f32.mrf.mxu0 }
 0x4bb   :  { %v8549_v27 = vpop.f32.mrf.mxu0 }
 0x4bd   :  { %v10004_v36 = vpop.f32.mrf.mxu0 }
 0x4bf   :  { %v8552_v37 = vpop.f32.mrf.mxu0 }
 0x4c1   :  { %v10006_v45 = vpop.f32.mrf.mxu0 }
 0x4c3   :  { %v8555_v46 = vpop.f32.mrf.mxu0 }
 0x4c6   :  { %v10008_v48 = vpop.f32.mrf.mxu0 }
 0x4c8   :  { %v8558_v49 = vpop.f32.mrf.mxu0 }
 0x4ca   :  { %v10010_v22 = vpop.f32.mrf.mxu0 }
 0x4cc   :  { %v8561_v55 = vpop.f32.mrf.mxu0 }
 0x4ce   :  { %v2305_v47 = vpop.f32.mrf.mxu0 }
 0x4cf   :  { %v2459_v54 = vsel %vm1414_vm5, %v2305_v47, -inf }
 0x4d0   :  { %2460 = vmax.xlane.f32.xlu0 %v2459_v54  ;;  %v8599_v44 = vpop.f32.mrf.mxu0 }
 0x4d2   :  { %v10013_v35 = vpop.f32.mrf.mxu0 }
 0x4d3   :  { %v2462_v61 = vsel %vm1414_vm5, %v10013_v35, -inf }
 0x4d4   :  { %v10017_v62 = vpop.f32.mrf.mxu1  ;;  %2463 = vmax.xlane.f32.xlu1 %v2462_v61  ;;  %v8602_v28 = vpop.f32.mrf.mxu0 }
 0x4d6   :  { %v8574_v0 = vpop.f32.mrf.mxu1  ;;  %v10019_v31 = vpop.f32.mrf.mxu0 }
 0x4d7   :  { %v2465_v32 = vsel %vm1414_vm5, %v10019_v31, -inf }
 0x4d8   :  { %v10023_v39 = vpop.f32.mrf.mxu1  ;;  %2466 = vmax.xlane.f32.xlu0 %v2465_v32  ;;  %v8605_v43 = vpop.f32.mrf.mxu0  ;;  %v1476_v32 = vsel %vm1414_vm5, %v9864_v53, 0.0 }
 0x4d9   :  { %v1482_v43 = vsel %vm1414_vm5, %v9883_v33, 0.0 }
 0x4da   :  { %v8577_v2 = vpop.f32.mrf.mxu1  ;;  %v2320_v3 = vpop.f32.mrf.mxu0 }
 0x4db   :  { %v2468_v4 = vsel %vm1414_vm5, %v2320_v3, -inf }
 0x4dc   :  { %v10026_v5 = vpop.f32.mrf.mxu1  ;;  %2469 = vmax.xlane.f32.xlu0 %v2468_v4  ;;  %v8608_v30 = vpop.f32.mrf.mxu0 }
 0x4dd   :  { %v1485_v30 = vsel %vm1414_vm5, %v9893_v57, 0.0 }
 0x4de   :  { %v8580_v60 = vpop.f32.mrf.mxu1 }
 0x4ff   :  { %v10028_v7 = vpop.f32.mrf.mxu0 }
 0x500   :  { %v2471_v10 = vsel %vm1427_vm6, %v10028_v7, -inf }
 0x501   :  { %2472 = vmax.xlane.f32.xlu0 %v2471_v10  ;;  %v8611_v51 = vpop.f32.mrf.mxu0 }
 0x50d   :  { %v10032_v11 = vpop.f32.mrf.mxu1 }
 0x50f   :  { %v8583_v58 = vpop.f32.mrf.mxu1 }
 0x510   :  { %v1491_v58 = vsel %vm1414_vm5, %v9919_v1, 0.0 }
 0x511   :  { %v10034_v13 = vpop.f32.mrf.mxu1 }
 0x513   :  { %v8586_v14 = vpop.f32.mrf.mxu1 }
 0x515   :  { %v10036_v12 = vpop.f32.mrf.mxu1 }
 0x516   :  { %v2474_v24 = vsel %vm1414_vm5, %v10036_v12, -inf }
 0x517   :  { %2475 = vmax.xlane.f32.xlu1 %v2474_v24  ;;  %v8624_v25 = vpop.f32.mrf.mxu1 }
 0x519   :  { %v10040_v26 = vpop.f32.mrf.mxu1 }
 0x51a   :  { %v2477_v15 = vsel %vm1414_vm5, %v10040_v26, -inf }
 0x51b   :  { %2478 = vmax.xlane.f32.xlu1 %v2477_v15  ;;  %v8627_v27 = vpop.f32.mrf.mxu1 }
 0x51c   :  { %v9302_v27 = vld [vmem:[%s11703_s1 + $0x10] sm:$0xff] }
 0x51d   :  { %v10044_v37 = vpop.f32.mrf.mxu1 }
 0x51e   :  { %v2480_v46 = vsel %vm1414_vm5, %v10044_v37, -inf }
 0x51f   :  { %2481 = vmax.xlane.f32.xlu0 %v2480_v46  ;;  %v8630_v49 = vpop.f32.mrf.mxu1  ;;  %v1497_v46 = vsel %vm1414_vm5, %v9944_v42, 0.0 }
 0x521   :  { %v10048_v55 = vpop.f32.mrf.mxu1 }
 0x522   :  { %v2483_v54 = vsel %vm1414_vm5, %v10048_v55, -inf }
 0x523   :  { %2484 = vmax.xlane.f32.xlu0 %v2483_v54  ;;  %v8633_v44 = vpop.f32.mrf.mxu1 }
 0x525   :  { %v10052_v61 = vpop.f32.mrf.mxu1 }
 0x526   :  { %v2486_v0 = vsel %vm1427_vm6, %v10052_v61, -inf }
 0x527   :  { %v8636_v28 = vpop.f32.mrf.mxu1 }
 0x52c   :  { %2676 = vrot.lane.b32.xlu1 %v9665_v6, %s9323_s21 }
 0x539   :  { %2674 = vrot.lane.b32.xlu0 %v9659_v40, %s9323_s21 }
 0x53d   :  { %2672 = vrot.lane.b32.xlu0 %v9674_v50, %s9323_s21 }
 0x541   :  { %2670 = vrot.lane.b32.xlu0 %v9669_v41, %s9323_s21 }
 0x550   :  { %2487 = vmax.xlane.f32.xlu1 %v2486_v0 }
 0x554   :  { %1477 = vadd.xlane.f32.xlu1 %v1476_v32 }
 0x558   :  { %1483 = vadd.xlane.f32.xlu1 %v1482_v43 }
 0x559   :  { %v2461_v2 = vpop.xlane.xlu0 %2460 }
 0x55a   :  { %v2489_v4 = vsub.f32 %v2305_v47, %v2461_v2  ;;  %v1494_v47 = vsel %vm1414_vm5, %v9932_v38, 0.0 }
 0x55c   :  { %1486 = vadd.xlane.f32.xlu1 %v1485_v30  ;;  %v2499_v60 = vmul.f32 1.442695, %v2489_v4 }
 0x55d   :  { %v2464_v10 = vpop.xlane.xlu1 %2463 }
 0x55e   :  { %9144 = vpow2.f32 %v2499_v60  ;;  %v2490_v51 = vsub.f32 %v10013_v35, %v2464_v10 }
 0x560   :  { %1492 = vadd.xlane.f32.xlu1 %v1491_v58  ;;  %v2501_v53 = vmul.f32 1.442695, %v2490_v51 }
 0x561   :  { %v2467_v14 = vpop.xlane.xlu0 %2466 }
 0x562   :  { %9146 = vpow2.f32 %v2501_v53  ;;  %v2491_v33 = vsub.f32 %v10019_v31, %v2467_v14  ;;  %v1479_v31 = vsel %vm1414_vm5, %v9874_v52, 0.0 }
 0x564   :  { %1495 = vadd.xlane.f32.xlu1 %v1494_v47  ;;  %v2503_v57 = vmul.f32 1.442695, %v2491_v33 }
 0x565   :  { %v2470_v24 = vpop.xlane.xlu0 %2469 }
 0x566   :  { %9148 = vpow2.f32 %v2503_v57  ;;  %v2492_v25 = vsub.f32 %v2320_v3, %v2470_v24 }
 0x568   :  { %v2505_v15 = vmul.f32 1.442695, %v2492_v25 }
 0x56a   :  { %9150 = vpow2.f32 %v2505_v15 }
 0x56b   :  { %v9145_v35 = vpop.eup %9144 }
 0x56c   :  { %8648 = vmatmul.mubr.msk.f32.vlgmr.msra.gmra.mxu0 %vm1414_vm5, %v9145_v35  ;;  %v2519_v1 = vsel %vm1414_vm5, %v9145_v35, 0.0 }
 0x56d   :  { %8663 = vmatpush3.msk.msra.mxu0 %vm1535_vm4, %v9985_v9  ;;  %2520 = vadd.xlane.f32.xlu0 %v2519_v1  ;;  %v1488_v9 = vsel %vm1427_vm6, %v9903_v59, 0.0  ;;  %v1500_v59 = vsel %vm1414_vm5, %v9964_v20, 0.0 }
 0x56e   :  { %8650 = vmatprep.mubr.msk.f32.mxu0 %vm9317_vm2, %v11707_v63  ;;  %8664 = vmatprep.subr.mxu0 %v11707_v63 }
 0x56f   :  { %v9147_v38 = vpop.eup %9146 }
 0x570   :  { %8651 = vmatmul.mubr.msk.f32.gmra.mxu0 %vm1414_vm5, %v9147_v38  ;;  %v2522_v28 = vsel %vm1414_vm5, %v9147_v38, 0.0 }
 0x571   :  { %1480 = vadd.xlane.f32.xlu0 %v1479_v31  ;;  %8653 = vmatprep.mubr.msk.f32.mxu0 %vm9317_vm2, %v11707_v63  ;;  %v1503_v31 = vsel %vm1427_vm6, %v9971_v21, 0.0 }
 0x573   :  { %v9149_v3 = vpop.eup %9148 }
 0x574   :  { %8654 = vmatmul.mubr.msk.f32.gmra.mxu0 %vm1414_vm5, %v9149_v3  ;;  %v2525_v32 = vsel %vm1414_vm5, %v9149_v3, 0.0 }
 0x575   :  { %3649 = vrot.lane.b32.xlu1 %v9302_v27, %s9324_s24  ;;  %1489 = vadd.xlane.f32.xlu0 %v1488_v9  ;;  %v9303_v27 = vld [vmem:[%s11703_s1] sm:$0xff] }
 0x576   :  { %8656 = vmatprep.mubr.msk.f32.mxu0 %vm9317_vm2, %v11707_v63 }
 0x577   :  { %v9151_v52 = vpop.eup %9150 }
 0x578   :  { %8657 = vmatmul.mubr.msk.f32.gmra.mxu0 %vm1414_vm5, %v9151_v52  ;;  %v2528_v20 = vsel %vm1414_vm5, %v9151_v52, 0.0 }
 0x579   :  { %1498 = vadd.xlane.f32.xlu0 %v1497_v46  ;;  %8659 = vmatprep.mubr.msk.f32.mxu0 %vm9317_vm2, %v11707_v63 }
 0x57d   :  { %1501 = vadd.xlane.f32.xlu0 %v1500_v59 }
 0x58a   :  { %v2473_v49 = vpop.xlane.xlu0 %2472 }
 0x58b   :  { %v2493_v54 = vsub.f32 %v10028_v7, %v2473_v49 }
 0x58d   :  { %v2507_v44 = vmul.f32 1.442695, %v2493_v54 }
 0x58f   :  { %9152 = vpow2.f32 %v2507_v44 }
 0x599   :  { %2523 = vadd.xlane.f32.xlu1 %v2522_v28 }
 0x59c   :  { %v9153_v0 = vpop.eup %9152 }
 0x59d   :  { %2526 = vadd.xlane.f32.xlu1 %v2525_v32  ;;  %8660 = vmatmul.mubr.msk.f32.gmra.mxu0 %vm1414_vm5, %v9153_v0  ;;  %v2531_v4 = vsel %vm1427_vm6, %v9153_v0, 0.0 }
 0x59e   :  { %8672 = vmatprep.mubr.msk.f32.mxu0 %vm9317_vm2, %v11707_v63 }
 0x5a0   :  { %v2476_v42 = vpop.xlane.xlu1 %2475 }
 0x5a1   :  { %v2494_v43 = vsub.f32 %v10036_v12, %v2476_v42  ;;  %2529 = vadd.xlane.f32.xlu1 %v2528_v20 }
 0x5a3   :  { %v2509_v7 = vmul.f32 1.442695, %v2494_v43 }
 0x5a4   :  { %v2479_v2 = vpop.xlane.xlu1 %2478 }
 0x5a5   :  { %9154 = vpow2.f32 %v2509_v7  ;;  %v2495_v30 = vsub.f32 %v10040_v26, %v2479_v2  ;;  %2532 = vadd.xlane.f32.xlu1 %v2531_v4 }
 0x5a7   :  { %v2511_v60 = vmul.f32 1.442695, %v2495_v30 }
 0x5a8   :  { %v2677_v10 = vpop.permute.xlu1 %2676  ;;  %v2482_v51 = vpop.xlane.xlu0 %2481 }
 0x5a9   :  { %9156 = vpow2.f32 %v2511_v60  ;;  %v2496_v58 = vsub.f32 %v10044_v37, %v2482_v51  ;;  %8665 = vmatpush3.msra.mxu0 %v2677_v10  ;;  %9087 = vmatpush3.msra.mxu1 %v2677_v10 }
 0x5aa   :  { %8666 = vmatprep.subr.mxu0 %v11707_v63  ;;  %9083 = vmatprep.subr.mxu1 %v11707_v63 }
 0x5ab   :  { %v2513_v12 = vmul.f32 1.442695, %v2496_v58 }
 0x5ac   :  { %v2485_v53 = vpop.xlane.xlu0 %2484 }
 0x5ad   :  { %9158 = vpow2.f32 %v2513_v12  ;;  %v2497_v14 = vsub.f32 %v10048_v55, %v2485_v53 }
 0x5af   :  { %v2515_v33 = vmul.f32 1.442695, %v2497_v14 }
 0x5b0   :  { %v2675_v26 = vpop.permute.xlu0 %2674 }
 0x5b1   :  { %9160 = vpow2.f32 %v2515_v33  ;;  %8667 = vmatpush3.msra.mxu0 %v2675_v26  ;;  %9088 = vmatpush3.msra.mxu1 %v2675_v26 }
 0x5b2   :  { %v9155_v47 = vpop.eup %9154  ;;  %8668 = vmatprep.subr.mxu0 %v11707_v63  ;;  %9084 = vmatprep.subr.mxu1 %v11707_v63 }
 0x5b3   :  { %v2534_v37 = vsel %vm1414_vm5, %v9155_v47, 0.0 }
 0x5b4   :  { %2535 = vadd.xlane.f32.xlu1 %v2534_v37  ;;  %v2673_v57 = vpop.permute.xlu0 %2672 }
 0x5b5   :  { %8669 = vmatpush3.msra.mxu0 %v2673_v57  ;;  %9089 = vmatpush3.msra.mxu1 %v2673_v57 }
 0x5b6   :  { %v9157_v24 = vpop.eup %9156  ;;  %8670 = vmatprep.subr.mxu0 %v11707_v63  ;;  %9085 = vmatprep.subr.mxu1 %v11707_v63 }
 0x5b7   :  { %v2537_v55 = vsel %vm1414_vm5, %v9157_v24, 0.0 }
 0x5b8   :  { %2538 = vadd.xlane.f32.xlu0 %v2537_v55  ;;  %v2671_v25 = vpop.permute.xlu0 %2670 }
 0x5b9   :  { %8671 = vmatpush3.msra.mxu0 %v2671_v25  ;;  %9090 = vmatpush3.msra.mxu1 %v2671_v25 }
 0x5ba   :  { %v9159_v15 = vpop.eup %9158  ;;  %8673 = vmatmul.mubr.msk.f32.vlgmr.msra.gmra.mxu0 %vm1414_vm5, %v9155_v47  ;;  %8687 = vmatprep.subr.mxu0 %v11707_v63 }
 0x5bb   :  { %8679 = vmatmul.mubr.msk.f32.vlgmr.msra.gmra.mxu1 %vm1414_vm5, %v9159_v15  ;;  %v2540_v35 = vsel %vm1414_vm5, %v9159_v15, 0.0  ;;  %8675 = vmatprep.mubr.msk.f32.mxu0 %vm9317_vm2, %v11707_v63 }
 0x5bc   :  { %2541 = vadd.xlane.f32.xlu0 %v2540_v35  ;;  %8681 = vmatprep.mubr.msk.f32.mxu1 %vm9317_vm2, %v11707_v63 }
 0x5bd   :  { %8716 = vmatprep.subr.mxu1 %v11707_v63 }
 0x5be   :  { %v9161_v1 = vpop.eup %9160  ;;  %8676 = vmatmul.mubr.msk.f32.gmra.mxu0 %vm1414_vm5, %v9157_v24 }
 0x5bf   :  { %8682 = vmatmul.mubr.msk.f32.gmra.mxu1 %vm1414_vm5, %v9161_v1  ;;  %v2543_v38 = vsel %vm1414_vm5, %v9161_v1, 0.0  ;;  %8689 = vmatprep.mubr.msk.f32.mxu0 %vm9317_vm2, %v11707_v63 }
 0x5c0   :  { %2544 = vadd.xlane.f32.xlu0 %v2543_v38  ;;  %8684 = vmatprep.mubr.msk.f32.mxu1 %vm9317_vm2, %v11707_v63 }
 0x5c4   :  { %1504 = vadd.xlane.f32.xlu0 %v1503_v31 }
 0x5c5   :  { %4337 = vrot.lane.b32.xlu1 %v9574_v8, %s9325_s25 }
 0x5c9   :  { %4335 = vrot.lane.b32.xlu1 %v9589_v19, %s9325_s25 }
 0x5cd   :  { %4333 = vrot.lane.b32.xlu1 %v9597_v34, %s9325_s25 }
 0x5d9   :  { %v2488_v3 = vpop.xlane.xlu1 %2487 }
 0x5da   :  { %v2498_v9 = vsub.f32 %v10052_v61, %v2488_v3  ;;  %4188 = vrot.lane.b32.xlu0 %v9303_v27, %s9324_s24 }
 0x5dc   :  { %v2517_v21 = vmul.f32 1.442695, %v2498_v9 }
 0x5dd   :  { %v1478_v52 = vpop.xlane.xlu1 %1477 }
 0x5de   :  { %9162 = vpow2.f32 %v2517_v21  ;;  %4329 = vrot.lane.b32.xlu0 %v9587_v17, %s9325_s25 }
 0x5df   :  { %9164 = vrcp.f32 %v1478_v52 }
 0x5e1   :  { %v1484_v46 = vpop.xlane.xlu1 %1483 }
 0x5e2   :  { %4319 = vrot.lane.b32.xlu0 %v9587_v17, %s9326_s28  ;;  %9166 = vrcp.f32 %v1484_v46 }
 0x5e5   :  { %v1487_v59 = vpop.xlane.xlu1 %1486 }
 0x5e6   :  { %4321 = vrot.lane.b32.xlu0 %v9617_v56, %s9326_s28  ;;  %9168 = vrcp.f32 %v1487_v59 }
 0x5e9   :  { %v1493_v61 = vpop.xlane.xlu1 %1492 }
 0x5ea   :  { %4323 = vrot.lane.b32.xlu0 %v9597_v34, %s9326_s28  ;;  %9170 = vrcp.f32 %v1493_v61 }
 0x5eb   :  { %v9163_v49 = vpop.eup %9162 }
 0x5ec   :  { %8685 = vmatmul.mubr.msk.f32.gmra.mxu1 %vm1414_vm5, %v9163_v49  ;;  %v2546_v44 = vsel %vm1427_vm6, %v9163_v49, 0.0  ;;  %v9165_v0 = vpop.eup %9164 }
 0x5ed   :  { %v1496_v54 = vpop.xlane.xlu1 %1495  ;;  %8718 = vmatprep.mubr.msk.f32.mxu1 %vm9317_vm2, %v11707_v63  ;;  %v1759_v42 = vmul.f32 %v9165_v0, %v10002_v29 }
 0x5ee   :  { %4325 = vrot.lane.b32.xlu0 %v9589_v19, %s9326_s28  ;;  %9172 = vrcp.f32 %v1496_v54 }
 0x5ef   :  { %v9167_v32 = vpop.eup %9166  ;;  %v1779_v43 = vcombine.high %v1759_v42, %v1759_v42  ;;  %v1786_v7 = vrot.slane %v1759_v42, %v9511_v16 }
 0x5f0   :  { %v1761_v20 = vmul.f32 %v9167_v32, %v10006_v45 }
 0x5f1   :  { %2547 = vadd.xlane.f32.xlu1 %v2546_v44  ;;  %v3650_v28 = vpop.permute.xlu1 %3649  ;;  %v1793_v30 = vrot.slane %v1779_v43, %v9511_v16  ;;  %v1794_v60 = vcombine.high %v1786_v7, %v1786_v7  ;;  %v1802_v26 = vrot.slane %v1786_v7, %v9511_v16 }
 0x5f2   :  { %4449 = vrot.lane.b32.xlu0 %v9669_v41, %s9326_s28  ;;  %8688 = vmatpush3.msra.mxu0 %v3650_v28  ;;  %v1877_v29 = vcombine.high %v1761_v20, %v1761_v20  ;;  %v1884_v58 = vrot.slane %v1761_v20, %v9511_v16 }
 0x5f3   :  { %8745 = vmatprep.subr.mxu0 %v11707_v63  ;;  %v9169_v2 = vpop.eup %9168  ;;  %v1795_v51 = vcombine.high %v1793_v30, %v1793_v30  ;;  %v1816_v53 = vrot.slane %v1794_v60, %v9511_v16  ;;  %v1809_v57 = vrot.slane %v1793_v30, %v9511_v16 }
 0x5f4   :  { %v1762_v45 = vmul.f32 %v9169_v2, %v10008_v48  ;;  %v1891_v10 = vrot.slane %v1877_v29, %v9511_v16  ;;  %v1892_v48 = vcombine.high %v1884_v58, %v1884_v58  ;;  %v1900_v52 = vrot.slane %v1884_v58, %v9511_v16 }
 0x5f5   :  { %v1823_v47 = vrot.slane %v1795_v51, %v9511_v16  ;;  %v3780_v24 = vcombine.low %v1802_v26, %v1816_v53  ;;  %v8076_v25 = vcombine.high %v1802_v26, %v1816_v53 }
 0x5f6   :  { %4451 = vrot.lane.b32.xlu0 %v9674_v50, %s9326_s28  ;;  %v2521_v4 = vpop.xlane.xlu0 %2520  ;;  %v1926_v14 = vcombine.high %v1762_v45, %v1762_v45  ;;  %v1893_v33 = vcombine.high %v1891_v10, %v1891_v10  ;;  %v1933_v15 = vrot.slane %v1762_v45, %v9511_v16  ;;  %v1914_v31 = vrot.slane %v1892_v48, %v9511_v16 }
 0x5f7   :  { %v9171_v37 = vpop.eup %9170  ;;  %v3782_v1 = vcombine.low %v1809_v57, %v1823_v47  ;;  %v8077_v38 = vcombine.high %v1809_v57, %v1823_v47  ;;  %v1907_v27 = vrot.slane %v1891_v10, %v9511_v16  ;;  %v3790_v21 = vrot.slane %v3780_v24, %v9511_v16 }
 0x5f8   :  { %v1940_v55 = vrot.slane %v1926_v14, %v9511_v16  ;;  %v1921_v35 = vrot.slane %v1893_v33, %v9511_v16  ;;  %v1764_v3 = vmul.f32 %v9171_v37, %v10017_v62  ;;  %v3797_v59 = vrot.slane %v8076_v25, %v9511_v16 }
 0x5f9   :  { %v1941_v54 = vcombine.high %v1933_v15, %v1933_v15  ;;  %v3804_v44 = vrot.slane %v3782_v1, %v9511_v16  ;;  %v3811_v62 = vrot.slane %v8077_v38, %v9511_v16  ;;  %v3878_v28 = vcombine.low %v1900_v52, %v1914_v31 }
 0x5fa   :  { %4455 = vrot.lane.b32.xlu0 %v9665_v6, %s9326_s28  ;;  %v1481_v12 = vpop.xlane.xlu0 %1480  ;;  %v1942_v46 = vcombine.high %v1940_v55, %v1940_v55  ;;  %v3880_v61 = vcombine.low %v1907_v27, %v1921_v35  ;;  %v8081_v49 = vcombine.high %v1907_v27, %v1921_v35  ;;  %v1989_v32 = vcombine.high %v1764_v3, %v1764_v3 }
 0x5fb   :  { %9174 = vrcp.f32 %v1481_v12  ;;  %v9173_v0 = vpop.eup %9172  ;;  %v8080_v42 = vcombine.high %v1900_v52, %v1914_v31  ;;  %v1996_v20 = vrot.slane %v1764_v3, %v9511_v16  ;;  %v3812_v7 = vcombine.low %v3790_v21, %v3797_v59 }
 0x5fc   :  { %v1970_v43 = vrot.slane %v1942_v46, %v9511_v16  ;;  %v3902_v2 = vrot.slane %v3880_v61, %v9511_v16  ;;  %v3909_v29 = vrot.slane %v8081_v49, %v9511_v16  ;;  %v1963_v30 = vrot.slane %v1941_v54, %v9511_v16 }
 0x5fd   :  { %v1765_v60 = vmul.f32 %v9173_v0, %v10023_v39  ;;  %v3813_v10 = vcombine.low %v3804_v44, %v3811_v62  ;;  %v1956_v51 = vrot.slane %v1940_v55, %v9511_v16  ;;  %v3895_v53 = vrot.slane %v8080_v42, %v9511_v16 }
 0x5fe   :  { %4675 = vrot.lane.b32.xlu0 %v9589_v19, %s9327_s29  ;;  %v1490_v9 = vpop.xlane.xlu0 %1489  ;;  %v1949_v14 = vrot.slane %v1933_v15, %v9511_v16  ;;  %v2003_v33 = vrot.slane %v1989_v32, %v9511_v16  ;;  %v10234_v47 = vrot.slane %v3812_v7, %v9511_v16  ;;  %v3911_v48 = vcombine.low %v3902_v2, %v3909_v29 }
 0x5ff   :  { %9176 = vrcp.f32 %v1490_v9  ;;  %v3929_v26 = vcombine.low %v1956_v51, %v1970_v43  ;;  %v8083_v39 = vcombine.high %v1956_v51, %v1970_v43  ;;  %v10240_v25 = vrot.slane %v3813_v10, %v9511_v16 }
 0x600   :  { %9178 = vrcp.f32 %v2521_v4  ;;  %v3888_v4 = vrot.slane %v3878_v28, %v9511_v16  ;;  %v3927_v37 = vcombine.low %v1949_v14, %v1963_v30  ;;  %v8082_v57 = vcombine.high %v1949_v14, %v1963_v30 }
 0x601   :  { %v2004_v15 = vcombine.high %v1996_v20, %v1996_v20  ;;  %v2038_v35 = vcombine.high %v1765_v60, %v1765_v60  ;;  %v2005_v38 = vcombine.high %v2003_v33, %v2003_v33  ;;  %v10243_v31 = vrot.slane %v1996_v20, %v9511_v16 }
 0x602   :  { %4331 = vrot.lane.b32.xlu1 %v9617_v56, %s9325_s25  ;;  %4673 = vrot.lane.b32.xlu0 %v9597_v34, %s9327_s29  ;;  %v1499_v12 = vpop.xlane.xlu0 %1498  ;;  %v3910_v1 = vcombine.low %v3888_v4, %v3895_v53  ;;  %v3951_v3 = vrot.slane %v3929_v26, %v9511_v16  ;;  %v10248_v9 = vrot.slane %v2003_v33, %v9511_v16 }
 0x603   :  { %v10251_v27 = vrot.slane %v1765_v60, %v9511_v16  ;;  %v10254_v21 = vrot.slane %v3911_v48, %v9511_v16  ;;  %v10257_v52 = vrot.slane %v3927_v37, %v9511_v16  ;;  %v10260_v46 = vrot.slane %v8082_v57, %v9511_v16 }
 0x604   :  { %v10265_v61 = vrot.slane %v2004_v15, %v9511_v16  ;;  %v10270_v62 = vrot.slane %v3910_v1, %v9511_v16  ;;  %v10273_v28 = vrot.slane %v2005_v38, %v9511_v16  ;;  %v2034_v0 = vcombine.high %v10243_v31, %v10243_v31 }
 0x605   :  { %v2035_v7 = vcombine.high %v10248_v9, %v10248_v9  ;;  %v10281_v2 = vrot.slane %v2038_v35, %v9511_v16 }
 0x606   :  { %4467 = vrot.lane.b32.xlu1 %v9652_v23, %s9325_s25  ;;  %4671 = vrot.lane.b32.xlu0 %v9617_v56, %s9327_s29  ;;  %v1502_v54 = vpop.xlane.xlu0 %1501  ;;  %v10299_v33 = vcombine.low %v10265_v61, %v2034_v0 }
 0x607   :  { %v10307_v57 = vcombine.low %v10273_v28, %v2035_v7 }
 0x608   :  { %v9175_v58 = vpop.eup %9174 }
 0x609   :  { %v1760_v24 = vmul.f32 %v9175_v58, %v10004_v36  ;;  %v3958_v36 = vrot.slane %v8083_v39, %v9511_v16 }
 0x60a   :  { %4465 = vrot.lane.b32.xlu1 %v9665_v6, %s9325_s25  ;;  %4798 = vrot.lane.b32.xlu0 %v9652_v23, %s9327_s29 }
 0x60b   :  { %v1828_v59 = vcombine.high %v1760_v24, %v1760_v24  ;;  %v1835_v42 = vrot.slane %v1760_v24, %v9511_v16  ;;  %v3960_v43 = vcombine.low %v3951_v3, %v3958_v36 }
 0x60c   :  { %v9177_v49 = vpop.eup %9176 }
 0x60d   :  { %v9179_v32 = vpop.eup %9178  ;;  %v10290_v10 = vmul.f32 %v9177_v49, %v10010_v22  ;;  %v10293_v51 = vrot.slane %v1828_v59, %v9511_v16  ;;  %v1843_v48 = vcombine.high %v1835_v42, %v1835_v42  ;;  %v10304_v37 = vrot.slane %v3960_v43, %v9511_v16 }
 0x60e   :  { %4463 = vrot.lane.b32.xlu1 %v9659_v40, %s9325_s25  ;;  %v10320_v59 = vrot.slane %v1835_v42, %v9511_v16 }
 0x60f   :  { %v1844_v36 = vcombine.high %v10293_v51, %v10293_v51 }
 0x612   :  { %4461 = vrot.lane.b32.xlu1 %v9674_v50, %s9325_s25 }
 0x616   :  { %4459 = vrot.lane.b32.xlu1 %v9669_v41, %s9325_s25 }
 0x61a   :  { %4327 = vrot.lane.b32.xlu1 %v9574_v8, %s9326_s28 }
 0x61e   :  { %4453 = vrot.lane.b32.xlu1 %v9659_v40, %s9326_s28 }
 0x622   :  { %v2524_v45 = vpop.xlane.xlu1 %2523  ;;  %4457 = vrot.lane.b32.xlu1 %v9652_v23, %s9326_s28 }
 0x623   :  { %9180 = vrcp.f32 %v2524_v45  ;;  %v2053_v45 = vcombine.high %v10251_v27, %v10251_v27 }
 0x624   :  { %9182 = vrcp.f32 %v1499_v12 }
 0x625   :  { %v10313_v1 = vrot.slane %v2053_v45, %v9511_v16  ;;  %v10328_v45 = vrot.slane %v10293_v51, %v9511_v16 }
 0x626   :  { %v2527_v55 = vpop.xlane.xlu1 %2526  ;;  %4677 = vrot.lane.b32.xlu1 %v9574_v8, %s9327_s29 }
 0x627   :  { %9184 = vrcp.f32 %v2527_v55 }
 0x628   :  { %9186 = vrcp.f32 %v1502_v54 }
 0x62a   :  { %4669 = vrot.lane.b32.xlu1 %v9587_v17, %s9327_s29  ;;  %v2530_v12 = vpop.xlane.xlu1 %2529 }
 0x62b   :  { %9188 = vrcp.f32 %v2530_v12 }
 0x62c   :  { %v2646_v20 = vpop.f32.mrf.mxu0 }
 0x62d   :  { %v2801_v29 = vmul.f32 %v9179_v32, %v2646_v20 }
 0x62e   :  { %v8649_v4 = vpop.f32.mrf.mxu0 }
 0x62f   :  { %v2821_v53 = vcombine.high %v2801_v29, %v2801_v29  ;;  %v2828_v14 = vrot.slane %v2801_v29, %v9511_v16  ;;  %v10331_v4 = vrot.slane %v1843_v48, %v9511_v16 }
 0x630   :  { %v9181_v22 = vpop.eup %9180  ;;  %v2651_v39 = vpop.f32.mrf.mxu0 }
 0x631   :  { %v2835_v55 = vrot.slane %v2821_v53, %v9511_v16  ;;  %v2836_v15 = vcombine.high %v2828_v14, %v2828_v14  ;;  %v2802_v35 = vmul.f32 %v9181_v22, %v2651_v39  ;;  %v9183_v49 = vpop.eup %9182  ;;  %v2844_v0 = vrot.slane %v2828_v14, %v9511_v16 }
 0x632   :  { %v8652_v3 = vpop.f32.mrf.mxu0  ;;  %v10336_v39 = vmul.f32 %v9183_v49, %v10026_v5  ;;  %v10343_v5 = vpop.xlane.xlu1 %2532 }
 0x633   :  { %v2837_v54 = vcombine.high %v2835_v55, %v2835_v55  ;;  %v2858_v32 = vrot.slane %v2836_v15, %v9511_v16  ;;  %v2870_v20 = vcombine.high %v2802_v35, %v2802_v35  ;;  %v2851_v43 = vrot.slane %v2835_v55, %v9511_v16 }
 0x634   :  { %v2877_v7 = vrot.slane %v2802_v35, %v9511_v16  ;;  %v2656_v29 = vpop.f32.mrf.mxu0  ;;  %v9185_v42 = vpop.eup %9184 }
 0x635   :  { %v2865_v12 = vrot.slane %v2837_v54, %v9511_v16  ;;  %v3241_v53 = vcombine.low %v2844_v0, %v2858_v32  ;;  %v8059_v14 = vcombine.high %v2844_v0, %v2858_v32  ;;  %v2884_v22 = vrot.slane %v2870_v20, %v9511_v16 }
 0x636   :  { %v2885_v55 = vcombine.high %v2877_v7, %v2877_v7  ;;  %v2893_v15 = vrot.slane %v2877_v7, %v9511_v16  ;;  %v2803_v35 = vmul.f32 %v9185_v42, %v2656_v29  ;;  %v8655_v3 = vpop.f32.mrf.mxu0 }
 0x637   :  { %v3243_v51 = vcombine.low %v2851_v43, %v2865_v12  ;;  %v8060_v30 = vcombine.high %v2851_v43, %v2865_v12  ;;  %v3251_v48 = vrot.slane %v3241_v53, %v9511_v16  ;;  %v3258_v60 = vrot.slane %v8059_v14, %v9511_v16  ;;  %v10350_v3 = vpop.eup %9186 }
 0x638   :  { %v2886_v26 = vcombine.high %v2884_v22, %v2884_v22  ;;  %v2900_v54 = vrot.slane %v2884_v22, %v9511_v16  ;;  %v2907_v0 = vrot.slane %v2885_v55, %v9511_v16  ;;  %v2919_v32 = vcombine.high %v2803_v35, %v2803_v35  ;;  %v2661_v20 = vpop.f32.mrf.mxu0 }
 0x639   :  { %v3265_v49 = vrot.slane %v3243_v51, %v9511_v16  ;;  %v3272_v7 = vrot.slane %v8060_v30, %v9511_v16  ;;  %v3273_v29 = vcombine.low %v3251_v48, %v3258_v60  ;;  %v2926_v43 = vrot.slane %v2803_v35, %v9511_v16 }
 0x63a   :  { %v2914_v42 = vrot.slane %v2886_v26, %v9511_v16  ;;  %v3290_v12 = vcombine.low %v2893_v15, %v2907_v0  ;;  %v8061_v53 = vcombine.high %v2893_v15, %v2907_v0  ;;  %v2933_v14 = vrot.slane %v2919_v32, %v9511_v16  ;;  %v8658_v22 = vpop.f32.mrf.mxu0 }
 0x63b   :  { %v3274_v55 = vcombine.low %v3265_v49, %v3272_v7  ;;  %v3281_v44 = vrot.slane %v3273_v29, %v9511_v16  ;;  %v2934_v58 = vcombine.high %v2926_v43, %v2926_v43  ;;  %v1872_v51 = vrot.slane %v1844_v36, %v9511_v16  ;;  %v9189_v29 = vpop.eup %9188 }
 0x63c   :  { %v3292_v24 = vcombine.low %v2900_v54, %v2914_v42  ;;  %v8062_v30 = vcombine.high %v2900_v54, %v2914_v42  ;;  %v3300_v60 = vrot.slane %v3290_v12, %v9511_v16  ;;  %v3307_v35 = vrot.slane %v8061_v53, %v9511_v16 }
 0x63d   :  { %v3288_v26 = vrot.slane %v3274_v55, %v9511_v16  ;;  %v2935_v15 = vcombine.high %v2933_v14, %v2933_v14  ;;  %v2942_v48 = vrot.slane %v2926_v43, %v9511_v16  ;;  %v2956_v0 = vrot.slane %v2934_v58, %v9511_v16  ;;  %v10359_v32 = vpop.xlane.xlu1 %2535 }
 0x63e   :  { %v3314_v49 = vrot.slane %v3292_v24, %v9511_v16  ;;  %v3321_v7 = vrot.slane %v8062_v30, %v9511_v16  ;;  %v3322_v36 = vcombine.low %v3300_v60, %v3307_v35  ;;  %v2949_v54 = vrot.slane %v2933_v14, %v9511_v16 }
 0x63f   :  { %v3289_v42 = vcombine.low %v3281_v44, %v3288_v26  ;;  %v2963_v12 = vrot.slane %v2935_v15, %v9511_v16  ;;  %v3339_v53 = vcombine.low %v2942_v48, %v2956_v0  ;;  %v8063_v22 = vcombine.high %v2942_v48, %v2956_v0 }
 0x640   :  { %v2804_v55 = vmul.f32 %v9189_v29, %v2661_v20  ;;  %v3323_v38 = vcombine.low %v3314_v49, %v3321_v7  ;;  %v3330_v43 = vrot.slane %v3322_v36, %v9511_v16  ;;  %v3831_v58 = vcombine.low %v10328_v45, %v1872_v51 }
 0x641   :  { %v3341_v63 = vcombine.low %v2949_v54, %v2963_v12  ;;  %v8064_v18 = vcombine.high %v2949_v54, %v2963_v12  ;;  %v3349_v24 = vrot.slane %v3339_v53, %v9511_v16  ;;  %v3356_v30 = vrot.slane %v8063_v22, %v9511_v16  ;;  %v4338_v60 = vpop.permute.xlu1 %4337  ;;  %v10369_v14 = vpop.xlane.xlu0 %2538  ;;  %8690 = vmatmul.mubr.msk.f32.vlgmr.msra.gmra.mxu0 %vm973_vm3, %v3289_v42 }
 0x642   :  { %v2968_v44 = vcombine.high %v2804_v55, %v2804_v55  ;;  %v2975_v35 = vrot.slane %v2804_v55, %v9511_v16  ;;  %8746 = vmatpush3.xpose.msk.msra.mxu0 %vm973_vm3, %v4338_v60  ;;  %v11712_v20 = vmov 0.0   ;;  %v3337_v26 = vrot.slane %v3323_v38, %v9511_v16 }
 0x643   :  { %8692 = vmatprep.mubr.msk.f32.mxu0 %vm9317_vm2, %v11712_v20  ;;  %v3363_v15 = vrot.slane %v3341_v63, %v9511_v16  ;;  %v3370_v48 = vrot.slane %v8064_v18, %v9511_v16  ;;  %v3371_v0 = vcombine.low %v3349_v24, %v3356_v30  ;;  %8747 = vmatprep.subr.mxu0 %v11712_v20 }
 0x644   :  { %v8079_v49 = vcombine.high %v10328_v45, %v1872_v51  ;;  %v2982_v7 = vrot.slane %v2968_v44, %v9511_v16  ;;  %v2983_v36 = vcombine.high %v2975_v35, %v2975_v35  ;;  %v3338_v54 = vcombine.low %v3330_v43, %v3337_v26 }
 0x645   :  { %v3829_v29 = vcombine.low %v10320_v59, %v10331_v4  ;;  %v2087_v42 = vcombine.high %v10336_v39, %v10336_v39  ;;  %v10388_v63 = vrot.slane %v10336_v39, %v9511_v16  ;;  %v4336_v18 = vpop.permute.xlu1 %4335  ;;  %v10390_v38 = vpop.xlane.xlu0 %2541  ;;  %v3372_v12 = vcombine.low %v3363_v15, %v3370_v48 }
 0x646   :  { %v8078_v45 = vcombine.high %v10320_v59, %v10331_v4  ;;  %v2984_v51 = vcombine.high %v2982_v7, %v2982_v7  ;;  %v2991_v53 = vrot.slane %v2975_v35, %v9511_v16  ;;  %v3005_v22 = vrot.slane %v2983_v36, %v9511_v16  ;;  %8693 = vmatmul.mubr.msk.f32.gmra.mxu0 %vm973_vm3, %v3338_v54 }
 0x647   :  { %v3853_v55 = vrot.slane %v3831_v58, %v9511_v16  ;;  %8748 = vmatpush3.xpose.msk.msra.mxu0 %vm973_vm3, %v4336_v18  ;;  %8695 = vmatprep.mubr.msk.f32.mxu0 %vm9317_vm2, %v11712_v20  ;;  %v3379_v39 = vrot.slane %v3371_v0, %v9511_v16  ;;  %v3386_v43 = vrot.slane %v3372_v12, %v9511_v16 }
 0x648   :  { %v3860_v59 = vrot.slane %v8079_v49, %v9511_v16  ;;  %v2998_v4 = vrot.slane %v2982_v7, %v9511_v16  ;;  %v3012_v24 = vrot.slane %v2984_v51, %v9511_v16  ;;  %v3388_v30 = vcombine.low %v2991_v53, %v3005_v22  ;;  %8749 = vmatprep.subr.mxu0 %v11712_v20 }
 0x649   :  { %v8065_v60 = vcombine.high %v2991_v53, %v3005_v22  ;;  %v1767_v58 = vmul.f32 %v10350_v3, %v10032_v11  ;;  %v10409_v44 = vpop.xlane.xlu0 %2544  ;;  %v3387_v35 = vcombine.low %v3379_v39, %v3386_v43  ;;  %v3839_v26 = vrot.slane %v3829_v29, %v9511_v16  ;;  %v4334_v36 = vpop.permute.xlu1 %4333 }
 0x64a   :  { %v3846_v15 = vrot.slane %v8078_v45, %v9511_v16  ;;  %v3390_v48 = vcombine.low %v2998_v4, %v3012_v24  ;;  %v8066_v0 = vcombine.high %v2998_v4, %v3012_v24  ;;  %v3398_v49 = vrot.slane %v3388_v30, %v9511_v16 }
 0x64b   :  { %v3405_v7 = vrot.slane %v8065_v60, %v9511_v16  ;;  %8696 = vmatmul.mubr.msk.f32.gmra.mxu0 %vm973_vm3, %v3387_v35  ;;  %v3862_v54 = vcombine.low %v3853_v55, %v3860_v59  ;;  %v11713_v11 = vrot.slane %v10290_v10, %v9511_v16  ;;  %v2068_v29 = vrot.slane %v10281_v2, %v9511_v16 }
 0x64c   :  { %v2101_v18 = vrot.slane %v2087_v42, %v9511_v16  ;;  %v3412_v12 = vrot.slane %v3390_v48, %v9511_v16  ;;  %v3419_v45 = vrot.slane %v8066_v0, %v9511_v16  ;;  %8750 = vmatpush3.xpose.msk.msra.mxu0 %vm973_vm3, %v4334_v36  ;;  %8698 = vmatprep.mubr.msk.f32.mxu0 %vm9317_vm2, %v11712_v20 }
 0x64d   :  { %v1988_v3 = vrot.slane %v11713_v11, %v9511_v16  ;;  %v3420_v51 = vcombine.low %v3398_v49, %v3405_v7  ;;  %v2136_v53 = vcombine.high %v1767_v58, %v1767_v58  ;;  %v2143_v22 = vrot.slane %v1767_v58, %v9511_v16  ;;  %v1505_v10 = vpop.xlane.xlu0 %1504  ;;  %8751 = vmatprep.subr.mxu0 %v11712_v20 }
 0x64e   :  { %v2061_v55 = vrot.slane %v10251_v27, %v9511_v16  ;;  %v2102_v42 = vcombine.high %v10388_v63, %v10388_v63  ;;  %9190 = vrcp.f32 %v1505_v10  ;;  %v3421_v39 = vcombine.low %v3412_v12, %v3419_v45 }
 0x64f   :  { %v3861_v43 = vcombine.low %v3839_v26, %v3846_v15  ;;  %v2085_v59 = vcombine.high %v10313_v1, %v10313_v1  ;;  %v3876_v4 = vrot.slane %v3862_v54, %v9511_v16  ;;  %v3976_v24 = vcombine.low %v1988_v3, %v10243_v31 }
 0x650   :  { %v11714_v30 = vcombine.high %v10281_v2, %v10281_v2  ;;  %v2084_v60 = vcombine.high %v2068_v29, %v2068_v29  ;;  %v3428_v58 = vrot.slane %v3420_v51, %v9511_v16  ;;  %v3435_v35 = vrot.slane %v3421_v39, %v9511_v16 }
 0x651   :  { %v2103_v48 = vcombine.high %v2101_v18, %v2101_v18  ;;  %v2117_v26 = vrot.slane %v2101_v18, %v9511_v16  ;;  %v4189_v15 = vpop.permute.xlu0 %4188  ;;  %v11715_v0 = vcombine.high %v10265_v61, %v10265_v61  ;;  %v2124_v49 = vrot.slane %v2102_v42, %v9511_v16 }
 0x652   :  { %v10442_v27 = vrot.slane %v11714_v30, %v9511_v16  ;;  %v2150_v2 = vrot.slane %v2136_v53, %v9511_v16  ;;  %v2151_v7 = vcombine.high %v2143_v22, %v2143_v22  ;;  %8717 = vmatpush3.msra.mxu1 %v4189_v15  ;;  %v3436_v36 = vcombine.low %v3428_v58, %v3435_v35 }
 0x653   :  { %v3978_v31 = vcombine.low %v11715_v0, %v10248_v9  ;;  %v3869_v54 = vrot.slane %v3861_v43, %v9511_v16  ;;  %v2083_v11 = vcombine.high %v2061_v55, %v2061_v55  ;;  %v4027_v3 = vcombine.low %v2085_v59, %v2068_v29  ;;  %8770 = vmatprep.subr.mxu1 %v11712_v20 }
 0x654   :  { %v11716_v18 = vcombine.low %v10234_v47, %v10240_v25  ;;  %v3986_v12 = vrot.slane %v3976_v24, %v9511_v16  ;;  %v4028_v9 = vcombine.low %v10442_v27, %v2084_v60  ;;  %v2110_v61 = vrot.slane %v10388_v63, %v9511_v16  ;;  %8699 = vmatmul.mubr.msk.f32.gmra.mxu0 %vm973_vm3, %v3436_v36 }
 0x655   :  { %v3877_v29 = vcombine.low %v3869_v54, %v3876_v4  ;;  %v2131_v45 = vrot.slane %v2103_v48, %v9511_v16  ;;  %v2133_v47 = vcombine.high %v2117_v26, %v2117_v26  ;;  %v10467_v25 = vpop.permute.xlu0 %4329  ;;  %v2134_v51 = vcombine.high %v2124_v49, %v2124_v49  ;;  %8701 = vmatprep.mubr.msk.f32.mxu0 %vm9317_vm2, %v11712_v20 }
 0x656   :  { %8719 = vmatmul.mubr.msk.f32.vlgmr.msra.gmra.mxu1 %vm973_vm3, %v11716_v18  ;;  %v2152_v53 = vcombine.high %v2150_v2, %v2150_v2  ;;  %v2166_v10 = vrot.slane %v2150_v2, %v9511_v16  ;;  %v2173_v42 = vrot.slane %v2151_v7, %v9511_v16  ;;  %v3993_v63 = vrot.slane %v10299_v33, %v9511_v16 }
 0x657   :  { %8721 = vmatprep.mubr.msk.f32.mxu1 %vm9317_vm2, %v11712_v20  ;;  %v4000_v39 = vrot.slane %v3978_v31, %v9511_v16  ;;  %v4007_v43 = vrot.slane %v10307_v57, %v9511_v16  ;;  %v11717_v59 = vcombine.high %v10273_v28, %v10273_v28  ;;  %v11718_v24 = vcombine.low %v10257_v52, %v10260_v46 }
 0x658   :  { %v4026_v60 = vcombine.low %v10313_v1, %v2083_v11  ;;  %v2132_v58 = vcombine.high %v2110_v61, %v2110_v61  ;;  %v2159_v33 = vrot.slane %v2143_v22, %v9511_v16  ;;  %v4008_v57 = vcombine.low %v3986_v12, %v3993_v63 }
 0x659   :  { %v4025_v4 = vcombine.low %v11717_v59, %v2061_v55  ;;  %v3967_v30 = vrot.slane %v11718_v24, %v9511_v16  ;;  %v4049_v35 = vrot.slane %v4027_v3, %v9511_v16  ;;  %v4056_v28 = vrot.slane %v4028_v9, %v9511_v16  ;;  %v10497_v7 = vpop.permute.xlu0 %4319 }
 0x65a   :  { %8722 = vmatmul.mubr.msk.f32.gmra.mxu1 %vm973_vm3, %v3877_v29  ;;  %v4077_v55 = vcombine.low %v2131_v45, %v2133_v47  ;;  %v4076_v48 = vcombine.low %v2134_v51, %v2117_v26  ;;  %v2180_v15 = vrot.slane %v2152_v53, %v9511_v16  ;;  %v2182_v0 = vcombine.high %v2166_v10, %v2166_v10 }
 0x65b   :  { %8724 = vmatprep.mubr.msk.f32.mxu1 %vm9317_vm2, %v11712_v20  ;;  %v2183_v52 = vcombine.high %v2173_v42, %v2173_v42  ;;  %v3975_v46 = vcombine.low %v3967_v30, %v10304_v37  ;;  %v4009_v1 = vcombine.low %v4000_v39, %v4007_v43  ;;  %v4035_v31 = vrot.slane %v4025_v4, %v9511_v16  ;;  %v9191_v2 = vpop.eup %9190 }
 0x65c   :  { %v2086_v22 = vcombine.high %v10442_v27, %v10442_v27  ;;  %v11719_v36 = vcombine.low %v10270_v62, %v10254_v21  ;;  %v4042_v26 = vrot.slane %v4026_v60, %v9511_v16  ;;  %v4075_v54 = vcombine.low %v2124_v49, %v2132_v58 }
 0x65d   :  { %v2135_v11 = vcombine.high %v2131_v45, %v2131_v45  ;;  %v2181_v3 = vcombine.high %v2159_v33, %v2159_v33  ;;  %v4016_v37 = vrot.slane %v4008_v57, %v9511_v16  ;;  %v4058_v18 = vcombine.low %v4049_v35, %v4056_v28  ;;  %v2666_v29 = vpop.f32.mrf.mxu0 }
 0x65e   :  { %8725 = vmatmul.mubr.msk.f32.gmra.mxu1 %vm973_vm3, %v11719_v36  ;;  %v4074_v27 = vcombine.low %v2086_v22, %v2110_v61  ;;  %v4105_v12 = vrot.slane %v4077_v55, %v9511_v16  ;;  %v1768_v9 = vmul.f32 %v9191_v2, %v10034_v13  ;;  %v4098_v21 = vrot.slane %v4076_v48, %v9511_v16 }
 0x65f   :  { %8727 = vmatprep.mubr.msk.f32.mxu1 %vm9317_vm2, %v11712_v20  ;;  %v4125_v62 = vcombine.low %v2183_v52, %v2166_v10  ;;  %v4126_v47 = vcombine.low %v2180_v15, %v2182_v0  ;;  %v4023_v49 = vrot.slane %v4009_v1, %v9511_v16  ;;  %v8661_v45 = vpop.f32.mrf.mxu0  ;;  %v4057_v51 = vcombine.low %v4035_v31, %v4042_v26  ;;  %v10517_v10 = vpop.permute.xlu0 %4321 }
 0x660   :  { %v4091_v53 = vrot.slane %v4075_v54, %v9511_v16  ;;  %v4123_v63 = vcombine.low %v2135_v11, %v2159_v33  ;;  %v4124_v39 = vcombine.low %v2173_v42, %v2181_v3  ;;  %v4072_v13 = vrot.slane %v4058_v18, %v9511_v16 }
 0x661   :  { %v4024_v61 = vcombine.low %v4016_v37, %v4023_v49  ;;  %v4084_v43 = vrot.slane %v4074_v27, %v9511_v16  ;;  %v4107_v59 = vcombine.low %v4098_v21, %v4105_v12  ;;  %v4147_v4 = vrot.slane %v4125_v62, %v9511_v16 }
 0x662   :  { %8728 = vmatmul.mubr.msk.f32.gmra.mxu1 %vm973_vm3, %v3975_v46  ;;  %v4154_v24 = vrot.slane %v4126_v47, %v9511_v16  ;;  %v2191_v30 = vrot.slane %v1768_v9, %v9511_v16  ;;  %v4065_v42 = vrot.slane %v4057_v51, %v9511_v16  ;;  %v4133_v58 = vrot.slane %v4123_v63, %v9511_v16 }
 0x663   :  { %8730 = vmatprep.mubr.msk.f32.mxu1 %vm9317_vm2, %v11712_v20  ;;  %v4106_v60 = vcombine.low %v4084_v43, %v4091_v53  ;;  %v4140_v33 = vrot.slane %v4124_v39, %v9511_v16  ;;  %v4121_v35 = vrot.slane %v4107_v59, %v9511_v16  ;;  %v10530_v48 = vpop.permute.xlu0 %4323  ;;  %v2184_v46 = vcombine.high %v2180_v15, %v2180_v15 }
 0x664   :  { %v4073_v57 = vcombine.low %v4065_v42, %v4072_v13  ;;  %v4156_v28 = vcombine.low %v4147_v4, %v4154_v24  ;;  %v2198_v55 = vrot.slane %v2191_v30, %v9511_v16  ;;  %9192 = vrcp.f32 %v10343_v5 }
 0x665   :  { %v4114_v0 = vrot.slane %v4106_v60, %v9511_v16  ;;  %v4155_v52 = vcombine.low %v4133_v58, %v4140_v33  ;;  %9194 = vrcp.f32 %v10359_v32 }
 0x666   :  { %8731 = vmatmul.mubr.msk.f32.gmra.mxu1 %vm973_vm3, %v4024_v61  ;;  %v4170_v31 = vrot.slane %v4156_v28, %v9511_v16  ;;  %v4172_v22 = vcombine.low %v2184_v46, %v2198_v55  ;;  %9196 = vrcp.f32 %v10390_v38 }
 0x667   :  { %8733 = vmatprep.mubr.msk.f32.mxu1 %vm9317_vm2, %v11712_v20  ;;  %v4122_v1 = vcombine.low %v4114_v0, %v4121_v35  ;;  %v4163_v2 = vrot.slane %v4155_v52, %v9511_v16  ;;  %v10543_v36 = vpop.permute.xlu0 %4325  ;;  %9198 = vrcp.f32 %v10369_v14 }
 0x668   :  { %v4179_v26 = vrot.slane %v4172_v22, %v9511_v16  ;;  %9200 = vrcp.f32 %v10409_v44 }
 0x669   :  { %v4171_v15 = vcombine.low %v4163_v2, %v4170_v31 }
 0x66a   :  { %8734 = vmatmul.mubr.msk.f32.gmra.mxu1 %vm973_vm3, %v4073_v57  ;;  %v4186_v5 = vrot.slane %v4179_v26, %v9511_v16 }
 0x66b   :  { %8736 = vmatprep.mubr.msk.f32.mxu1 %vm9317_vm2, %v11712_v20  ;;  %v10552_v54 = vpop.permute.xlu0 %4449 }
 0x66e   :  { %8737 = vmatmul.mubr.msk.f32.gmra.mxu1 %vm973_vm3, %v4122_v1 }
 0x66f   :  { %8739 = vmatprep.mubr.msk.f32.mxu1 %vm9317_vm2, %v11712_v20  ;;  %v10558_v11 = vpop.permute.xlu0 %4451 }
 0x671   :  { %v9193_v32 = vpop.eup %9192 }
 0x672   :  { %8740 = vmatmul.mubr.msk.f32.gmra.mxu1 %vm973_vm3, %v4171_v15  ;;  %v2805_v38 = vmul.f32 %v9193_v32, %v2666_v29  ;;  %v9195_v3 = vpop.eup %9194 }
 0x673   :  { %8742 = vmatprep.mubr.msk.f32.mxu1 %vm9317_vm2, %v11712_v20  ;;  %v9197_v27 = vpop.eup %9196  ;;  %v10566_v61 = vpop.permute.xlu0 %4455 }
 0x674   :  { %v3023_v14 = vrot.slane %v2805_v38, %v9511_v16  ;;  %v9199_v63 = vpop.eup %9198 }
 0x675   :  { %v9201_v22 = vpop.eup %9200 }
 0x676   :  { %8743 = vmatmul.mubr.msk.f32.gmra.mxu1 %vm973_vm3, %v4186_v5  ;;  %v3030_v39 = vrot.slane %v3023_v14, %v9511_v16 }
 0x677   :  { %8780 = vmatprep.mubr.msk.f32.mxu1 %vm9317_vm2, %v11712_v20 }
 0x67a   :  { %v10560_v37 = vpop.xlane.xlu1 %2547  ;;  %v2767_v18 = vpop.f32.mrf.mxu0 }
 0x67b   :  { %v2806_v12 = vmul.f32 %v9195_v3, %v2767_v18  ;;  %v2777_v9 = vpop.f32.mrf.mxu1  ;;  %9202 = vrcp.f32 %v10560_v37 }
 0x67c   :  { %v2808_v21 = vmul.f32 %v9197_v27, %v2777_v9  ;;  %v8674_v62 = vpop.f32.mrf.mxu0  ;;  %v10589_v27 = vpop.permute.xlu0 %4675 }
 0x67d   :  { %v3031_v47 = vcombine.high %v2806_v12, %v2806_v12  ;;  %v3038_v49 = vrot.slane %v2806_v12, %v9511_v16  ;;  %v8680_v45 = vpop.f32.mrf.mxu1 }
 0x67e   :  { %v3129_v51 = vcombine.high %v2808_v21, %v2808_v21  ;;  %v3136_v44 = vrot.slane %v2808_v21, %v9511_v16  ;;  %v4332_v29 = vpop.permute.xlu1 %4331  ;;  %v2772_v53 = vpop.f32.mrf.mxu0 }
 0x67f   :  { %v3045_v13 = vrot.slane %v3031_v47, %v9511_v16  ;;  %v3046_v43 = vcombine.high %v3038_v49, %v3038_v49  ;;  %v3054_v59 = vrot.slane %v3038_v49, %v9511_v16  ;;  %v2782_v4 = vpop.f32.mrf.mxu1  ;;  %8752 = vmatpush3.xpose.msk.msra.mxu0 %vm973_vm3, %v4332_v29  ;;  %v2807_v60 = vmul.f32 %v9199_v63, %v2772_v53 }
 0x680   :  { %v3143_v24 = vrot.slane %v3129_v51, %v9511_v16  ;;  %v3144_v30 = vcombine.high %v3136_v44, %v3136_v44  ;;  %v10573_v42 = vrot.slane %v3136_v44, %v9511_v16  ;;  %v8677_v58 = vpop.f32.mrf.mxu0  ;;  %8753 = vmatprep.subr.mxu0 %v11712_v20  ;;  %v2809_v18 = vmul.f32 %v9201_v22, %v2782_v4 }
 0x681   :  { %v3047_v33 = vcombine.high %v3045_v13, %v3045_v13  ;;  %v3061_v57 = vrot.slane %v3045_v13, %v9511_v16  ;;  %v3068_v35 = vrot.slane %v3046_v43, %v9511_v16  ;;  %v3076_v28 = vcombine.high %v3054_v59, %v3054_v59  ;;  %v8683_v55 = vpop.f32.mrf.mxu1 }
 0x682   :  { %v3437_v0 = vcombine.low %v3030_v39, %v3054_v59  ;;  %v3145_v52 = vcombine.high %v3143_v24, %v3143_v24  ;;  %v3159_v46 = vrot.slane %v3143_v24, %v9511_v16  ;;  %v3166_v1 = vrot.slane %v3144_v30, %v9511_v16  ;;  %v4468_v31 = vpop.permute.xlu1 %4467 }
 0x683   :  { %v3075_v2 = vrot.slane %v3047_v33, %v9511_v16  ;;  %v3077_v15 = vcombine.high %v3061_v57, %v3061_v57  ;;  %v3078_v26 = vcombine.high %v3068_v35, %v3068_v35  ;;  %v3438_v5 = vcombine.low %v3068_v35, %v3076_v28  ;;  %8754 = vmatpush3.xpose.msk.msra.mxu0 %vm973_vm3, %v10467_v25  ;;  %v10617_v28 = vpop.permute.xlu0 %4673 }
 0x684   :  { %v10584_v32 = vrot.slane %v3145_v52, %v9511_v16  ;;  %v3174_v38 = vcombine.high %v10573_v42, %v10573_v42  ;;  %v3175_v3 = vcombine.high %v3159_v46, %v3159_v46  ;;  %8771 = vmatpush3.xpose.msk.msra.mxu1 %vm973_vm3, %v4468_v31  ;;  %v3176_v21 = vcombine.high %v3166_v1, %v3166_v1 }
 0x685   :  { %v3439_v14 = vcombine.low %v3078_v26, %v3061_v57  ;;  %v3440_v12 = vcombine.low %v3075_v2, %v3077_v15  ;;  %v3454_v9 = vrot.slane %v3438_v5, %v9511_v16  ;;  %8772 = vmatprep.subr.mxu1 %v11712_v20  ;;  %v3447_v25 = vrot.slane %v3437_v0, %v9511_v16 }
 0x686   :  { %v10594_v62 = vcombine.low %v3166_v1, %v3174_v38  ;;  %v10597_v47 = vcombine.low %v10584_v32, %v3175_v3  ;;  %v3080_v49 = vcombine.high %v2807_v60, %v2807_v60  ;;  %v4466_v45 = vpop.permute.xlu1 %4465  ;;  %8795 = vmatprep.subr.mxu0 %v11712_v20  ;;  %v10602_v29 = vcombine.low %v3176_v21, %v3159_v46 }
 0x687   :  { %v3461_v51 = vrot.slane %v3439_v14, %v9511_v16  ;;  %v3468_v44 = vrot.slane %v3440_v12, %v9511_v16  ;;  %v3079_v53 = vcombine.high %v3075_v2, %v3075_v2  ;;  %v3469_v63 = vcombine.low %v3447_v25, %v3454_v9 }
 0x688   :  { %v3566_v39 = vrot.slane %v10597_v47, %v9511_v16  ;;  %v3087_v13 = vrot.slane %v2807_v60, %v9511_v16  ;;  %v3094_v43 = vrot.slane %v3080_v49, %v9511_v16  ;;  %8773 = vmatpush3.xpose.msk.msra.mxu1 %vm973_vm3, %v4466_v45  ;;  %v3559_v59 = vrot.slane %v10602_v29, %v9511_v16  ;;  %v9203_v37 = vpop.eup %9202 }
 0x689   :  { %v3177_v4 = vcombine.high %v10584_v32, %v10584_v32  ;;  %v3178_v24 = vcombine.high %v2809_v18, %v2809_v18  ;;  %v3185_v30 = vrot.slane %v2809_v18, %v9511_v16  ;;  %8774 = vmatprep.subr.mxu1 %v11712_v20  ;;  %v3470_v46 = vcombine.low %v3461_v51, %v3468_v44 }
 0x68a   :  { %v3095_v58 = vcombine.high %v3087_v13, %v3087_v13  ;;  %v3096_v33 = vcombine.high %v3094_v43, %v3094_v43  ;;  %v3103_v57 = vrot.slane %v3087_v13, %v9511_v16  ;;  %v3110_v60 = vrot.slane %v3094_v43, %v9511_v16  ;;  %v4464_v35 = vpop.permute.xlu1 %4463  ;;  %v10635_v13 = vpop.permute.xlu0 %4671 }
 0x68b   :  { %v3192_v55 = vrot.slane %v3178_v24, %v9511_v16  ;;  %v3193_v0 = vcombine.high %v3185_v30, %v3185_v30  ;;  %v3201_v52 = vrot.slane %v3185_v30, %v9511_v16 }
 0x68c   :  { %v3117_v1 = vrot.slane %v3095_v58, %v9511_v16  ;;  %v3124_v31 = vrot.slane %v3096_v33, %v9511_v16  ;;  %v3125_v22 = vcombine.high %v3103_v57, %v3103_v57  ;;  %v3126_v2 = vcombine.high %v3110_v60, %v3110_v60  ;;  %8775 = vmatpush3.xpose.msk.msra.mxu1 %vm973_vm3, %v4464_v35 }
 0x68d   :  { %v3486_v15 = vcombine.low %v3079_v53, %v3103_v57  ;;  %v3194_v26 = vcombine.high %v3192_v55, %v3192_v55  ;;  %v3208_v5 = vrot.slane %v3192_v55, %v9511_v16  ;;  %v3215_v32 = vrot.slane %v3193_v0, %v9511_v16  ;;  %8776 = vmatprep.subr.mxu1 %v11712_v20 }
 0x68e   :  { %v3127_v38 = vcombine.high %v3117_v1, %v3117_v1  ;;  %v3128_v3 = vcombine.high %v3124_v31, %v3124_v31  ;;  %v3487_v18 = vcombine.low %v3117_v1, %v3125_v22  ;;  %v3489_v14 = vcombine.low %v3124_v31, %v3126_v2  ;;  %v4462_v12 = vpop.permute.xlu1 %4461 }
 0x68f   :  { %v3496_v9 = vrot.slane %v3486_v15, %v9511_v16  ;;  %v10629_v21 = vrot.slane %v3194_v26, %v9511_v16  ;;  %v3223_v25 = vcombine.high %v3201_v52, %v3201_v52  ;;  %v3224_v49 = vcombine.high %v3208_v5, %v3208_v5 }
 0x690   :  { %v3488_v45 = vcombine.low %v3127_v38, %v3110_v60  ;;  %v3503_v51 = vrot.slane %v3487_v18, %v9511_v16  ;;  %v3517_v44 = vrot.slane %v3489_v14, %v9511_v16  ;;  %v3535_v53 = vcombine.low %v3128_v3, %v10573_v42  ;;  %8777 = vmatpush3.xpose.msk.msra.mxu1 %vm973_vm3, %v4462_v12 }
 0x691   :  { %v3225_v43 = vcombine.high %v3215_v32, %v3215_v32  ;;  %v3584_v24 = vcombine.low %v3177_v4, %v3201_v52  ;;  %v3585_v30 = vcombine.low %v3215_v32, %v3223_v25  ;;  %v3587_v58 = vcombine.low %v10629_v21, %v3224_v49  ;;  %8778 = vmatprep.subr.mxu1 %v11712_v20 }
 0x692   :  { %v3510_v33 = vrot.slane %v3488_v45, %v9511_v16  ;;  %v3518_v57 = vcombine.low %v3496_v9, %v3503_v51  ;;  %v3477_v60 = vrot.slane %v3469_v63, %v9511_v16  ;;  %v3484_v35 = vrot.slane %v3470_v46, %v9511_v16  ;;  %v4460_v55 = vpop.permute.xlu1 %4459 }
 0x693   :  { %v3552_v42 = vrot.slane %v10594_v62, %v9511_v16  ;;  %v3586_v0 = vcombine.low %v3225_v43, %v3208_v5  ;;  %v3615_v1 = vrot.slane %v3587_v58, %v9511_v16  ;;  %v3545_v31 = vrot.slane %v3535_v53, %v9511_v16  ;;  %v4799_v5 = vpop.permute.xlu0 %4798 }
 0x694   :  { %v3485_v4 = vcombine.low %v3477_v60, %v3484_v35  ;;  %v3519_v52 = vcombine.low %v3510_v33, %v3517_v44  ;;  %8779 = vmatpush3.xpose.msk.msra.mxu1 %vm973_vm3, %v4460_v55  ;;  %v3594_v22 = vrot.slane %v3584_v24, %v9511_v16  ;;  %v3601_v2 = vrot.slane %v3585_v30, %v9511_v16 }
 0x695   :  { %v3608_v63 = vrot.slane %v3586_v0, %v9511_v16  ;;  %8820 = vmatprep.subr.mxu1 %v11712_v20  ;;  %v3526_v62 = vrot.slane %v3518_v57, %v9511_v16  ;;  %v3567_v15 = vcombine.low %v3545_v31, %v3552_v42  ;;  %v3568_v26 = vcombine.low %v3559_v59, %v3566_v39 }
 0x696   :  { %8702 = vmatmul.mubr.msk.f32.gmra.mxu0 %vm973_vm3, %v3485_v4  ;;  %v3533_v46 = vrot.slane %v3519_v52, %v9511_v16  ;;  %v4328_v38 = vpop.permute.xlu1 %4327  ;;  %v3616_v29 = vcombine.low %v3594_v22, %v3601_v2 }
 0x697   :  { %8704 = vmatprep.mubr.msk.f32.mxu0 %vm9317_vm2, %v11712_v20  ;;  %8781 = vmatmul.mubr.msk.f32.vlgmr.msra.gmra.mxu1 %vm973_vm3, %v10552_v54  ;;  %v3575_v3 = vrot.slane %v3567_v15, %v9511_v16  ;;  %v3617_v47 = vcombine.low %v3608_v63, %v3615_v1  ;;  %v3582_v39 = vrot.slane %v3568_v26, %v9511_v16 }
 0x698   :  { %v3534_v32 = vcombine.low %v3526_v62, %v3533_v46  ;;  %8821 = vmatpush3.msk.msra.mxu1 %vm1535_vm4, %v4799_v5  ;;  %8783 = vmatprep.mubr.msk.f32.mxu1 %vm9317_vm2, %v11712_v20  ;;  %v3624_v14 = vrot.slane %v3616_v29, %v9511_v16 }
 0x699   :  { %8822 = vmatprep.subr.mxu1 %v11712_v20  ;;  %v3583_v54 = vcombine.low %v3575_v3, %v3582_v39  ;;  %v3631_v59 = vrot.slane %v3617_v47, %v9511_v16 }
 0x69a   :  { %8705 = vmatmul.mubr.msk.f32.gmra.mxu0 %vm973_vm3, %v3534_v32  ;;  %v4454_v18 = vpop.permute.xlu1 %4453 }
 0x69b   :  { %8707 = vmatprep.mubr.msk.f32.mxu0 %vm9317_vm2, %v11712_v20  ;;  %8784 = vmatmul.mubr.msk.f32.gmra.mxu1 %vm973_vm3, %v10558_v11  ;;  %v3632_v12 = vcombine.low %v3624_v14, %v3631_v59 }
 0x69c   :  { %8786 = vmatprep.mubr.msk.f32.mxu1 %vm9317_vm2, %v11712_v20 }
 0x69e   :  { %8708 = vmatmul.mubr.msk.f32.gmra.mxu0 %vm973_vm3, %v3583_v54  ;;  %v4458_v11 = vpop.permute.xlu1 %4457 }
 0x69f   :  { %8710 = vmatprep.mubr.msk.f32.mxu0 %vm9317_vm2, %v11712_v20  ;;  %8787 = vmatmul.mubr.msk.f32.gmra.mxu1 %vm973_vm3, %v4454_v18 }
 0x6a0   :  { %8789 = vmatprep.mubr.msk.f32.mxu1 %vm9317_vm2, %v11712_v20 }
 0x6a2   :  { %8711 = vmatmul.mubr.msk.f32.gmra.mxu0 %vm973_vm3, %v3632_v12  ;;  %v4678_v24 = vpop.permute.xlu1 %4677 }
 0x6a3   :  { %8790 = vmatmul.mubr.msk.f32.gmra.mxu1 %vm973_vm3, %v10566_v61  ;;  %8713 = vmatprep.mubr.msk.f32.mxu0 %vm9317_vm2, %v11712_v20  ;;  %v3226_v61 = vcombine.high %v10629_v21, %v10629_v21 }
 0x6a4   :  { %8792 = vmatprep.mubr.msk.f32.mxu1 %vm9317_vm2, %v11712_v20 }
 0x6a7   :  { %8793 = vmatmul.mubr.msk.f32.gmra.mxu1 %vm973_vm3, %v4458_v11 }
 0x6a8   :  { %8830 = vmatprep.mubr.msk.f32.mxu1 %vm9317_vm2, %v11712_v20 }
 0x6ac   :  { %v2787_v9 = vpop.f32.mrf.mxu1 }
 0x6ad   :  { %v2810_v25 = vmul.f32 %v9203_v37, %v2787_v9 }
 0x6ae   :  { %v8686_v49 = vpop.f32.mrf.mxu1 }
 0x6af   :  { %v3233_v45 = vrot.slane %v2810_v25, %v9511_v16 }
 0x6b1   :  { %v3240_v51 = vrot.slane %v3233_v45, %v9511_v16 }
 0x6b3   :  { %v3633_v44 = vcombine.low %v3226_v61, %v3240_v51 }
 0x6b5   :  { %v3640_v53 = vrot.slane %v3633_v44, %v9511_v16 }
 0x6b7   :  { %v3647_v43 = vrot.slane %v3640_v53, %v9511_v16 }
 0x6b9   :  { %8714 = vmatmul.mubr.msk.f32.gmra.mxu0 %vm973_vm3, %v3647_v43 }
 0x6ba   :  { %8755 = vmatprep.mubr.msk.f32.mxu0 %vm9317_vm2, %v11712_v20 }
 0x6bd   :  { %8756 = vmatmul.mubr.msk.f32.vlgmr.msra.gmra.mxu0 %vm973_vm3, %v10497_v7  ;;  %v4670_v7 = vpop.permute.xlu1 %4669 }
 0x6be   :  { %8796 = vmatpush3.msk.msra.mxu0 %vm1535_vm4, %v4678_v24  ;;  %8758 = vmatprep.mubr.msk.f32.mxu0 %vm9317_vm2, %v11712_v20 }
 0x6bf   :  { %8797 = vmatprep.subr.mxu0 %v11712_v20 }
 0x6c0   :  { %8798 = vmatpush3.msra.mxu0 %v10589_v27 }
 0x6c1   :  { %8799 = vmatprep.subr.mxu0 %v11712_v20  ;;  %8759 = vmatmul.mubr.msk.f32.gmra.mxu0 %vm973_vm3, %v10517_v10 }
 0x6c2   :  { %8800 = vmatpush3.msra.mxu0 %v10617_v28  ;;  %8761 = vmatprep.mubr.msk.f32.mxu0 %vm9317_vm2, %v11712_v20 }
 0x6c3   :  { %8801 = vmatprep.subr.mxu0 %v11712_v20 }
 0x6c4   :  { %8802 = vmatpush3.msra.mxu0 %v10635_v13 }
 0x6c5   :  { %8803 = vmatprep.subr.mxu0 %v11712_v20  ;;  %8762 = vmatmul.mubr.msk.f32.gmra.mxu0 %vm973_vm3, %v10530_v48 }
 0x6c6   :  { %8804 = vmatpush3.msra.mxu0 %v4670_v7  ;;  %8764 = vmatprep.mubr.msk.f32.mxu0 %vm9317_vm2, %v11712_v20 }
 0x6c7   :  { %8845 = vmatprep.subr.mxu0 %v11712_v20 }
 0x6c9   :  { %8765 = vmatmul.mubr.msk.f32.gmra.mxu0 %vm973_vm3, %v10543_v36 }
 0x6ca   :  { %8767 = vmatprep.mubr.msk.f32.mxu0 %vm9317_vm2, %v11712_v20 }
 0x6cd   :  { %8768 = vmatmul.mubr.msk.f32.gmra.mxu0 %vm973_vm3, %v4328_v38 }
 0x6ce   :  { %8805 = vmatprep.mubr.msk.f32.mxu0 %vm9317_vm2, %v11712_v20 }
 0x701   :  { %v3736_v10 = vpop.f32.mrf.mxu0 }
 0x703   :  { %v8691_v27 = vpop.f32.mrf.mxu0 }
 0x706   :  { %v3741_v48 = vpop.f32.mrf.mxu0 }
 0x708   :  { %v8694_v28 = vpop.f32.mrf.mxu0 }
 0x70b   :  { %v3746_v21 = vpop.f32.mrf.mxu0 }
 0x70d   :  { %v8697_v13 = vpop.f32.mrf.mxu0 }
 0x714   :  { %v3751_v58 = vpop.f32.mrf.mxu0 }
 0x716   :  { %v4275_v30 = vpop.f32.mrf.mxu1  ;;  %v8700_v36 = vpop.f32.mrf.mxu0 }
 0x717   :  { %v10733_v33 = vadd.f32 %v4275_v30, %v3736_v10 }
 0x718   :  { %v8720_v57 = vpop.f32.mrf.mxu1 }
 0x71a   :  { %v4280_v60 = vpop.f32.mrf.mxu1 }
 0x71b   :  { %v10735_v35 = vadd.f32 %v4280_v60, %v3741_v48 }
 0x71c   :  { %v8723_v55 = vpop.f32.mrf.mxu1 }
 0x71e   :  { %v4285_v42 = vpop.f32.mrf.mxu1 }
 0x71f   :  { %v10737_v0 = vadd.f32 %v4285_v42, %v3746_v21 }
 0x720   :  { %v8726_v1 = vpop.f32.mrf.mxu1 }
 0x722   :  { %v4290_v4 = vpop.f32.mrf.mxu1 }
 0x723   :  { %v10739_v52 = vadd.f32 %v4290_v4, %v3751_v58 }
 0x724   :  { %v8729_v31 = vpop.f32.mrf.mxu1 }
 0x726   :  { %v4295_v22 = vpop.f32.mrf.mxu1 }
 0x728   :  { %v8732_v2 = vpop.f32.mrf.mxu1 }
 0x72a   :  { %v4300_v63 = vpop.f32.mrf.mxu1 }
 0x72c   :  { %v8735_v62 = vpop.f32.mrf.mxu1 }
 0x72e   :  { %v4305_v46 = vpop.f32.mrf.mxu1 }
 0x730   :  { %v8738_v15 = vpop.f32.mrf.mxu1 }
 0x732   :  { %v4310_v26 = vpop.f32.mrf.mxu1 }
 0x734   :  { %v8741_v5 = vpop.f32.mrf.mxu1 }
 0x736   :  { %v10741_v32 = vpop.f32.mrf.mxu1 }
 0x738   :  { %v8744_v38 = vpop.f32.mrf.mxu1 }
 0x756   :  { %v3756_v3 = vpop.f32.mrf.mxu0 }
 0x757   :  { %v10743_v47 = vadd.f32 %v4295_v22, %v3756_v3  ;;  %v4555_v29 = vpop.f32.mrf.mxu1 }
 0x758   :  { %v8703_v39 = vpop.f32.mrf.mxu0  ;;  %v4594_v54 = vsel %vm1414_vm5, %v4555_v29, -inf }
 0x759   :  { %4595 = vmax.xlane.f32.xlu0 %v4594_v54  ;;  %v8782_v59 = vpop.f32.mrf.mxu1 }
 0x75a   :  { %v3761_v18 = vpop.f32.mrf.mxu0 }
 0x75b   :  { %v10746_v14 = vadd.f32 %v4300_v63, %v3761_v18  ;;  %v10748_v12 = vpop.f32.mrf.mxu1 }
 0x75c   :  { %v8706_v11 = vpop.f32.mrf.mxu0  ;;  %v4597_v37 = vsel %vm1414_vm5, %v10748_v12, -inf }
 0x75d   :  { %4598 = vmax.xlane.f32.xlu0 %v4597_v37  ;;  %v8785_v9 = vpop.f32.mrf.mxu1 }
 0x75e   :  { %v3766_v25 = vpop.f32.mrf.mxu0 }
 0x75f   :  { %v10752_v49 = vadd.f32 %v4305_v46, %v3766_v25  ;;  %v4565_v45 = vpop.f32.mrf.mxu1 }
 0x760   :  { %v8709_v61 = vpop.f32.mrf.mxu0  ;;  %v4600_v51 = vsel %vm1414_vm5, %v4565_v45, -inf }
 0x761   :  { %4601 = vmax.xlane.f32.xlu1 %v4600_v51  ;;  %v8788_v44 = vpop.f32.mrf.mxu1 }
 0x762   :  { %v3771_v53 = vpop.f32.mrf.mxu0 }
 0x763   :  { %v10755_v43 = vadd.f32 %v4310_v26, %v3771_v53  ;;  %v4570_v24 = vpop.f32.mrf.mxu1 }
 0x764   :  { %v8712_v7 = vpop.f32.mrf.mxu0  ;;  %v4603_v10 = vsel %vm1414_vm5, %v4570_v24, -inf }
 0x765   :  { %4604 = vmax.xlane.f32.xlu0 %v4603_v10  ;;  %v8791_v27 = vpop.f32.mrf.mxu1 }
 0x767   :  { %v10758_v48 = vpop.f32.mrf.mxu1 }
 0x768   :  { %v4606_v15 = vsel %vm1427_vm6, %v10758_v48, -inf }
 0x769   :  { %v8794_v28 = vpop.f32.mrf.mxu1 }
 0x779   :  { %v10760_v21 = vpop.f32.mrf.mxu0 }
 0x77b   :  { %v8715_v13 = vpop.f32.mrf.mxu0 }
 0x77d   :  { %v4425_v30 = vpop.f32.mrf.mxu0 }
 0x77e   :  { %v4579_v58 = vsel %vm1414_vm5, %v4425_v30, -inf }
 0x77f   :  { %v8757_v57 = vpop.f32.mrf.mxu0  ;;  %4580 = vmax.xlane.f32.xlu0 %v4579_v58 }
 0x781   :  { %v4430_v36 = vpop.f32.mrf.mxu0 }
 0x782   :  { %v4582_v60 = vsel %vm1414_vm5, %v4430_v36, -inf }
 0x783   :  { %v8760_v55 = vpop.f32.mrf.mxu0  ;;  %4583 = vmax.xlane.f32.xlu1 %v4582_v60 }
 0x785   :  { %v4435_v42 = vpop.f32.mrf.mxu0 }
 0x786   :  { %v4585_v1 = vsel %vm1414_vm5, %v4435_v42, -inf }
 0x787   :  { %v8763_v4 = vpop.f32.mrf.mxu0  ;;  %4586 = vmax.xlane.f32.xlu0 %v4585_v1 }
 0x789   :  { %v4440_v31 = vpop.f32.mrf.mxu0 }
 0x78a   :  { %v4588_v22 = vsel %vm1414_vm5, %v4440_v31, -inf }
 0x78b   :  { %v8766_v2 = vpop.f32.mrf.mxu0  ;;  %4589 = vmax.xlane.f32.xlu0 %v4588_v22 }
 0x78d   :  { %v4445_v63 = vpop.f32.mrf.mxu0 }
 0x78e   :  { %v4591_v62 = vsel %vm1427_vm6, %v4445_v63, -inf }
 0x78f   :  { %v8769_v46 = vpop.f32.mrf.mxu0  ;;  %4592 = vmax.xlane.f32.xlu1 %v4591_v62 }
 0x7a0   :  { %4796 = vrot.lane.b32.xlu1 %v9665_v6, %s9327_s29 }
 0x7a1   :  { %4794 = vrot.lane.b32.xlu0 %v9659_v40, %s9327_s29 }
 0x7a5   :  { %4792 = vrot.lane.b32.xlu0 %v9674_v50, %s9327_s29 }
 0x7a9   :  { %4790 = vrot.lane.b32.xlu0 %v9669_v41, %s9327_s29 }
 0x7c4   :  { %4607 = vmax.xlane.f32.xlu1 %v4606_v15 }
 0x7e2   :  { %v4596_v26 = vpop.xlane.xlu0 %4595 }
 0x7e3   :  { %v4614_v5 = vsub.f32 %v4555_v29, %v4596_v26 }
 0x7e5   :  { %v4629_v38 = vmul.f32 1.442695, %v4614_v5 }
 0x7e6   :  { %v4599_v9 = vpop.xlane.xlu0 %4598 }
 0x7e7   :  { %9204 = vpow2.f32 %v4629_v38  ;;  %v4615_v29 = vsub.f32 %v10748_v12, %v4599_v9 }
 0x7e9   :  { %v4631_v44 = vmul.f32 1.442695, %v4615_v29 }
 0x7ea   :  { %v4602_v3 = vpop.xlane.xlu1 %4601 }
 0x7eb   :  { %v4616_v39 = vsub.f32 %v4565_v45, %v4602_v3 }
 0x7ed   :  { %v4633_v54 = vmul.f32 1.442695, %v4616_v39  ;;  %v9304_v39 = vld [vmem:[%s11703_s1 + $0x20] sm:$0xff] }
 0x7ee   :  { %v4605_v25 = vpop.xlane.xlu0 %4604 }
 0x7ef   :  { %9206 = vpow2.f32 %v4633_v54  ;;  %v4617_v45 = vsub.f32 %v4570_v24, %v4605_v25 }
 0x7f1   :  { %v4635_v27 = vmul.f32 1.442695, %v4617_v45 }
 0x7f4   :  { %v9205_v59 = vpop.eup %9204 }
 0x7f5   :  { %v4654_v18 = vsel %vm1414_vm5, %v9205_v59, 0.0 }
 0x7f6   :  { %4655 = vadd.xlane.f32.xlu1 %v4654_v18 }
 0x7fc   :  { %v10778_v11 = vpop.eup %9206 }
 0x7fd   :  { %v4660_v37 = vsel %vm1414_vm5, %v10778_v11, 0.0 }
 0x7fe   :  { %4661 = vadd.xlane.f32.xlu1 %v4660_v37 }
 0x808   :  { %v4581_v61 = vpop.xlane.xlu0 %4580 }
 0x809   :  { %v4609_v51 = vsub.f32 %v4425_v30, %v4581_v61 }
 0x80b   :  { %v4619_v53 = vmul.f32 1.442695, %v4609_v51 }
 0x80c   :  { %v4584_v7 = vpop.xlane.xlu1 %4583 }
 0x80d   :  { %9208 = vpow2.f32 %v4619_v53  ;;  %v4610_v10 = vsub.f32 %v4430_v36, %v4584_v7 }
 0x80e   :  { %9210 = vpow2.f32 %v4631_v44 }
 0x80f   :  { %v4621_v28 = vmul.f32 1.442695, %v4610_v10 }
 0x810   :  { %v4587_v13 = vpop.xlane.xlu0 %4586 }
 0x811   :  { %9212 = vpow2.f32 %v4621_v28  ;;  %v4611_v58 = vsub.f32 %v4435_v42, %v4587_v13 }
 0x812   :  { %9214 = vpow2.f32 %v4635_v27 }
 0x813   :  { %v4623_v57 = vmul.f32 1.442695, %v4611_v58 }
 0x814   :  { %v4590_v60 = vpop.xlane.xlu0 %4589 }
 0x815   :  { %9216 = vpow2.f32 %v4623_v57  ;;  %v4612_v55 = vsub.f32 %v4440_v31, %v4590_v60 }
 0x817   :  { %v4625_v12 = vmul.f32 1.442695, %v4612_v55 }
 0x818   :  { %v4593_v1 = vpop.xlane.xlu1 %4592  ;;  %v4795_v30 = vpop.permute.xlu0 %4794 }
 0x819   :  { %9218 = vpow2.f32 %v4625_v12  ;;  %v4613_v24 = vsub.f32 %v4445_v63, %v4593_v1 }
 0x81a   :  { %v9209_v4 = vpop.eup %9208 }
 0x81b   :  { %v4627_v22 = vmul.f32 1.442695, %v4613_v24  ;;  %8806 = vmatmul.mubr.msk.f32.vlgmr.msra.gmra.mxu0 %vm1414_vm5, %v9209_v4  ;;  %v4639_v36 = vsel %vm1414_vm5, %v9209_v4, 0.0  ;;  %v9211_v2 = vpop.eup %9210 }
 0x81c   :  { %v4797_v62 = vpop.permute.xlu1 %4796  ;;  %4640 = vadd.xlane.f32.xlu0 %v4639_v36  ;;  %v4793_v42 = vpop.permute.xlu0 %4792  ;;  %8808 = vmatprep.mubr.msk.f32.mxu0 %vm9317_vm2, %v11712_v20  ;;  %v4657_v63 = vsel %vm1414_vm5, %v9211_v2, 0.0 }
 0x81d   :  { %9220 = vpow2.f32 %v4627_v22  ;;  %8823 = vmatpush3.msra.mxu1 %v4797_v62 }
 0x81e   :  { %v9213_v31 = vpop.eup %9212  ;;  %8824 = vmatprep.subr.mxu1 %v11712_v20 }
 0x81f   :  { %8809 = vmatmul.mubr.msk.f32.gmra.mxu0 %vm1414_vm5, %v9213_v31  ;;  %8825 = vmatpush3.msra.mxu1 %v4795_v30  ;;  %v9215_v46 = vpop.eup %9214  ;;  %v4642_v37 = vsel %vm1414_vm5, %v9213_v31, 0.0 }
 0x820   :  { %4658 = vadd.xlane.f32.xlu0 %v4657_v63  ;;  %8826 = vmatprep.subr.mxu1 %v11712_v20  ;;  %v4791_v26 = vpop.permute.xlu0 %4790  ;;  %v4663_v5 = vsel %vm1414_vm5, %v9215_v46, 0.0 }
 0x821   :  { %8827 = vmatpush3.msra.mxu1 %v4793_v42  ;;  %8811 = vmatprep.mubr.msk.f32.mxu0 %vm9317_vm2, %v11712_v20 }
 0x822   :  { %v9217_v15 = vpop.eup %9216  ;;  %8828 = vmatprep.subr.mxu1 %v11712_v20 }
 0x823   :  { %8812 = vmatmul.mubr.msk.f32.gmra.mxu0 %vm1414_vm5, %v9217_v15  ;;  %8829 = vmatpush3.msra.mxu1 %v4791_v26  ;;  %v4645_v9 = vsel %vm1414_vm5, %v9217_v15, 0.0 }
 0x824   :  { %4664 = vadd.xlane.f32.xlu0 %v4663_v5  ;;  %8831 = vmatmul.mubr.msk.f32.vlgmr.msra.gmra.mxu1 %vm1414_vm5, %v9205_v59 }
 0x825   :  { %8814 = vmatprep.mubr.msk.f32.mxu0 %vm9317_vm2, %v11712_v20  ;;  %8833 = vmatprep.mubr.msk.f32.mxu1 %vm9317_vm2, %v11712_v20 }
 0x826   :  { %v9219_v38 = vpop.eup %9218  ;;  %8874 = vmatprep.subr.mxu1 %v11712_v20 }
 0x827   :  { %8815 = vmatmul.mubr.msk.f32.gmra.mxu0 %vm1414_vm5, %v9219_v38  ;;  %v4648_v25 = vsel %vm1414_vm5, %v9219_v38, 0.0 }
 0x828   :  { %8834 = vmatmul.mubr.msk.f32.gmra.mxu1 %vm1414_vm5, %v9211_v2  ;;  %8817 = vmatprep.mubr.msk.f32.mxu0 %vm9317_vm2, %v11712_v20 }
 0x829   :  { %8836 = vmatprep.mubr.msk.f32.mxu1 %vm9317_vm2, %v11712_v20 }
 0x82a   :  { %v9221_v3 = vpop.eup %9220 }
 0x82b   :  { %8818 = vmatmul.mubr.msk.f32.gmra.mxu0 %vm1414_vm5, %v9221_v3 }
 0x82c   :  { %8837 = vmatmul.mubr.msk.f32.gmra.mxu1 %vm1414_vm5, %v10778_v11  ;;  %8847 = vmatprep.mubr.msk.f32.mxu0 %vm9317_vm2, %v11712_v20 }
 0x82d   :  { %8839 = vmatprep.mubr.msk.f32.mxu1 %vm9317_vm2, %v11712_v20 }
 0x830   :  { %8840 = vmatmul.mubr.msk.f32.gmra.mxu1 %vm1414_vm5, %v9215_v46 }
 0x831   :  { %8842 = vmatprep.mubr.msk.f32.mxu1 %vm9317_vm2, %v11712_v20 }
 0x83a   :  { %5769 = vrot.lane.b32.xlu0 %v9304_v39, %s9324_s24 }
 0x83e   :  { %5921 = vrot.lane.b32.xlu0 %v9617_v56, %s9328_s6 }
 0x842   :  { %6057 = vrot.lane.b32.xlu0 %v9652_v23, %s9328_s6 }
 0x846   :  { %6055 = vrot.lane.b32.xlu0 %v9665_v6, %s9328_s6 }
 0x84a   :  { %6053 = vrot.lane.b32.xlu0 %v9659_v40, %s9328_s6 }
 0x84d   :  { %v4608_v54 = vpop.xlane.xlu1 %4607 }
 0x84e   :  { %v4618_v59 = vsub.f32 %v10758_v48, %v4608_v54  ;;  %6051 = vrot.lane.b32.xlu0 %v9674_v50, %s9328_s6 }
 0x850   :  { %v4637_v18 = vmul.f32 1.442695, %v4618_v59 }
 0x852   :  { %9222 = vpow2.f32 %v4637_v18  ;;  %6049 = vrot.lane.b32.xlu0 %v9669_v41, %s9328_s6 }
 0x856   :  { %5917 = vrot.lane.b32.xlu0 %v9574_v8, %s9329_s7 }
 0x85a   :  { %6043 = vrot.lane.b32.xlu0 %v9659_v40, %s9329_s7 }
 0x85e   :  { %6047 = vrot.lane.b32.xlu0 %v9652_v23, %s9329_s7 }
 0x85f   :  { %v9223_v11 = vpop.eup %9222 }
 0x860   :  { %8843 = vmatmul.mubr.msk.f32.gmra.mxu1 %vm1414_vm5, %v9223_v11  ;;  %v4666_v48 = vsel %vm1427_vm6, %v9223_v11, 0.0 }
 0x861   :  { %4667 = vadd.xlane.f32.xlu1 %v4666_v48  ;;  %8884 = vmatprep.mubr.msk.f32.mxu1 %vm9317_vm2, %v11712_v20 }
 0x862   :  { %6267 = vrot.lane.b32.xlu0 %v9574_v8, %s9330_s8 }
 0x866   :  { %6263 = vrot.lane.b32.xlu0 %v9597_v34, %s9330_s8 }
 0x86a   :  { %6261 = vrot.lane.b32.xlu0 %v9617_v56, %s9330_s8 }
 0x86e   :  { %6388 = vrot.lane.b32.xlu0 %v9652_v23, %s9330_s8 }
 0x872   :  { %5927 = vrot.lane.b32.xlu1 %v9574_v8, %s9328_s6  ;;  %v4651_v8 = vsel %vm1427_vm6, %v9221_v3, 0.0 }
 0x87f   :  { %v4656_v23 = vpop.xlane.xlu1 %4655 }
 0x887   :  { %v4662_v58 = vpop.xlane.xlu1 %4661 }
 0x896   :  { %4643 = vadd.xlane.f32.xlu1 %v4642_v37 }
 0x89a   :  { %4646 = vadd.xlane.f32.xlu1 %v4645_v9 }
 0x89e   :  { %4649 = vadd.xlane.f32.xlu1 %v4648_v25 }
 0x8a5   :  { %v4641_v29 = vpop.xlane.xlu0 %4640 }
 0x8a6   :  { %9224 = vrcp.f32 %v4641_v29 }
 0x8a7   :  { %9226 = vrcp.f32 %v4656_v23 }
 0x8a9   :  { %v4659_v61 = vpop.xlane.xlu0 %4658 }
 0x8aa   :  { %9228 = vrcp.f32 %v4659_v61 }
 0x8ab   :  { %9230 = vrcp.f32 %v4662_v58 }
 0x8ad   :  { %v4665_v51 = vpop.xlane.xlu0 %4664 }
 0x8ae   :  { %9232 = vrcp.f32 %v4665_v51 }
 0x8af   :  { %5925 = vrot.lane.b32.xlu1 %v9589_v19, %s9328_s6 }
 0x8b1   :  { %v5770_v44 = vpop.permute.xlu0 %5769 }
 0x8b2   :  { %8846 = vmatpush3.msra.mxu0 %v5770_v44 }
 0x8b3   :  { %8899 = vmatprep.subr.mxu0 %v11712_v20  ;;  %v9225_v45 = vpop.eup %9224 }
 0x8b4   :  { %v9227_v22 = vpop.eup %9226 }
 0x8b5   :  { %v10868_v24 = vpop.permute.xlu0 %5921 }
 0x8b7   :  { %v9229_v59 = vpop.eup %9228 }
 0x8b9   :  { %v6058_v9 = vpop.permute.xlu0 %6057 }
 0x8d3   :  { %4652 = vadd.xlane.f32.xlu1 %v4651_v8 }
 0x8db   :  { %v4766_v53 = vpop.f32.mrf.mxu0 }
 0x8dc   :  { %v4921_v7 = vmul.f32 %v9225_v45, %v4766_v53 }
 0x8dd   :  { %v8807_v10 = vpop.f32.mrf.mxu0 }
 0x8de   :  { %v4941_v27 = vcombine.high %v4921_v7, %v4921_v7  ;;  %v4948_v28 = vrot.slane %v4921_v7, %v9511_v16 }
 0x8df   :  { %v10863_v13 = vpop.f32.mrf.mxu0 }
 0x8e0   :  { %v4955_v57 = vrot.slane %v4941_v27, %v9511_v16  ;;  %v4956_v60 = vcombine.high %v4948_v28, %v4948_v28  ;;  %v4964_v1 = vrot.slane %v4948_v28, %v9511_v16 }
 0x8e1   :  { %v8810_v55 = vpop.f32.mrf.mxu0 }
 0x8e2   :  { %v4957_v12 = vcombine.high %v4955_v57, %v4955_v57  ;;  %v4978_v30 = vrot.slane %v4956_v60, %v9511_v16  ;;  %v4971_v36 = vrot.slane %v4955_v57, %v9511_v16 }
 0x8e3   :  { %v10870_v4 = vpop.f32.mrf.mxu0 }
 0x8e4   :  { %v4985_v2 = vrot.slane %v4957_v12, %v9511_v16  ;;  %v5361_v62 = vcombine.low %v4964_v1, %v4978_v30  ;;  %v8125_v42 = vcombine.high %v4964_v1, %v4978_v30  ;;  %5923 = vrot.lane.b32.xlu1 %v9597_v34, %s9328_s6  ;;  %v4887_v31 = vpop.f32.mrf.mxu1 }
 0x8e5   :  { %v10876_v63 = vmul.f32 %v9227_v22, %v4887_v31  ;;  %v8813_v46 = vpop.f32.mrf.mxu0 }
 0x8e6   :  { %v5363_v15 = vcombine.low %v4971_v36, %v4985_v2  ;;  %v8126_v26 = vcombine.high %v4971_v36, %v4985_v2  ;;  %v5371_v5 = vrot.slane %v5361_v62, %v9511_v16  ;;  %v5378_v38 = vrot.slane %v8125_v42, %v9511_v16  ;;  %v8832_v3 = vpop.f32.mrf.mxu1  ;;  %v6056_v36 = vpop.permute.xlu0 %6055 }
 0x8e7   :  { %v5151_v39 = vcombine.high %v10876_v63, %v10876_v63  ;;  %v10882_v54 = vpop.f32.mrf.mxu0  ;;  %v9231_v62 = vpop.eup %9230 }
 0x8e8   :  { %v5385_v18 = vrot.slane %v5363_v15, %v9511_v16  ;;  %v5392_v11 = vrot.slane %v8126_v26, %v9511_v16  ;;  %v5393_v48 = vcombine.low %v5371_v5, %v5378_v38  ;;  %5919 = vrot.lane.b32.xlu1 %v9587_v17, %s9328_s6  ;;  %v4892_v37 = vpop.f32.mrf.mxu1  ;;  %v9233_v3 = vpop.eup %9232 }
 0x8e9   :  { %v10889_v25 = vrot.slane %v5151_v39, %v9511_v16  ;;  %v4927_v29 = vmul.f32 %v9229_v59, %v4892_v37  ;;  %v8816_v61 = vpop.f32.mrf.mxu0 }
 0x8ea   :  { %v5394_v51 = vcombine.low %v5385_v18, %v5392_v11  ;;  %v10891_v44 = vpop.xlane.xlu1 %4667  ;;  %v8835_v8 = vpop.f32.mrf.mxu1  ;;  %v5401_v53 = vrot.slane %v5393_v48, %v9511_v16 }
 0x8eb   :  { %v5167_v23 = vcombine.high %v10889_v25, %v10889_v25  ;;  %v10895_v45 = vpop.f32.mrf.mxu0  ;;  %v5200_v10 = vcombine.high %v4927_v29, %v4927_v29  ;;  %v5207_v27 = vrot.slane %v4927_v29, %v9511_v16  ;;  %9234 = vrcp.f32 %v10891_v44 }
 0x8ec   :  { %v5408_v7 = vrot.slane %v5394_v51, %v9511_v16  ;;  %5909 = vrot.lane.b32.xlu1 %v9587_v17, %s9329_s7  ;;  %v4897_v28 = vpop.f32.mrf.mxu1 }
 0x8ed   :  { %v10903_v58 = vrot.slane %v5167_v23, %v9511_v16  ;;  %v8819_v57 = vpop.f32.mrf.mxu0  ;;  %v5214_v55 = vrot.slane %v5200_v10, %v9511_v16  ;;  %v5215_v12 = vcombine.high %v5207_v27, %v5207_v27  ;;  %v5223_v1 = vrot.slane %v5207_v27, %v9511_v16 }
 0x8ee   :  { %v5409_v60 = vcombine.low %v5401_v53, %v5408_v7  ;;  %v5928_v30 = vpop.permute.xlu1 %5927  ;;  %v8838_v22 = vpop.f32.mrf.mxu1  ;;  %v4928_v38 = vmul.f32 %v9231_v62, %v4897_v28 }
 0x8ef   :  { %v5199_v2 = vcombine.high %v10903_v58, %v10903_v58  ;;  %8875 = vmatpush3.xpose.msk.msra.mxu1 %vm973_vm3, %v5928_v30  ;;  %v5216_v42 = vcombine.high %v5214_v55, %v5214_v55  ;;  %v5230_v31 = vrot.slane %v5214_v55, %v9511_v16  ;;  %v5237_v46 = vrot.slane %v5215_v12, %v9511_v16  ;;  %v6054_v7 = vpop.permute.xlu0 %6053 }
 0x8f0   :  { %v5245_v15 = vcombine.high %v5223_v1, %v5223_v1  ;;  %5911 = vrot.lane.b32.xlu1 %v9617_v56, %s9329_s7  ;;  %v4902_v26 = vpop.f32.mrf.mxu1  ;;  %8848 = vmatmul.mubr.msk.f32.vlgmr.msra.gmra.mxu0 %vm973_vm3, %v5409_v60  ;;  %v5249_v29 = vcombine.high %v4928_v38, %v4928_v38  ;;  %v5256_v61 = vrot.slane %v4928_v38, %v9511_v16 }
 0x8f1   :  { %v5606_v5 = vcombine.low %v5199_v2, %v5223_v1  ;;  %v5244_v39 = vrot.slane %v5216_v42, %v9511_v16  ;;  %v5246_v59 = vcombine.high %v5230_v31, %v5230_v31  ;;  %v5247_v18 = vcombine.high %v5237_v46, %v5237_v46  ;;  %8900 = vmatpush3.xpose.msk.msra.mxu0 %vm973_vm3, %v6058_v9 }
 0x8f2   :  { %v5607_v11 = vcombine.low %v5237_v46, %v5245_v15  ;;  %v8841_v48 = vpop.f32.mrf.mxu1  ;;  %v4929_v56 = vmul.f32 %v9233_v3, %v4902_v26  ;;  %8901 = vmatprep.subr.mxu0 %v11712_v20  ;;  %v5263_v9 = vrot.slane %v5249_v29, %v9511_v16  ;;  %v5264_v10 = vcombine.high %v5256_v61, %v5256_v61 }
 0x8f3   :  { %v5616_v37 = vrot.slane %v5606_v5, %v9511_v16  ;;  %v5608_v51 = vcombine.low %v5247_v18, %v5230_v31  ;;  %v5609_v8 = vcombine.low %v5244_v39, %v5246_v59  ;;  %v5248_v53 = vcombine.high %v5244_v39, %v5244_v39  ;;  %8876 = vmatprep.subr.mxu1 %v11712_v20  ;;  %v6052_v59 = vpop.permute.xlu0 %6051 }
 0x8f4   :  { %v5623_v23 = vrot.slane %v5607_v11, %v9511_v16  ;;  %5913 = vrot.lane.b32.xlu1 %v9597_v34, %s9329_s7  ;;  %v5272_v27 = vrot.slane %v5256_v61, %v9511_v16  ;;  %v5298_v28 = vcombine.high %v4929_v56, %v4929_v56  ;;  %v5305_v12 = vrot.slane %v4929_v56, %v9511_v16 }
 0x8f5   :  { %v5630_v57 = vrot.slane %v5608_v51, %v9511_v16  ;;  %v5637_v60 = vrot.slane %v5609_v8, %v9511_v16  ;;  %8902 = vmatpush3.xpose.msk.msra.mxu0 %vm973_vm3, %v6056_v36  ;;  %v5265_v1 = vcombine.high %v5263_v9, %v5263_v9  ;;  %v5279_v34 = vrot.slane %v5263_v9, %v9511_v16 }
 0x8f6   :  { %v5638_v55 = vcombine.low %v5616_v37, %v5623_v23  ;;  %v5286_v30 = vrot.slane %v5264_v10, %v9511_v16  ;;  %v5294_v22 = vcombine.high %v5272_v27, %v5272_v27  ;;  %8903 = vmatprep.subr.mxu0 %v11712_v20  ;;  %v5655_v2 = vcombine.low %v5248_v53, %v5272_v27 }
 0x8f7   :  { %v5312_v62 = vrot.slane %v5298_v28, %v9511_v16  ;;  %v5313_v42 = vcombine.high %v5305_v12, %v5305_v12  ;;  %v5321_v31 = vrot.slane %v5305_v12, %v9511_v16  ;;  %v5293_v46 = vrot.slane %v5265_v1, %v9511_v16  ;;  %8850 = vmatprep.mubr.msk.f32.mxu0 %vm9317_vm2, %v11712_v20 }
 0x8f8   :  { %5915 = vrot.lane.b32.xlu1 %v9589_v19, %s9329_s7  ;;  %v5295_v36 = vcombine.high %v5279_v34, %v5279_v34  ;;  %v5296_v15 = vcombine.high %v5286_v30, %v5286_v30  ;;  %v5656_v26 = vcombine.low %v5286_v30, %v5294_v22  ;;  %v5665_v5 = vrot.slane %v5655_v2, %v9511_v16  ;;  %v6050_v2 = vpop.permute.xlu0 %6049 }
 0x8f9   :  { %v5314_v38 = vcombine.high %v5312_v62, %v5312_v62  ;;  %v5328_v3 = vrot.slane %v5312_v62, %v9511_v16  ;;  %v5335_v39 = vrot.slane %v5313_v42, %v9511_v16  ;;  %8904 = vmatpush3.xpose.msk.msra.mxu0 %vm973_vm3, %v6054_v7  ;;  %v5297_v37 = vcombine.high %v5293_v46, %v5293_v46 }
 0x8fa   :  { %v5657_v18 = vcombine.low %v5296_v15, %v5279_v34  ;;  %v5658_v11 = vcombine.low %v5293_v46, %v5295_v36  ;;  %v5672_v48 = vrot.slane %v5656_v26, %v9511_v16  ;;  %8905 = vmatprep.subr.mxu0 %v11712_v20  ;;  %v5343_v61 = vcombine.high %v5321_v31, %v5321_v31 }
 0x8fb   :  { %v5342_v29 = vrot.slane %v5314_v38, %v9511_v16  ;;  %v5344_v56 = vcombine.high %v5328_v3, %v5328_v3  ;;  %v5345_v51 = vcombine.high %v5335_v39, %v5335_v39  ;;  %v5704_v7 = vcombine.low %v5297_v37, %v5321_v31 }
 0x8fc   :  { %6039 = vrot.lane.b32.xlu1 %v9669_v41, %s9329_s7  ;;  %v5679_v8 = vrot.slane %v5657_v18, %v9511_v16  ;;  %v5686_v23 = vrot.slane %v5658_v11, %v9511_v16  ;;  %v5687_v53 = vcombine.low %v5665_v5, %v5672_v48  ;;  %v5705_v9 = vcombine.low %v5335_v39, %v5343_v61 }
 0x8fd   :  { %v5706_v10 = vcombine.low %v5345_v51, %v5328_v3  ;;  %v5707_v27 = vcombine.low %v5342_v29, %v5344_v56  ;;  %8906 = vmatpush3.xpose.msk.msra.mxu0 %vm973_vm3, %v6052_v59  ;;  %v5714_v28 = vrot.slane %v5704_v7, %v9511_v16  ;;  %v5639_v12 = vcombine.low %v5630_v57, %v5637_v60  ;;  %v9235_v3 = vpop.eup %9234 }
 0x8fe   :  { %8907 = vmatprep.subr.mxu0 %v11712_v20  ;;  %v5721_v1 = vrot.slane %v5705_v9, %v9511_v16  ;;  %v5688_v22 = vcombine.low %v5679_v8, %v5686_v23  ;;  %v5646_v62 = vrot.slane %v5638_v55, %v9511_v16  ;;  %v5695_v57 = vrot.slane %v5687_v53, %v9511_v16 }
 0x8ff   :  { %v5728_v34 = vrot.slane %v5706_v10, %v9511_v16  ;;  %v5735_v30 = vrot.slane %v5707_v27, %v9511_v16  ;;  %v5653_v42 = vrot.slane %v5639_v12, %v9511_v16  ;;  %v5346_v37 = vcombine.high %v5342_v29, %v5342_v29 }
 0x900   :  { %6041 = vrot.lane.b32.xlu1 %v9674_v50, %s9329_s7  ;;  %v5736_v31 = vcombine.low %v5714_v28, %v5721_v1  ;;  %v5702_v60 = vrot.slane %v5688_v22, %v9511_v16 }
 0x901   :  { %8908 = vmatpush3.xpose.msk.msra.mxu0 %vm973_vm3, %v6050_v2  ;;  %v5737_v46 = vcombine.low %v5728_v34, %v5735_v30  ;;  %v10964_v36 = vcombine.low %v5646_v62, %v5653_v42 }
 0x902   :  { %8949 = vmatprep.subr.mxu0 %v11712_v20  ;;  %v10969_v15 = vcombine.low %v5695_v57, %v5702_v60  ;;  %v5744_v55 = vrot.slane %v5736_v31, %v9511_v16 }
 0x903   :  { %v5751_v26 = vrot.slane %v5737_v46, %v9511_v16 }
 0x904   :  { %6045 = vrot.lane.b32.xlu1 %v9665_v6, %s9329_s7 }
 0x905   :  { %v10973_v5 = vcombine.low %v5744_v55, %v5751_v26 }
 0x908   :  { %6265 = vrot.lane.b32.xlu1 %v9589_v19, %s9330_s8 }
 0x90c   :  { %6259 = vrot.lane.b32.xlu1 %v9587_v17, %s9330_s8 }
 0x91f   :  { %v4644_v38 = vpop.xlane.xlu1 %4643 }
 0x920   :  { %9236 = vrcp.f32 %v4644_v38  ;;  %v4907_v39 = vpop.f32.mrf.mxu1 }
 0x921   :  { %v4930_v59 = vmul.f32 %v9235_v3, %v4907_v39 }
 0x922   :  { %v8844_v18 = vpop.f32.mrf.mxu1 }
 0x923   :  { %v5353_v11 = vrot.slane %v4930_v59, %v9511_v16  ;;  %v4647_v48 = vpop.xlane.xlu1 %4646 }
 0x924   :  { %9238 = vrcp.f32 %v4647_v48 }
 0x925   :  { %v5360_v61 = vrot.slane %v5353_v11, %v9511_v16 }
 0x927   :  { %v10982_v56 = vcombine.low %v5346_v37, %v5360_v61  ;;  %v4650_v19 = vpop.xlane.xlu1 %4649 }
 0x928   :  { %9240 = vrcp.f32 %v4650_v19 }
 0x92b   :  { %v5926_v17 = vpop.permute.xlu1 %5925 }
 0x92c   :  { %8877 = vmatpush3.xpose.msk.msra.mxu1 %vm973_vm3, %v5926_v17 }
 0x92d   :  { %v9237_v44 = vpop.eup %9236  ;;  %8878 = vmatprep.subr.mxu1 %v11712_v20 }
 0x92e   :  { %v4922_v51 = vmul.f32 %v9237_v44, %v10863_v13 }
 0x930   :  { %v4990_v8 = vcombine.high %v4922_v51, %v4922_v51  ;;  %v4997_v23 = vrot.slane %v4922_v51, %v9511_v16 }
 0x931   :  { %v9239_v53 = vpop.eup %9238 }
 0x932   :  { %v5004_v29 = vrot.slane %v4990_v8, %v9511_v16  ;;  %v5005_v7 = vcombine.high %v4997_v23, %v4997_v23  ;;  %v4923_v9 = vmul.f32 %v9239_v53, %v10870_v4  ;;  %v5013_v1 = vrot.slane %v4997_v23, %v9511_v16 }
 0x934   :  { %v5039_v10 = vcombine.high %v4923_v9, %v4923_v9  ;;  %v5046_v27 = vrot.slane %v4923_v9, %v9511_v16  ;;  %v5006_v28 = vcombine.high %v5004_v29, %v5004_v29  ;;  %v5027_v34 = vrot.slane %v5005_v7, %v9511_v16 }
 0x935   :  { %v9241_v12 = vpop.eup %9240  ;;  %v5020_v22 = vrot.slane %v5004_v29, %v9511_v16 }
 0x936   :  { %v5053_v13 = vrot.slane %v5039_v10, %v9511_v16  ;;  %v4924_v30 = vmul.f32 %v9241_v12, %v10882_v54  ;;  %v5034_v2 = vrot.slane %v5006_v28, %v9511_v16  ;;  %v5054_v62 = vcombine.high %v5046_v27, %v5046_v27 }
 0x937   :  { %v5410_v42 = vcombine.low %v5013_v1, %v5027_v34  ;;  %v8127_v4 = vcombine.high %v5013_v1, %v5027_v34  ;;  %v5062_v31 = vrot.slane %v5046_v27, %v9511_v16 }
 0x938   :  { %v5088_v57 = vcombine.high %v4924_v30, %v4924_v30  ;;  %v5095_v60 = vrot.slane %v4924_v30, %v9511_v16  ;;  %v5412_v46 = vcombine.low %v5020_v22, %v5034_v2  ;;  %v8128_v55 = vcombine.high %v5020_v22, %v5034_v2 }
 0x939   :  { %v5420_v26 = vrot.slane %v5410_v42, %v9511_v16  ;;  %v5427_v38 = vrot.slane %v8127_v4, %v9511_v16  ;;  %v5055_v3 = vcombine.high %v5053_v13, %v5053_v13  ;;  %v5069_v54 = vrot.slane %v5053_v13, %v9511_v16 }
 0x93a   :  { %v5102_v39 = vrot.slane %v5088_v57, %v9511_v16  ;;  %v5103_v59 = vcombine.high %v5095_v60, %v5095_v60  ;;  %v5434_v18 = vrot.slane %v5412_v46, %v9511_v16  ;;  %v5441_v11 = vrot.slane %v8128_v55, %v9511_v16 }
 0x93b   :  { %v5442_v48 = vcombine.low %v5420_v26, %v5427_v38  ;;  %v5076_v37 = vrot.slane %v5054_v62, %v9511_v16  ;;  %v5083_v61 = vrot.slane %v5055_v3, %v9511_v16  ;;  %v5111_v19 = vrot.slane %v5095_v60, %v9511_v16 }
 0x93c   :  { %v5443_v17 = vcombine.low %v5434_v18, %v5441_v11  ;;  %v5104_v44 = vcombine.high %v5102_v39, %v5102_v39  ;;  %v5118_v51 = vrot.slane %v5102_v39, %v9511_v16  ;;  %v5125_v8 = vrot.slane %v5103_v59, %v9511_v16  ;;  %v5918_v11 = vpop.permute.xlu0 %5917 }
 0x93d   :  { %v5450_v23 = vrot.slane %v5442_v48, %v9511_v16  ;;  %v5459_v53 = vcombine.low %v5062_v31, %v5076_v37  ;;  %v8129_v29 = vcombine.high %v5062_v31, %v5076_v37  ;;  %v5461_v7 = vcombine.low %v5069_v54, %v5083_v61 }
 0x93e   :  { %v5457_v9 = vrot.slane %v5443_v17, %v9511_v16  ;;  %v8130_v10 = vcombine.high %v5069_v54, %v5083_v61  ;;  %v5132_v27 = vrot.slane %v5104_v44, %v9511_v16  ;;  %v5508_v28 = vcombine.low %v5111_v19, %v5125_v8 }
 0x93f   :  { %v5469_v12 = vrot.slane %v5459_v53, %v9511_v16  ;;  %v5476_v1 = vrot.slane %v8129_v29, %v9511_v16  ;;  %v5483_v34 = vrot.slane %v5461_v7, %v9511_v16  ;;  %v8131_v13 = vcombine.high %v5111_v19, %v5125_v8 }
 0x940   :  { %v5458_v30 = vcombine.low %v5450_v23, %v5457_v9  ;;  %v5490_v22 = vrot.slane %v8130_v10, %v9511_v16  ;;  %v5510_v2 = vcombine.low %v5118_v51, %v5132_v27  ;;  %v8132_v62 = vcombine.high %v5118_v51, %v5132_v27  ;;  %v11036_v19 = vpop.permute.xlu0 %6043 }
 0x941   :  { %v5491_v42 = vcombine.low %v5469_v12, %v5476_v1  ;;  %v5518_v4 = vrot.slane %v5508_v28, %v9511_v16  ;;  %v5525_v31 = vrot.slane %v8131_v13, %v9511_v16  ;;  %v5158_v48 = vrot.slane %v10876_v63, %v9511_v16 }
 0x942   :  { %8851 = vmatmul.mubr.msk.f32.gmra.mxu0 %vm973_vm3, %v5458_v30  ;;  %v5492_v57 = vcombine.low %v5483_v34, %v5490_v22  ;;  %v5532_v60 = vrot.slane %v5510_v2, %v9511_v16  ;;  %v5539_v46 = vrot.slane %v8132_v62, %v9511_v16  ;;  %v5181_v44 = vrot.slane %v10889_v25, %v9511_v16 }
 0x943   :  { %8853 = vmatprep.mubr.msk.f32.mxu0 %vm9317_vm2, %v11712_v20  ;;  %v5540_v55 = vcombine.low %v5518_v4, %v5525_v31  ;;  %v5499_v26 = vrot.slane %v5491_v42, %v9511_v16  ;;  %v5166_v61 = vcombine.high %v5158_v48, %v5158_v48  ;;  %v5174_v23 = vrot.slane %v5158_v48, %v9511_v16 }
 0x944   :  { %v5506_v38 = vrot.slane %v5492_v57, %v9511_v16  ;;  %v5541_v3 = vcombine.low %v5532_v60, %v5539_v46  ;;  %v11045_v63 = vpop.permute.xlu0 %6047  ;;  %v5197_v53 = vcombine.high %v5181_v44, %v5181_v44 }
 0x945   :  { %v5548_v39 = vrot.slane %v5540_v55, %v9511_v16  ;;  %v5188_v51 = vrot.slane %v5166_v61, %v9511_v16  ;;  %v5196_v25 = vcombine.high %v5174_v23, %v5174_v23 }
 0x946   :  { %v5507_v54 = vcombine.low %v5499_v26, %v5506_v38  ;;  %v5555_v59 = vrot.slane %v5541_v3, %v9511_v16  ;;  %v5560_v27 = vcombine.low %v10903_v58, %v5197_v53 }
 0x947   :  { %v5198_v29 = vcombine.high %v5188_v51, %v5188_v51  ;;  %v5558_v34 = vcombine.low %v5188_v51, %v5196_v25 }
 0x948   :  { %8854 = vmatmul.mubr.msk.f32.gmra.mxu0 %vm973_vm3, %v5507_v54  ;;  %v5556_v18 = vcombine.low %v5548_v39, %v5555_v59  ;;  %v6268_v28 = vpop.permute.xlu0 %6267  ;;  %v5588_v58 = vrot.slane %v5560_v27, %v9511_v16  ;;  %v5760_v39 = vrot.slane %v10982_v56, %v9511_v16 }
 0x949   :  { %8856 = vmatprep.mubr.msk.f32.mxu0 %vm9317_vm2, %v11712_v20  ;;  %v5559_v10 = vcombine.low %v5198_v29, %v5181_v44  ;;  %v5574_v2 = vrot.slane %v5558_v34, %v9511_v16 }
 0x94b   :  { %v5581_v13 = vrot.slane %v5559_v10, %v9511_v16 }
 0x94c   :  { %8857 = vmatmul.mubr.msk.f32.gmra.mxu0 %vm973_vm3, %v5556_v18  ;;  %v6264_v3 = vpop.permute.xlu0 %6263 }
 0x94d   :  { %8859 = vmatprep.mubr.msk.f32.mxu0 %vm9317_vm2, %v11712_v20  ;;  %v5590_v42 = vcombine.low %v5581_v13, %v5588_v58 }
 0x94f   :  { %v5604_v60 = vrot.slane %v5590_v42, %v9511_v16 }
 0x95c   :  { %v4653_v37 = vpop.xlane.xlu1 %4652 }
 0x95d   :  { %9242 = vrcp.f32 %v4653_v37 }
 0x960   :  { %v5924_v17 = vpop.permute.xlu1 %5923 }
 0x961   :  { %8879 = vmatpush3.xpose.msk.msra.mxu1 %vm973_vm3, %v5924_v17 }
 0x962   :  { %8880 = vmatprep.subr.mxu1 %v11712_v20 }
 0x964   :  { %v5920_v8 = vpop.permute.xlu1 %5919 }
 0x965   :  { %8881 = vmatpush3.xpose.msk.msra.mxu1 %vm973_vm3, %v10868_v24 }
 0x966   :  { %8882 = vmatprep.subr.mxu1 %v11712_v20 }
 0x968   :  { %v5910_v7 = vpop.permute.xlu1 %5909 }
 0x969   :  { %8883 = vmatpush3.xpose.msk.msra.mxu1 %vm973_vm3, %v5920_v8 }
 0x96a   :  { %v9243_v9 = vpop.eup %9242  ;;  %8924 = vmatprep.subr.mxu1 %v11712_v20 }
 0x96b   :  { %v4925_v24 = vmul.f32 %v9243_v9, %v10895_v45 }
 0x96c   :  { %v5912_v12 = vpop.permute.xlu1 %5911  ;;  %8885 = vmatmul.mubr.msk.f32.vlgmr.msra.gmra.mxu1 %vm973_vm3, %v5910_v7 }
 0x96d   :  { %v5143_v1 = vrot.slane %v4925_v24, %v9511_v16  ;;  %8925 = vmatpush3.msk.msra.mxu1 %vm1535_vm4, %v6268_v28  ;;  %8887 = vmatprep.mubr.msk.f32.mxu1 %vm9317_vm2, %v11712_v20 }
 0x96e   :  { %8926 = vmatprep.subr.mxu1 %v11712_v20 }
 0x96f   :  { %v5150_v45 = vrot.slane %v5143_v1, %v9511_v16 }
 0x970   :  { %v5914_v30 = vpop.permute.xlu1 %5913  ;;  %8888 = vmatmul.mubr.msk.f32.gmra.mxu1 %vm973_vm3, %v5912_v12 }
 0x971   :  { %8890 = vmatprep.mubr.msk.f32.mxu1 %vm9317_vm2, %v11712_v20  ;;  %v5557_v22 = vcombine.low %v5150_v45, %v5174_v23 }
 0x973   :  { %v5567_v62 = vrot.slane %v5557_v22, %v9511_v16 }
 0x974   :  { %v5916_v4 = vpop.permute.xlu1 %5915  ;;  %8891 = vmatmul.mubr.msk.f32.gmra.mxu1 %vm973_vm3, %v5914_v30 }
 0x975   :  { %8893 = vmatprep.mubr.msk.f32.mxu1 %vm9317_vm2, %v11712_v20  ;;  %v5589_v31 = vcombine.low %v5567_v62, %v5574_v2 }
 0x977   :  { %v5597_v57 = vrot.slane %v5589_v31, %v9511_v16  ;;  %v4316_v31 = vadd.f32 %v10741_v32, %v10760_v21 }
 0x978   :  { %v6040_v46 = vpop.permute.xlu1 %6039  ;;  %8894 = vmatmul.mubr.msk.f32.gmra.mxu1 %vm973_vm3, %v5916_v4 }
 0x979   :  { %v5605_v55 = vcombine.low %v5597_v57, %v5604_v60  ;;  %8896 = vmatprep.mubr.msk.f32.mxu1 %vm9317_vm2, %v11712_v20 }
 0x97b   :  { %8860 = vmatmul.mubr.msk.f32.gmra.mxu0 %vm973_vm3, %v5605_v55 }
 0x97c   :  { %v6042_v26 = vpop.permute.xlu1 %6041  ;;  %8897 = vmatmul.mubr.msk.f32.gmra.mxu1 %vm973_vm3, %v5918_v11  ;;  %8862 = vmatprep.mubr.msk.f32.mxu0 %vm9317_vm2, %v11712_v20 }
 0x97d   :  { %8934 = vmatprep.mubr.msk.f32.mxu1 %vm9317_vm2, %v11712_v20 }
 0x97f   :  { %8863 = vmatmul.mubr.msk.f32.gmra.mxu0 %vm973_vm3, %v10964_v36  ;;  %v6262_v36 = vpop.permute.xlu0 %6261 }
 0x980   :  { %v6046_v38 = vpop.permute.xlu1 %6045  ;;  %8865 = vmatprep.mubr.msk.f32.mxu0 %vm9317_vm2, %v11712_v20 }
 0x983   :  { %8866 = vmatmul.mubr.msk.f32.gmra.mxu0 %vm973_vm3, %v10969_v15  ;;  %v5767_v15 = vrot.slane %v5760_v39, %v9511_v16 }
 0x984   :  { %v6266_v54 = vpop.permute.xlu1 %6265  ;;  %8868 = vmatprep.mubr.msk.f32.mxu0 %vm9317_vm2, %v11712_v20 }
 0x985   :  { %8927 = vmatpush3.msra.mxu1 %v6266_v54 }
 0x986   :  { %8928 = vmatprep.subr.mxu1 %v11712_v20 }
 0x987   :  { %8869 = vmatmul.mubr.msk.f32.gmra.mxu0 %vm973_vm3, %v10973_v5  ;;  %8929 = vmatpush3.msra.mxu1 %v6264_v3  ;;  %v6389_v5 = vpop.permute.xlu0 %6388 }
 0x988   :  { %8930 = vmatprep.subr.mxu1 %v11712_v20  ;;  %8871 = vmatprep.mubr.msk.f32.mxu0 %vm9317_vm2, %v11712_v20  ;;  %v6260_v59 = vpop.permute.xlu1 %6259 }
 0x989   :  { %8931 = vmatpush3.msra.mxu1 %v6262_v36 }
 0x98a   :  { %8932 = vmatprep.subr.mxu1 %v11712_v20 }
 0x98b   :  { %8872 = vmatmul.mubr.msk.f32.gmra.mxu0 %vm973_vm3, %v5767_v15  ;;  %8933 = vmatpush3.msra.mxu1 %v6260_v59 }
 0x98c   :  { %8909 = vmatprep.mubr.msk.f32.mxu0 %vm9317_vm2, %v11712_v20  ;;  %8974 = vmatprep.subr.mxu1 %v11712_v20 }
 0x98f   :  { %8910 = vmatmul.mubr.msk.f32.vlgmr.msra.gmra.mxu0 %vm973_vm3, %v6040_v46 }
 0x990   :  { %8950 = vmatpush3.msk.msra.mxu0 %vm1535_vm4, %v6389_v5  ;;  %8912 = vmatprep.mubr.msk.f32.mxu0 %vm9317_vm2, %v11712_v20 }
 0x991   :  { %8951 = vmatprep.subr.mxu0 %v11712_v20 }
 0x993   :  { %8913 = vmatmul.mubr.msk.f32.gmra.mxu0 %vm973_vm3, %v6042_v26 }
 0x994   :  { %8915 = vmatprep.mubr.msk.f32.mxu0 %vm9317_vm2, %v11712_v20 }
 0x997   :  { %8916 = vmatmul.mubr.msk.f32.gmra.mxu0 %vm973_vm3, %v11036_v19 }
 0x998   :  { %8918 = vmatprep.mubr.msk.f32.mxu0 %vm9317_vm2, %v11712_v20 }
 0x99b   :  { %8919 = vmatmul.mubr.msk.f32.gmra.mxu0 %vm973_vm3, %v6046_v38 }
 0x99c   :  { %8921 = vmatprep.mubr.msk.f32.mxu0 %vm9317_vm2, %v11712_v20 }
 0x99f   :  { %8922 = vmatmul.mubr.msk.f32.gmra.mxu0 %vm973_vm3, %v11045_v63 }
 0x9a0   :  { %8959 = vmatprep.mubr.msk.f32.mxu0 %vm9317_vm2, %v11712_v20 }
 0x9b0   :  { %v5856_v56 = vpop.f32.mrf.mxu0 }
 0x9b1   :  { %v11123_v18 = vadd.f32 %v5856_v56, %v10733_v33 }
 0x9b2   :  { %v8849_v11 = vpop.f32.mrf.mxu0 }
 0xa02   :  { %v5861_v48 = vpop.f32.mrf.mxu0 }
 0xa03   :  { %v11126_v37 = vadd.f32 %v5861_v48, %v10735_v35 }
 0xa04   :  { %v8852_v61 = vpop.f32.mrf.mxu0 }
 0xa08   :  { %v5866_v19 = vpop.f32.mrf.mxu0 }
 0xa09   :  { %v11129_v17 = vadd.f32 %v5866_v19, %v10737_v0 }
 0xa0a   :  { %v8855_v44 = vpop.f32.mrf.mxu0 }
 0xa0c   :  { %v5871_v51 = vpop.f32.mrf.mxu0 }
 0xa0d   :  { %v11132_v8 = vadd.f32 %v5871_v51, %v10739_v52 }
 0xa0e   :  { %v8858_v63 = vpop.f32.mrf.mxu0 }
 0xa2c   :  { %v6015_v23 = vpop.f32.mrf.mxu1 }
 0xa2d   :  { %v6169_v33 = vsel %vm1414_vm5, %v6015_v23, -inf }
 0xa2e   :  { %6170 = vmax.xlane.f32.xlu1 %v6169_v33  ;;  %v8886_v53 = vpop.f32.mrf.mxu1 }
 0xa30   :  { %v6020_v29 = vpop.f32.mrf.mxu1 }
 0xa31   :  { %v6172_v35 = vsel %vm1414_vm5, %v6020_v29, -inf }
 0xa32   :  { %6173 = vmax.xlane.f32.xlu0 %v6172_v35  ;;  %v8889_v7 = vpop.f32.mrf.mxu1 }
 0xa34   :  { %v6025_v9 = vpop.f32.mrf.mxu1 }
 0xa35   :  { %v6175_v0 = vsel %vm1414_vm5, %v6025_v9, -inf }
 0xa36   :  { %6176 = vmax.xlane.f32.xlu0 %v6175_v0  ;;  %v8892_v25 = vpop.f32.mrf.mxu1 }
 0xa38   :  { %v6030_v10 = vpop.f32.mrf.mxu1 }
 0xa39   :  { %v6178_v52 = vsel %vm1414_vm5, %v6030_v10, -inf }
 0xa3a   :  { %6179 = vmax.xlane.f32.xlu0 %v6178_v52  ;;  %v8895_v27 = vpop.f32.mrf.mxu1 }
 0xa3b   :  { %v5876_v24 = vpop.f32.mrf.mxu0 }
 0xa3c   :  { %v11139_v28 = vadd.f32 %v5876_v24, %v10743_v47  ;;  %v6035_v12 = vpop.f32.mrf.mxu1 }
 0xa3d   :  { %v8861_v1 = vpop.f32.mrf.mxu0  ;;  %v6181_v34 = vsel %vm1427_vm6, %v6035_v12, -inf }
 0xa3e   :  { %6182 = vmax.xlane.f32.xlu0 %v6181_v34  ;;  %v8898_v13 = vpop.f32.mrf.mxu1 }
 0xa3f   :  { %v5881_v58 = vpop.f32.mrf.mxu0 }
 0xa40   :  { %v11143_v45 = vadd.f32 %v5881_v58, %v10746_v14 }
 0xa41   :  { %v8864_v30 = vpop.f32.mrf.mxu0 }
 0xa43   :  { %v5886_v22 = vpop.f32.mrf.mxu0 }
 0xa44   :  { %v11146_v2 = vadd.f32 %v5886_v22, %v10752_v49 }
 0xa45   :  { %v8867_v62 = vpop.f32.mrf.mxu0 }
 0xa47   :  { %v5891_v42 = vpop.f32.mrf.mxu0 }
 0xa48   :  { %v11149_v47 = vadd.f32 %v5891_v42, %v10755_v43 }
 0xa49   :  { %v8870_v4 = vpop.f32.mrf.mxu0 }
 0xa4b   :  { %v5896_v57 = vpop.f32.mrf.mxu0 }
 0xa4c   :  { %v11153_v60 = vadd.f32 %v5896_v57, %v4316_v31 }
 0xa4d   :  { %v8873_v46 = vpop.f32.mrf.mxu0 }
 0xa4f   :  { %v11155_v14 = vpop.f32.mrf.mxu0 }
 0xa50   :  { %v6184_v55 = vsel %vm1414_vm5, %v11155_v14, -inf }
 0xa51   :  { %6185 = vmax.xlane.f32.xlu1 %v6184_v55  ;;  %v8911_v49 = vpop.f32.mrf.mxu0 }
 0xa53   :  { %v11159_v26 = vpop.f32.mrf.mxu0 }
 0xa54   :  { %v6187_v43 = vsel %vm1414_vm5, %v11159_v26, -inf }
 0xa55   :  { %6188 = vmax.xlane.f32.xlu1 %v6187_v43  ;;  %v8914_v38 = vpop.f32.mrf.mxu0 }
 0xa57   :  { %v11163_v3 = vpop.f32.mrf.mxu0 }
 0xa58   :  { %v6190_v32 = vsel %vm1414_vm5, %v11163_v3, -inf }
 0xa59   :  { %6191 = vmax.xlane.f32.xlu1 %v6190_v32  ;;  %v8917_v21 = vpop.f32.mrf.mxu0 }
 0xa5b   :  { %v11167_v54 = vpop.f32.mrf.mxu0 }
 0xa5c   :  { %v6193_v39 = vsel %vm1414_vm5, %v11167_v54, -inf }
 0xa5d   :  { %6194 = vmax.xlane.f32.xlu0 %v6193_v39  ;;  %v8920_v36 = vpop.f32.mrf.mxu0 }
 0xa5e   :  { %v9305_v36 = vld [vmem:[%s11703_s1 + $0x30] sm:$0xff] }
 0xa5f   :  { %v11171_v15 = vpop.f32.mrf.mxu0 }
 0xa60   :  { %v6196_v5 = vsel %vm1427_vm6, %v11171_v15, -inf }
 0xa61   :  { %v8923_v59 = vpop.f32.mrf.mxu0 }
 0xa6a   :  { %6386 = vrot.lane.b32.xlu1 %v9665_v6, %s9330_s8 }
 0xa73   :  { %6384 = vrot.lane.b32.xlu0 %v9659_v40, %s9330_s8 }
 0xa77   :  { %6382 = vrot.lane.b32.xlu0 %v9674_v50, %s9330_s8 }
 0xa7b   :  { %6380 = vrot.lane.b32.xlu0 %v9669_v41, %s9330_s8 }
 0xa8e   :  { %6197 = vmax.xlane.f32.xlu1 %v6196_v5 }
 0xab7   :  { %v6171_v56 = vpop.xlane.xlu1 %6170 }
 0xab8   :  { %v6199_v11 = vsub.f32 %v6015_v23, %v6171_v56 }
 0xaba   :  { %v6209_v48 = vmul.f32 1.442695, %v6199_v11 }
 0xabb   :  { %v6174_v61 = vpop.xlane.xlu0 %6173 }
 0xabc   :  { %9244 = vpow2.f32 %v6209_v48  ;;  %v6200_v19 = vsub.f32 %v6020_v29, %v6174_v61 }
 0xabe   :  { %v6211_v6 = vmul.f32 1.442695, %v6200_v19 }
 0xabf   :  { %v6177_v44 = vpop.xlane.xlu0 %6176 }
 0xac0   :  { %9246 = vpow2.f32 %v6211_v6  ;;  %v6201_v40 = vsub.f32 %v6025_v9, %v6177_v44 }
 0xac2   :  { %v6213_v51 = vmul.f32 1.442695, %v6201_v40 }
 0xac3   :  { %v6180_v63 = vpop.xlane.xlu0 %6179 }
 0xac4   :  { %9248 = vpow2.f32 %v6213_v51  ;;  %v6202_v50 = vsub.f32 %v6030_v10, %v6180_v63 }
 0xac6   :  { %v6215_v33 = vmul.f32 1.442695, %v6202_v50 }
 0xac7   :  { %v6183_v41 = vpop.xlane.xlu0 %6182 }
 0xac8   :  { %9250 = vpow2.f32 %v6215_v33  ;;  %v6203_v53 = vsub.f32 %v6035_v12, %v6183_v41 }
 0xac9   :  { %v9245_v35 = vpop.eup %9244 }
 0xaca   :  { %v6217_v7 = vmul.f32 1.442695, %v6203_v53  ;;  %8935 = vmatmul.mubr.msk.f32.vlgmr.msra.gmra.mxu1 %vm1414_vm5, %v9245_v35  ;;  %v6229_v23 = vsel %vm1414_vm5, %v9245_v35, 0.0 }
 0xacb   :  { %6230 = vadd.xlane.f32.xlu0 %v6229_v23  ;;  %8937 = vmatprep.mubr.msk.f32.mxu1 %vm9317_vm2, %v11712_v20 }
 0xacc   :  { %9252 = vpow2.f32 %v6217_v7 }
 0xacd   :  { %v9247_v29 = vpop.eup %9246 }
 0xace   :  { %8938 = vmatmul.mubr.msk.f32.gmra.mxu1 %vm1414_vm5, %v9247_v29  ;;  %v6232_v9 = vsel %vm1414_vm5, %v9247_v29, 0.0 }
 0xacf   :  { %6233 = vadd.xlane.f32.xlu1 %v6232_v9  ;;  %8940 = vmatprep.mubr.msk.f32.mxu1 %vm9317_vm2, %v11712_v20 }
 0xad1   :  { %v9249_v0 = vpop.eup %9248 }
 0xad2   :  { %8941 = vmatmul.mubr.msk.f32.gmra.mxu1 %vm1414_vm5, %v9249_v0  ;;  %v6235_v25 = vsel %vm1414_vm5, %v9249_v0, 0.0 }
 0xad3   :  { %6236 = vadd.xlane.f32.xlu1 %v6235_v25  ;;  %8943 = vmatprep.mubr.msk.f32.mxu1 %vm9317_vm2, %v11712_v20 }
 0xad5   :  { %v9251_v10 = vpop.eup %9250 }
 0xad6   :  { %8944 = vmatmul.mubr.msk.f32.gmra.mxu1 %vm1414_vm5, %v9251_v10  ;;  %v6238_v52 = vsel %vm1414_vm5, %v9251_v10, 0.0 }
 0xad7   :  { %6239 = vadd.xlane.f32.xlu1 %v6238_v52  ;;  %8946 = vmatprep.mubr.msk.f32.mxu1 %vm9317_vm2, %v11712_v20 }
 0xad9   :  { %v9253_v27 = vpop.eup %9252 }
 0xada   :  { %v6186_v24 = vpop.xlane.xlu1 %6185  ;;  %8947 = vmatmul.mubr.msk.f32.gmra.mxu1 %vm1414_vm5, %v9253_v27  ;;  %v6241_v12 = vsel %vm1427_vm6, %v9253_v27, 0.0 }
 0xadb   :  { %v6204_v1 = vsub.f32 %v11155_v14, %v6186_v24  ;;  %6242 = vadd.xlane.f32.xlu0 %v6241_v12  ;;  %8976 = vmatprep.mubr.msk.f32.mxu1 %vm9317_vm2, %v11712_v20 }
 0xadd   :  { %v6219_v34 = vmul.f32 1.442695, %v6204_v1 }
 0xade   :  { %v6189_v13 = vpop.xlane.xlu1 %6188 }
 0xadf   :  { %9254 = vpow2.f32 %v6219_v34  ;;  %v6205_v58 = vsub.f32 %v11159_v26, %v6189_v13 }
 0xae1   :  { %v6221_v30 = vmul.f32 1.442695, %v6205_v58 }
 0xae2   :  { %v6192_v22 = vpop.xlane.xlu1 %6191 }
 0xae3   :  { %9256 = vpow2.f32 %v6221_v30  ;;  %v6206_v62 = vsub.f32 %v11163_v3, %v6192_v22 }
 0xae5   :  { %v6223_v42 = vmul.f32 1.442695, %v6206_v62 }
 0xae6   :  { %v6387_v4 = vpop.permute.xlu1 %6386  ;;  %v6195_v31 = vpop.xlane.xlu0 %6194 }
 0xae7   :  { %9258 = vpow2.f32 %v6223_v42  ;;  %v6207_v57 = vsub.f32 %v11167_v54, %v6195_v31  ;;  %8952 = vmatpush3.msra.mxu0 %v6387_v4 }
 0xae8   :  { %8953 = vmatprep.subr.mxu0 %v11712_v20 }
 0xae9   :  { %v6225_v46 = vmul.f32 1.442695, %v6207_v57 }
 0xaea   :  { %v6385_v14 = vpop.permute.xlu0 %6384 }
 0xaeb   :  { %9260 = vpow2.f32 %v6225_v46  ;;  %8954 = vmatpush3.msra.mxu0 %v6385_v14 }
 0xaec   :  { %v9255_v55 = vpop.eup %9254  ;;  %8955 = vmatprep.subr.mxu0 %v11712_v20 }
 0xaed   :  { %v6244_v49 = vsel %vm1414_vm5, %v9255_v55, 0.0 }
 0xaee   :  { %6245 = vadd.xlane.f32.xlu1 %v6244_v49  ;;  %v6383_v26 = vpop.permute.xlu0 %6382 }
 0xaef   :  { %8956 = vmatpush3.msra.mxu0 %v6383_v26 }
 0xaf0   :  { %v9257_v43 = vpop.eup %9256  ;;  %8957 = vmatprep.subr.mxu0 %v11712_v20 }
 0xaf1   :  { %v6247_v38 = vsel %vm1414_vm5, %v9257_v43, 0.0 }
 0xaf2   :  { %6248 = vadd.xlane.f32.xlu1 %v6247_v38  ;;  %v6381_v3 = vpop.permute.xlu0 %6380 }
 0xaf3   :  { %8958 = vmatpush3.msra.mxu0 %v6381_v3 }
 0xaf4   :  { %v9259_v32 = vpop.eup %9258  ;;  %8960 = vmatmul.mubr.msk.f32.vlgmr.msra.gmra.mxu0 %vm1414_vm5, %v9255_v55  ;;  %9003 = vmatprep.subr.mxu0 %v11712_v20 }
 0xaf5   :  { %v6250_v21 = vsel %vm1414_vm5, %v9259_v32, 0.0  ;;  %8962 = vmatprep.mubr.msk.f32.mxu0 %vm9317_vm2, %v11712_v20 }
 0xaf6   :  { %6251 = vadd.xlane.f32.xlu0 %v6250_v21 }
 0xaf8   :  { %v9261_v54 = vpop.eup %9260  ;;  %8963 = vmatmul.mubr.msk.f32.gmra.mxu0 %vm1414_vm5, %v9257_v43 }
 0xaf9   :  { %v6253_v39 = vsel %vm1414_vm5, %v9261_v54, 0.0  ;;  %8965 = vmatprep.mubr.msk.f32.mxu0 %vm9317_vm2, %v11712_v20 }
 0xafa   :  { %6254 = vadd.xlane.f32.xlu1 %v6253_v39 }
 0xafc   :  { %8966 = vmatmul.mubr.msk.f32.gmra.mxu0 %vm1414_vm5, %v9259_v32 }
 0xafd   :  { %8968 = vmatprep.mubr.msk.f32.mxu0 %vm9317_vm2, %v11712_v20 }
 0xb00   :  { %8969 = vmatmul.mubr.msk.f32.gmra.mxu0 %vm1414_vm5, %v9261_v54 }
 0xb01   :  { %8971 = vmatprep.mubr.msk.f32.mxu0 %vm9317_vm2, %v11712_v20 }
 0xb0b   :  { %7359 = vrot.lane.b32.xlu1 %v9305_v36, %s9324_s24 }
 0xb17   :  { %v6198_v59 = vpop.xlane.xlu1 %6197 }
 0xb18   :  { %v6208_v5 = vsub.f32 %v11171_v15, %v6198_v59 }
 0xb1a   :  { %v6227_v56 = vmul.f32 1.442695, %v6208_v5 }
 0xb1c   :  { %9262 = vpow2.f32 %v6227_v56 }
 0xb29   :  { %v9263_v11 = vpop.eup %9262 }
 0xb2a   :  { %8972 = vmatmul.mubr.msk.f32.gmra.mxu0 %vm1414_vm5, %v9263_v11  ;;  %v6256_v48 = vsel %vm1427_vm6, %v9263_v11, 0.0 }
 0xb2b   :  { %6257 = vadd.xlane.f32.xlu0 %v6256_v48  ;;  %9011 = vmatprep.mubr.msk.f32.mxu0 %vm9317_vm2, %v11712_v20 }
 0xb54   :  { %v6231_v40 = vpop.xlane.xlu0 %6230 }
 0xb55   :  { %9264 = vrcp.f32 %v6231_v40 }
 0xb58   :  { %v6234_v61 = vpop.xlane.xlu1 %6233 }
 0xb59   :  { %9266 = vrcp.f32 %v6234_v61 }
 0xb5c   :  { %v6237_v19 = vpop.xlane.xlu1 %6236 }
 0xb5d   :  { %9268 = vrcp.f32 %v6237_v19 }
 0xb60   :  { %v6240_v6 = vpop.xlane.xlu1 %6239 }
 0xb61   :  { %9270 = vrcp.f32 %v6240_v6 }
 0xb62   :  { %v9265_v50 = vpop.eup %9264 }
 0xb66   :  { %v9267_v23 = vpop.eup %9266 }
 0xb6a   :  { %v9269_v58 = vpop.eup %9268 }
 0xb77   :  { %v11236_v44 = vpop.xlane.xlu1 %6245 }
 0xb7b   :  { %v11238_v51 = vpop.xlane.xlu1 %6248 }
 0xb83   :  { %v11240_v15 = vpop.xlane.xlu1 %6254 }
 0xb87   :  { %v7360_v63 = vpop.permute.xlu1 %7359 }
 0xb88   :  { %8975 = vmatpush3.msra.mxu1 %v7360_v63 }
 0xb89   :  { %9038 = vmatprep.subr.mxu1 %v11712_v20 }
 0xb8a   :  { %v6356_v33 = vpop.f32.mrf.mxu1 }
 0xb8b   :  { %v6511_v41 = vmul.f32 %v9265_v50, %v6356_v33 }
 0xb8c   :  { %v8936_v53 = vpop.f32.mrf.mxu1 }
 0xb8d   :  { %v6531_v35 = vcombine.high %v6511_v41, %v6511_v41  ;;  %v6538_v7 = vrot.slane %v6511_v41, %v9511_v16 }
 0xb8e   :  { %v6361_v29 = vpop.f32.mrf.mxu1 }
 0xb8f   :  { %v6545_v9 = vrot.slane %v6531_v35, %v9511_v16  ;;  %v6546_v0 = vcombine.high %v6538_v7, %v6538_v7  ;;  %v6512_v25 = vmul.f32 %v9267_v23, %v6361_v29  ;;  %v6554_v27 = vrot.slane %v6538_v7, %v9511_v16  ;;  %v9271_v35 = vpop.eup %9270 }
 0xb90   :  { %v8939_v10 = vpop.f32.mrf.mxu1 }
 0xb91   :  { %v6547_v52 = vcombine.high %v6545_v9, %v6545_v9  ;;  %v6568_v24 = vrot.slane %v6546_v0, %v9511_v16  ;;  %v6580_v12 = vcombine.high %v6512_v25, %v6512_v25  ;;  %v6561_v1 = vrot.slane %v6545_v9, %v9511_v16 }
 0xb92   :  { %v6587_v34 = vrot.slane %v6512_v25, %v9511_v16  ;;  %v6366_v13 = vpop.f32.mrf.mxu1 }
 0xb93   :  { %v6575_v30 = vrot.slane %v6547_v52, %v9511_v16  ;;  %v6951_v22 = vcombine.low %v6554_v27, %v6568_v24  ;;  %v8174_v62 = vcombine.high %v6554_v27, %v6568_v24  ;;  %v6594_v42 = vrot.slane %v6580_v12, %v9511_v16 }
 0xb94   :  { %v6595_v4 = vcombine.high %v6587_v34, %v6587_v34  ;;  %v6603_v31 = vrot.slane %v6587_v34, %v9511_v16  ;;  %v6513_v57 = vmul.f32 %v9269_v58, %v6366_v13  ;;  %v8942_v46 = vpop.f32.mrf.mxu1 }
 0xb95   :  { %v6953_v14 = vcombine.low %v6561_v1, %v6575_v30  ;;  %v8175_v55 = vcombine.high %v6561_v1, %v6575_v30  ;;  %v6961_v49 = vrot.slane %v6951_v22, %v9511_v16  ;;  %v6968_v26 = vrot.slane %v8174_v62, %v9511_v16 }
 0xb96   :  { %v6596_v43 = vcombine.high %v6594_v42, %v6594_v42  ;;  %v6610_v38 = vrot.slane %v6594_v42, %v9511_v16  ;;  %v6617_v3 = vrot.slane %v6595_v4, %v9511_v16  ;;  %v6629_v32 = vcombine.high %v6513_v57, %v6513_v57  ;;  %v6371_v21 = vpop.f32.mrf.mxu1 }
 0xb97   :  { %v6975_v54 = vrot.slane %v6953_v14, %v9511_v16  ;;  %v6982_v39 = vrot.slane %v8175_v55, %v9511_v16  ;;  %v6983_v36 = vcombine.low %v6961_v49, %v6968_v26  ;;  %v6636_v59 = vrot.slane %v6513_v57, %v9511_v16  ;;  %v6243_v57 = vpop.xlane.xlu0 %6242 }
 0xb98   :  { %v6624_v5 = vrot.slane %v6596_v43, %v9511_v16  ;;  %v7000_v56 = vcombine.low %v6603_v31, %v6617_v3  ;;  %v8176_v11 = vcombine.high %v6603_v31, %v6617_v3  ;;  %v6643_v48 = vrot.slane %v6629_v32, %v9511_v16  ;;  %v8945_v61 = vpop.f32.mrf.mxu1 }
 0xb99   :  { %v6984_v19 = vcombine.low %v6975_v54, %v6982_v39  ;;  %v6991_v6 = vrot.slane %v6983_v36, %v9511_v16  ;;  %v6644_v40 = vcombine.high %v6636_v59, %v6636_v59  ;;  %v6652_v29 = vrot.slane %v6636_v59, %v9511_v16 }
 0xb9a   :  { %v7002_v63 = vcombine.low %v6610_v38, %v6624_v5  ;;  %v8177_v50 = vcombine.high %v6610_v38, %v6624_v5  ;;  %v7010_v33 = vrot.slane %v7000_v56, %v9511_v16  ;;  %v7017_v41 = vrot.slane %v8176_v11, %v9511_v16  ;;  %v11264_v53 = vpop.f32.mrf.mxu1 }
 0xb9b   :  { %v6998_v7 = vrot.slane %v6984_v19, %v9511_v16  ;;  %v6645_v23 = vcombine.high %v6643_v48, %v6643_v48  ;;  %v6666_v9 = vrot.slane %v6644_v40, %v9511_v16  ;;  %v6659_v10 = vrot.slane %v6643_v48, %v9511_v16 }
 0xb9c   :  { %v7024_v0 = vrot.slane %v7002_v63, %v9511_v16  ;;  %v7031_v25 = vrot.slane %v8177_v50, %v9511_v16  ;;  %v6514_v52 = vmul.f32 %v9271_v35, %v6371_v21  ;;  %v8948_v27 = vpop.f32.mrf.mxu1  ;;  %v7032_v13 = vcombine.low %v7010_v33, %v7017_v41 }
 0xb9d   :  { %v6999_v24 = vcombine.low %v6991_v6, %v6998_v7  ;;  %v6673_v12 = vrot.slane %v6645_v23, %v9511_v16  ;;  %v7049_v1 = vcombine.low %v6652_v29, %v6666_v9  ;;  %v8178_v34 = vcombine.high %v6652_v29, %v6666_v9  ;;  %v6252_v9 = vpop.xlane.xlu0 %6251 }
 0xb9e   :  { %v6678_v58 = vcombine.high %v6514_v52, %v6514_v52  ;;  %v6685_v30 = vrot.slane %v6514_v52, %v9511_v16  ;;  %v7033_v22 = vcombine.low %v7024_v0, %v7031_v25  ;;  %9272 = vrcp.f32 %v6243_v57 }
 0xb9f   :  { %v7051_v62 = vcombine.low %v6659_v10, %v6673_v12  ;;  %v8179_v42 = vcombine.high %v6659_v10, %v6673_v12  ;;  %v7059_v4 = vrot.slane %v7049_v1, %v9511_v16  ;;  %v7066_v31 = vrot.slane %v8178_v34, %v9511_v16  ;;  %8977 = vmatmul.mubr.msk.f32.vlgmr.msra.gmra.mxu1 %vm973_vm3, %v6999_v24 }
 0xba0   :  { %v6692_v46 = vrot.slane %v6678_v58, %v9511_v16  ;;  %v6693_v14 = vcombine.high %v6685_v30, %v6685_v30  ;;  %8979 = vmatprep.mubr.msk.f32.mxu1 %vm9317_vm2, %v11712_v20  ;;  %v6701_v38 = vrot.slane %v6685_v30, %v9511_v16  ;;  %v7040_v32 = vrot.slane %v7032_v13, %v9511_v16 }
 0xba1   :  { %v7073_v55 = vrot.slane %v7051_v62, %v9511_v16  ;;  %v7080_v49 = vrot.slane %v8179_v42, %v9511_v16  ;;  %v7081_v26 = vcombine.low %v7059_v4, %v7066_v31  ;;  %v7047_v21 = vrot.slane %v7033_v22, %v9511_v16 }
 0xba2   :  { %v6694_v43 = vcombine.high %v6692_v46, %v6692_v46  ;;  %v6715_v3 = vrot.slane %v6693_v14, %v9511_v16  ;;  %v6708_v39 = vrot.slane %v6692_v46, %v9511_v16  ;;  %9274 = vrcp.f32 %v11236_v44 }
 0xba3   :  { %v7082_v54 = vcombine.low %v7073_v55, %v7080_v49  ;;  %v7048_v56 = vcombine.low %v7040_v32, %v7047_v21  ;;  %v7089_v11 = vrot.slane %v7081_v26, %v9511_v16  ;;  %9276 = vrcp.f32 %v11238_v51 }
 0xba4   :  { %v6722_v36 = vrot.slane %v6694_v43, %v9511_v16  ;;  %v7098_v59 = vcombine.low %v6701_v38, %v6715_v3  ;;  %v8180_v5 = vcombine.high %v6701_v38, %v6715_v3  ;;  %9278 = vrcp.f32 %v6252_v9 }
 0xba5   :  { %v7096_v48 = vrot.slane %v7082_v54, %v9511_v16  ;;  %8980 = vmatmul.mubr.msk.f32.gmra.mxu1 %vm973_vm3, %v7048_v56  ;;  %9280 = vrcp.f32 %v11240_v15 }
 0xba6   :  { %v7100_v61 = vcombine.low %v6708_v39, %v6722_v36  ;;  %v8181_v19 = vcombine.high %v6708_v39, %v6722_v36  ;;  %v7108_v6 = vrot.slane %v7098_v59, %v9511_v16  ;;  %v7115_v40 = vrot.slane %v8180_v5, %v9511_v16  ;;  %8982 = vmatprep.mubr.msk.f32.mxu1 %vm9317_vm2, %v11712_v20 }
 0xba7   :  { %v7097_v63 = vcombine.low %v7089_v11, %v7096_v48 }
 0xba8   :  { %v7122_v50 = vrot.slane %v7100_v61, %v9511_v16  ;;  %v7129_v33 = vrot.slane %v8181_v19, %v9511_v16  ;;  %v7130_v41 = vcombine.low %v7108_v6, %v7115_v40 }
 0xba9   :  { %8983 = vmatmul.mubr.msk.f32.gmra.mxu1 %vm973_vm3, %v7097_v63 }
 0xbaa   :  { %v7131_v35 = vcombine.low %v7122_v50, %v7129_v33  ;;  %8985 = vmatprep.mubr.msk.f32.mxu1 %vm9317_vm2, %v11712_v20  ;;  %v7138_v44 = vrot.slane %v7130_v41, %v9511_v16 }
 0xbab   :  { %v9273_v29 = vpop.eup %9272 }
 0xbac   :  { %v7145_v7 = vrot.slane %v7131_v35, %v9511_v16  ;;  %v6515_v0 = vmul.f32 %v9273_v29, %v11264_v53 }
 0xbae   :  { %v7146_v23 = vcombine.low %v7138_v44, %v7145_v7  ;;  %v6733_v52 = vrot.slane %v6515_v0, %v9511_v16 }
 0xbaf   :  { %v9275_v51 = vpop.eup %9274 }
 0xbb0   :  { %8986 = vmatmul.mubr.msk.f32.gmra.mxu1 %vm973_vm3, %v7146_v23  ;;  %v9277_v1 = vpop.eup %9276  ;;  %v6740_v22 = vrot.slane %v6733_v52, %v9511_v16 }
 0xbb1   :  { %8988 = vmatprep.mubr.msk.f32.mxu1 %vm9317_vm2, %v11712_v20  ;;  %v9279_v41 = vpop.eup %9278 }
 0xbb4   :  { %v6477_v25 = vpop.f32.mrf.mxu0 }
 0xbb5   :  { %v6516_v10 = vmul.f32 %v9275_v51, %v6477_v25  ;;  %v9281_v25 = vpop.eup %9280 }
 0xbb6   :  { %v8961_v27 = vpop.f32.mrf.mxu0 }
 0xbb7   :  { %v6741_v24 = vcombine.high %v6516_v10, %v6516_v10  ;;  %v6748_v12 = vrot.slane %v6516_v10, %v9511_v16 }
 0xbb8   :  { %v6482_v34 = vpop.f32.mrf.mxu0 }
 0xbb9   :  { %v6755_v13 = vrot.slane %v6741_v24, %v9511_v16  ;;  %v6756_v58 = vcombine.high %v6748_v12, %v6748_v12  ;;  %v6764_v30 = vrot.slane %v6748_v12, %v9511_v16  ;;  %v6517_v53 = vmul.f32 %v9277_v1, %v6482_v34 }
 0xbba   :  { %v8964_v62 = vpop.f32.mrf.mxu0 }
 0xbbb   :  { %v6757_v42 = vcombine.high %v6755_v13, %v6755_v13  ;;  %v6771_v4 = vrot.slane %v6755_v13, %v9511_v16  ;;  %v6778_v31 = vrot.slane %v6756_v58, %v9511_v16  ;;  %v6786_v15 = vcombine.high %v6764_v30, %v6764_v30 }
 0xbbc   :  { %v7147_v57 = vcombine.low %v6740_v22, %v6764_v30  ;;  %v6790_v46 = vcombine.high %v6517_v53, %v6517_v53  ;;  %v6797_v14 = vrot.slane %v6517_v53, %v9511_v16  ;;  %v6487_v55 = vpop.f32.mrf.mxu0 }
 0xbbd   :  { %v6785_v49 = vrot.slane %v6757_v42, %v9511_v16  ;;  %v6787_v26 = vcombine.high %v6771_v4, %v6771_v4  ;;  %v6788_v43 = vcombine.high %v6778_v31, %v6778_v31  ;;  %v7148_v38 = vcombine.low %v6778_v31, %v6786_v15 }
 0xbbe   :  { %v7157_v3 = vrot.slane %v7147_v57, %v9511_v16  ;;  %v6804_v32 = vrot.slane %v6790_v46, %v9511_v16  ;;  %v6805_v21 = vcombine.high %v6797_v14, %v6797_v14  ;;  %v6813_v54 = vrot.slane %v6797_v14, %v9511_v16  ;;  %v8967_v39 = vpop.f32.mrf.mxu0 }
 0xbbf   :  { %v7149_v36 = vcombine.low %v6788_v43, %v6771_v4  ;;  %v7150_v59 = vcombine.low %v6785_v49, %v6787_v26  ;;  %v7164_v5 = vrot.slane %v7148_v38, %v9511_v16  ;;  %v6789_v56 = vcombine.high %v6785_v49, %v6785_v49 }
 0xbc0   :  { %v6806_v11 = vcombine.high %v6804_v32, %v6804_v32  ;;  %v6820_v48 = vrot.slane %v6804_v32, %v9511_v16  ;;  %v6827_v61 = vrot.slane %v6805_v21, %v9511_v16  ;;  %v6835_v19 = vcombine.high %v6813_v54, %v6813_v54  ;;  %v6492_v6 = vpop.f32.mrf.mxu0 }
 0xbc1   :  { %v7171_v40 = vrot.slane %v7149_v36, %v9511_v16  ;;  %v7178_v63 = vrot.slane %v7150_v59, %v9511_v16  ;;  %v7179_v50 = vcombine.low %v7157_v3, %v7164_v5  ;;  %v7196_v33 = vcombine.low %v6789_v56, %v6813_v54 }
 0xbc2   :  { %v6834_v35 = vrot.slane %v6806_v11, %v9511_v16  ;;  %v6836_v44 = vcombine.high %v6820_v48, %v6820_v48  ;;  %v6837_v7 = vcombine.high %v6827_v61, %v6827_v61  ;;  %v7197_v23 = vcombine.low %v6827_v61, %v6835_v19  ;;  %v8970_v29 = vpop.f32.mrf.mxu0 }
 0xbc3   :  { %v7180_v9 = vcombine.low %v7171_v40, %v7178_v63  ;;  %v7206_v0 = vrot.slane %v7196_v33, %v9511_v16  ;;  %v6518_v51 = vmul.f32 %v9279_v41, %v6487_v55  ;;  %v7187_v10 = vrot.slane %v7179_v50, %v9511_v16 }
 0xbc4   :  { %v7198_v52 = vcombine.low %v6837_v7, %v6820_v48  ;;  %v7199_v27 = vcombine.low %v6834_v35, %v6836_v44  ;;  %v7213_v24 = vrot.slane %v7197_v23, %v9511_v16  ;;  %v6519_v34 = vmul.f32 %v9281_v25, %v6492_v6 }
 0xbc5   :  { %v6839_v12 = vcombine.high %v6518_v51, %v6518_v51  ;;  %v6846_v1 = vrot.slane %v6518_v51, %v9511_v16  ;;  %v7194_v13 = vrot.slane %v7180_v9, %v9511_v16  ;;  %v6838_v22 = vcombine.high %v6834_v35, %v6834_v35 }
 0xbc6   :  { %v7220_v58 = vrot.slane %v7198_v52, %v9511_v16  ;;  %v7227_v30 = vrot.slane %v7199_v27, %v9511_v16  ;;  %v7228_v53 = vcombine.low %v7206_v0, %v7213_v24  ;;  %v6888_v31 = vcombine.high %v6519_v34, %v6519_v34 }
 0xbc7   :  { %v6853_v62 = vrot.slane %v6839_v12, %v9511_v16  ;;  %v6854_v42 = vcombine.high %v6846_v1, %v6846_v1  ;;  %v6862_v4 = vrot.slane %v6846_v1, %v9511_v16  ;;  %v6895_v46 = vrot.slane %v6519_v34, %v9511_v16 }
 0xbc8   :  { %v7229_v15 = vcombine.low %v7220_v58, %v7227_v30  ;;  %v7236_v57 = vrot.slane %v7228_v53, %v9511_v16  ;;  %v7195_v14 = vcombine.low %v7187_v10, %v7194_v13  ;;  %v6902_v3 = vrot.slane %v6888_v31, %v9511_v16 }
 0xbc9   :  { %v6855_v55 = vcombine.high %v6853_v62, %v6853_v62  ;;  %v6869_v49 = vrot.slane %v6853_v62, %v9511_v16  ;;  %v6876_v26 = vrot.slane %v6854_v42, %v9511_v16  ;;  %v6884_v43 = vcombine.high %v6862_v4, %v6862_v4  ;;  %v6258_v42 = vpop.xlane.xlu0 %6257 }
 0xbca   :  { %v7245_v38 = vcombine.low %v6838_v22, %v6862_v4  ;;  %v6903_v32 = vcombine.high %v6895_v46, %v6895_v46  ;;  %v6911_v21 = vrot.slane %v6895_v46, %v9511_v16  ;;  %8989 = vmatmul.mubr.msk.f32.gmra.mxu1 %vm973_vm3, %v7195_v14  ;;  %v6904_v56 = vcombine.high %v6902_v3, %v6902_v3 }
 0xbcb   :  { %v6883_v54 = vrot.slane %v6855_v55, %v9511_v16  ;;  %v6885_v39 = vcombine.high %v6869_v49, %v6869_v49  ;;  %v6886_v36 = vcombine.high %v6876_v26, %v6876_v26  ;;  %v7246_v59 = vcombine.low %v6876_v26, %v6884_v43  ;;  %8991 = vmatprep.mubr.msk.f32.mxu1 %vm9317_vm2, %v11712_v20 }
 0xbcc   :  { %v7255_v5 = vrot.slane %v7245_v38, %v9511_v16  ;;  %v6918_v11 = vrot.slane %v6902_v3, %v9511_v16  ;;  %v6925_v48 = vrot.slane %v6903_v32, %v9511_v16  ;;  %v6932_v63 = vrot.slane %v6904_v56, %v9511_v16  ;;  %v11720_v38 = vld [vmem:[#allocation2_spill] sm:$0xff] }
 0xbcd   :  { %v7247_v61 = vcombine.low %v6886_v36, %v6869_v49  ;;  %v7248_v19 = vcombine.low %v6883_v54, %v6885_v39  ;;  %v7262_v6 = vrot.slane %v7246_v59, %v9511_v16  ;;  %v6887_v40 = vcombine.high %v6883_v54, %v6883_v54  ;;  %v11382_v32 = vld [vmem:[%s11704_s3] sm:$0xff] }
 0xbce   :  { %v6933_v50 = vcombine.high %v6911_v21, %v6911_v21  ;;  %v6934_v33 = vcombine.high %v6918_v11, %v6918_v11  ;;  %v6935_v41 = vcombine.high %v6925_v48, %v6925_v48  ;;  %v7243_v51 = vrot.slane %v7229_v15, %v9511_v16  ;;  %v9307_v59 = vld [vmem:[%s11702_s0] sm:$0xff] }
 0xbcf   :  { %v7269_v35 = vrot.slane %v7247_v61, %v9511_v16  ;;  %v7276_v44 = vrot.slane %v7248_v19, %v9511_v16  ;;  %v7277_v7 = vcombine.low %v7255_v5, %v7262_v6  ;;  %v7294_v23 = vcombine.low %v6887_v40, %v6911_v21  ;;  %v9308_v6 = vld [vmem:[%s11702_s0 + $0x8] sm:$0xff] }
 0xbd0   :  { %v7295_v29 = vcombine.low %v6925_v48, %v6933_v50  ;;  %v7296_v9 = vcombine.low %v6935_v41, %v6918_v11  ;;  %v7297_v0 = vcombine.low %v6932_v63, %v6934_v33  ;;  %v7244_v12 = vcombine.low %v7236_v57, %v7243_v51 }
 0xbd1   :  { %v7278_v25 = vcombine.low %v7269_v35, %v7276_v44  ;;  %v7304_v10 = vrot.slane %v7294_v23, %v9511_v16  ;;  %v7285_v1 = vrot.slane %v7277_v7, %v9511_v16  ;;  %9282 = vrcp.f32 %v6258_v42 }
 0xbd2   :  { %v7311_v52 = vrot.slane %v7295_v29, %v9511_v16  ;;  %v7318_v27 = vrot.slane %v7296_v9, %v9511_v16  ;;  %v7325_v24 = vrot.slane %v7297_v0, %v9511_v16  ;;  %8992 = vmatmul.mubr.msk.f32.gmra.mxu1 %vm973_vm3, %v7244_v12  ;;  %v6936_v14 = vcombine.high %v6932_v63, %v6932_v63  ;;  %v9310_v9 = vld [vmem:[%s11702_s0 + $0x18] sm:$0xff] }
 0xbd3   :  { %v7292_v34 = vrot.slane %v7278_v25, %v9511_v16  ;;  %8994 = vmatprep.mubr.msk.f32.mxu1 %vm9317_vm2, %v11712_v20  ;;  %v7501_v3 = vsub.s32 5, %v11720_v38 }
 0xbd4   :  { %v7326_v13 = vcombine.low %v7304_v10, %v7311_v52  ;;  %v7327_v58 = vcombine.low %v7318_v27, %v7325_v24  ;;  %v9311_v27 = vld [vmem:[%s11702_s0 + $0x20] sm:$0xff] }
 0xbd5   :  { %v7293_v30 = vcombine.low %v7285_v1, %v7292_v34  ;;  %v11385_v21 = vrot.slane %v11382_v32, %v7501_v3 }
 0xbd6   :  { %v7334_v53 = vrot.slane %v7326_v13, %v9511_v16  ;;  %v7341_v22 = vrot.slane %v7327_v58, %v9511_v16 }
 0xbd7   :  { %8995 = vmatmul.mubr.msk.f32.gmra.mxu1 %vm973_vm3, %v7293_v30  ;;  %v9312_v30 = vld [vmem:[%s11702_s0 + $0x28] sm:$0xff] }
 0xbd8   :  { %v7342_v62 = vcombine.low %v7334_v53, %v7341_v22  ;;  %8997 = vmatprep.mubr.msk.f32.mxu1 %vm9317_vm2, %v11712_v20 }
 0xbdb   :  { %8998 = vmatmul.mubr.msk.f32.gmra.mxu1 %vm973_vm3, %v7342_v62 }
 0xbdc   :  { %9000 = vmatprep.mubr.msk.f32.mxu1 %vm9317_vm2, %v11712_v20 }
 0xbde   :  { %v9283_v4 = vpop.eup %9282 }
 0xbea   :  { %v6497_v31 = vpop.f32.mrf.mxu0 }
 0xbeb   :  { %v6520_v15 = vmul.f32 %v9283_v4, %v6497_v31  ;;  %v9313_v31 = vld [vmem:[%s11702_s0 + $0x30] sm:$0xff] }
 0xbec   :  { %v8973_v57 = vpop.f32.mrf.mxu0 }
 0xbed   :  { %v6943_v46 = vrot.slane %v6520_v15, %v9511_v16 }
 0xbef   :  { %v6950_v55 = vrot.slane %v6943_v46, %v9511_v16 }
 0xbf1   :  { %v7343_v49 = vcombine.low %v6936_v14, %v6950_v55  ;;  %v9314_v55 = vld [vmem:[%s11702_s0 + $0x38] sm:$0xff] }
 0xbf3   :  { %v7350_v26 = vrot.slane %v7343_v49, %v9511_v16 }
 0xbf5   :  { %v7357_v43 = vrot.slane %v7350_v26, %v9511_v16 }
 0xbf7   :  { %9001 = vmatmul.mubr.msk.f32.gmra.mxu1 %vm973_vm3, %v7357_v43 }
 0xbf8   :  { %9054 = vmatprep.mubr.msk.f32.mxu1 %vm9317_vm2, %v11712_v20 }
 0xc5f   :  { %v7446_v54 = vpop.f32.mrf.mxu1 }
 0xc60   :  { %v7490_v39 = vadd.f32 %v7446_v54, %v11123_v18 }
 0xc61   :  { %v8978_v36 = vpop.f32.mrf.mxu1 }
 0xc62   :  { %v7503_v16 = vadd.f32 %v11385_v21, %v7490_v39  ;;  %v9315_v39 = vld [vmem:[%s11702_s0 + $0x40] sm:$0x3] }
 0xc64   :  { %v11392_v5 = vadd.f32 %v9307_v59, %v7503_v16 }
 0xc65   :  { %v7451_v11 = vpop.f32.mrf.mxu1 }
 0xc66   :  { %v7521_v56 = vsel %vm43_vm0, %v11392_v5, 0.0  ;;  %v7491_v48 = vadd.f32 %v7451_v11, %v11126_v37  ;;  %v9309_v37 = vld [vmem:[%s11702_s0 + $0x10] sm:$0xff] }
 0xc67   :  { %7522 = vadd.xlane.f32.xlu0 %v7521_v56  ;;  %v8981_v61 = vpop.f32.mrf.mxu1 }
 0xc68   :  { %v7504_v19 = vadd.f32 %v11385_v21, %v7491_v48 }
 0xc69   :  { %v7456_v18 = vpop.f32.mrf.mxu1 }
 0xc6a   :  { %v11401_v40 = vadd.f32 %v9308_v6, %v7504_v19  ;;  %v7492_v63 = vadd.f32 %v7456_v18, %v11129_v17 }
 0xc6b   :  { %v8984_v50 = vpop.f32.mrf.mxu1 }
 0xc6c   :  { %v7505_v33 = vadd.f32 %v11385_v21, %v7492_v63  ;;  %v7524_v41 = vsel %vm43_vm0, %v11401_v40, 0.0 }
 0xc6d   :  { %7525 = vadd.xlane.f32.xlu0 %v7524_v41 }
 0xc6e   :  { %v11410_v35 = vadd.f32 %v9309_v37, %v7505_v33 }
 0xc70   :  { %v7461_v44 = vpop.f32.mrf.mxu1  ;;  %v7527_v17 = vsel %vm43_vm0, %v11410_v35, 0.0 }
 0xc71   :  { %v7493_v7 = vadd.f32 %v7461_v44, %v11132_v8  ;;  %7528 = vadd.xlane.f32.xlu0 %v7527_v17 }
 0xc72   :  { %v8987_v23 = vpop.f32.mrf.mxu1 }
 0xc73   :  { %v7506_v29 = vadd.f32 %v11385_v21, %v7493_v7 }
 0xc75   :  { %v11419_v0 = vadd.f32 %v9310_v9, %v7506_v29 }
 0xc77   :  { %v7530_v51 = vsel %vm43_vm0, %v11419_v0, 0.0 }
 0xc78   :  { %7531 = vadd.xlane.f32.xlu0 %v7530_v51 }
 0xc8a   :  { %v7466_v25 = vpop.f32.mrf.mxu1 }
 0xc8b   :  { %v7494_v8 = vadd.f32 %v7466_v25, %v11139_v28 }
 0xc8c   :  { %v8990_v10 = vpop.f32.mrf.mxu1 }
 0xc8d   :  { %v7507_v52 = vadd.f32 %v11385_v21, %v7494_v8 }
 0xc8f   :  { %v11428_v24 = vadd.f32 %v9311_v27, %v7507_v52  ;;  %v33_v52 = vld [vmem:[%s11703_s1 + $0x38] sm:$0xff]  ;;  %v31_v27 = vld [vmem:[%s11703_s1 + $0x28] sm:$0xff] }
 0xc90   :  { %9004 = vmatpush3.msra.mxu0 %v33_v52 }
 0xc91   :  { %v7533_v12 = vsel %vm43_vm0, %v11428_v24, 0.0  ;;  %9005 = vmatprep.subr.mxu0 %v11712_v20 }
 0xc92   :  { %7534 = vadd.xlane.f32.xlu1 %v7533_v12  ;;  %v7471_v1 = vpop.f32.mrf.mxu1  ;;  %9006 = vmatpush3.msra.mxu0 %v31_v27 }
 0xc93   :  { %v7495_v34 = vadd.f32 %v7471_v1, %v11143_v45  ;;  %v29_v1 = vld [vmem:[%s11703_s1 + $0x18] sm:$0xff]  ;;  %9007 = vmatprep.subr.mxu0 %v11712_v20 }
 0xc94   :  { %v8993_v13 = vpop.f32.mrf.mxu1  ;;  %9008 = vmatpush3.msra.mxu0 %v29_v1 }
 0xc95   :  { %v7508_v58 = vadd.f32 %v11385_v21, %v7495_v34  ;;  %v27_v13 = vld [vmem:[%s11703_s1 + $0x8] sm:$0xff]  ;;  %9009 = vmatprep.subr.mxu0 %v11712_v20 }
 0xc96   :  { %9010 = vmatpush3.msra.mxu0 %v27_v13 }
 0xc97   :  { %v7476_v28 = vpop.f32.mrf.mxu1  ;;  %v11437_v53 = vadd.f32 %v9312_v30, %v7508_v58 }
 0xc98   :  { %v7496_v22 = vadd.f32 %v7476_v28, %v11146_v2 }
 0xc99   :  { %v8996_v62 = vpop.f32.mrf.mxu1  ;;  %v7536_v4 = vsel %vm43_vm0, %v11437_v53, 0.0 }
 0xc9a   :  { %v7509_v42 = vadd.f32 %v11385_v21, %v7496_v22  ;;  %7537 = vadd.xlane.f32.xlu0 %v7536_v4 }
 0xc9b   :  { %v7481_v45 = vpop.f32.mrf.mxu1 }
 0xc9c   :  { %v11446_v15 = vadd.f32 %v9313_v31, %v7509_v42  ;;  %v7497_v57 = vadd.f32 %v7481_v45, %v11149_v47 }
 0xc9d   :  { %v8999_v46 = vpop.f32.mrf.mxu1 }
 0xc9e   :  { %v7510_v14 = vadd.f32 %v11385_v21, %v7497_v57  ;;  %v7539_v2 = vsel %vm43_vm0, %v11446_v15, 0.0 }
 0xc9f   :  { %7540 = vadd.xlane.f32.xlu0 %v7539_v2 }
 0xca0   :  { %v11455_v49 = vadd.f32 %v9314_v55, %v7510_v14 }
 0xca2   :  { %v7542_v26 = vsel %vm43_vm0, %v11455_v49, 0.0 }
 0xca3   :  { %7543 = vadd.xlane.f32.xlu0 %v7542_v26 }
 0xcb7   :  { %v7486_v43 = vpop.f32.mrf.mxu1 }
 0xcb8   :  { %v7498_v47 = vadd.f32 %v7486_v43, %v11153_v60 }
 0xcb9   :  { %v9002_v3 = vpop.f32.mrf.mxu1 }
 0xcba   :  { %v7511_v54 = vadd.f32 %v11385_v21, %v7498_v47 }
 0xcbc   :  { %v11464_v36 = vadd.f32 %v9315_v39, %v7511_v54  ;;  %v41_v54 = vld [vmem:[%s11705_s2 + $0x38] sm:$0xff]  ;;  %v40_v39 = vld [vmem:[%s11705_s2 + $0x30] sm:$0xff] }
 0xcbd   :  { %9039 = vmatpush3.msra.mxu1 %v41_v54 }
 0xcbe   :  { %v7545_v16 = vsel %vm68_vm1, %v11464_v36, 0.0  ;;  %9040 = vmatprep.subr.mxu1 %v11712_v20 }
 0xcbf   :  { %7546 = vadd.xlane.f32.xlu0 %v7545_v16  ;;  %v39_v16 = vld [vmem:[%s11705_s2 + $0x28] sm:$0xff]  ;;  %9041 = vmatpush3.msra.mxu1 %v40_v39 }
 0xcc0   :  { %9042 = vmatprep.subr.mxu1 %v11712_v20 }
 0xcc1   :  { %9043 = vmatpush3.msra.mxu1 %v39_v16 }
 0xcc2   :  { %9044 = vmatprep.subr.mxu1 %v11712_v20 }
 0xcf0   :  { %v7523_v59 = vpop.xlane.xlu0 %7522 }
 0xcf1   :  { %v7548_v56 = vmul.f32 0.03125, %v7523_v59  ;;  %v38_v59 = vld [vmem:[%s11705_s2 + $0x20] sm:$0xff] }
 0xcf2   :  { %9045 = vmatpush3.msra.mxu1 %v38_v59 }
 0xcf3   :  { %v11469_v11 = vsub.f32 %v11392_v5, %v7548_v56  ;;  %v37_v56 = vld [vmem:[%s11705_s2 + $0x18] sm:$0xff]  ;;  %9046 = vmatprep.subr.mxu1 %v11712_v20 }
 0xcf4   :  { %9047 = vmatpush3.msra.mxu1 %v37_v56 }
 0xcf5   :  { %v7566_v60 = vmul.f32 %v11469_v11, %v11469_v11  ;;  %9048 = vmatprep.subr.mxu1 %v11712_v20 }
 0xcf6   :  { %v7526_v48 = vpop.xlane.xlu0 %7525 }
 0xcf7   :  { %v7575_v21 = vsel %vm43_vm0, %v7566_v60, 0.0  ;;  %v7549_v61 = vmul.f32 0.03125, %v7526_v48 }
 0xcf8   :  { %7576 = vadd.xlane.f32.xlu0 %v7575_v21 }
 0xcf9   :  { %v11475_v19 = vsub.f32 %v11401_v40, %v7549_v61 }
 0xcfa   :  { %v7529_v18 = vpop.xlane.xlu0 %7528 }
 0xcfb   :  { %v7550_v6 = vmul.f32 0.03125, %v7529_v18  ;;  %v7567_v63 = vmul.f32 %v11475_v19, %v11475_v19 }
 0xcfd   :  { %v11480_v50 = vsub.f32 %v11410_v35, %v7550_v6  ;;  %v7578_v33 = vsel %vm43_vm0, %v7567_v63, 0.0 }
 0xcfe   :  { %7579 = vadd.xlane.f32.xlu0 %v7578_v33  ;;  %v7640_v33 = vsub.s32 2, %v11720_v38 }
 0xcff   :  { %v7568_v37 = vmul.f32 %v11480_v50, %v11480_v50 }
 0xd01   :  { %v7532_v41 = vpop.xlane.xlu0 %7531  ;;  %v7581_v7 = vsel %vm43_vm0, %v7568_v37, 0.0  ;;  %v7653_v37 = vsub.s32 3, %v11720_v38 }
 0xd02   :  { %v7551_v44 = vmul.f32 0.03125, %v7532_v41  ;;  %7582 = vadd.xlane.f32.xlu0 %v7581_v7  ;;  %v11560_v7 = vrot.slane %v11382_v32, %v7640_v33 }
 0xd04   :  { %v11487_v23 = vsub.f32 %v11419_v0, %v7551_v44 }
 0xd06   :  { %v7569_v17 = vmul.f32 %v11487_v23, %v11487_v23 }
 0xd08   :  { %v7584_v29 = vsel %vm43_vm0, %v7569_v17, 0.0 }
 0xd09   :  { %7585 = vadd.xlane.f32.xlu0 %v7584_v29 }
 0xd1b   :  { %v7535_v9 = vpop.xlane.xlu1 %7534 }
 0xd1c   :  { %v7552_v51 = vmul.f32 0.03125, %v7535_v9 }
 0xd1e   :  { %v11493_v25 = vsub.f32 %v11428_v24, %v7552_v51  ;;  %v11563_v51 = vrot.slane %v11382_v32, %v7653_v37 }
 0xd20   :  { %v7570_v8 = vmul.f32 %v11493_v25, %v11493_v25 }
 0xd22   :  { %v7587_v10 = vsel %vm43_vm0, %v7570_v8, 0.0 }
 0xd23   :  { %7588 = vadd.xlane.f32.xlu0 %v7587_v10  ;;  %v7538_v12 = vpop.xlane.xlu0 %7537 }
 0xd24   :  { %v7553_v34 = vmul.f32 0.03125, %v7538_v12 }
 0xd26   :  { %v11513_v58 = vsub.f32 %v11437_v53, %v7553_v34 }
 0xd28   :  { %v7541_v28 = vpop.xlane.xlu0 %7540  ;;  %v7571_v22 = vmul.f32 %v11513_v58, %v11513_v58 }
 0xd29   :  { %v7554_v30 = vmul.f32 0.03125, %v7541_v28 }
 0xd2a   :  { %v7590_v42 = vsel %vm43_vm0, %v7571_v22, 0.0 }
 0xd2b   :  { %v11519_v62 = vsub.f32 %v11446_v15, %v7554_v30  ;;  %7591 = vadd.xlane.f32.xlu1 %v7590_v42 }
 0xd2c   :  { %v7544_v4 = vpop.xlane.xlu0 %7543 }
 0xd2d   :  { %v7555_v45 = vmul.f32 0.03125, %v7544_v4  ;;  %v7572_v31 = vmul.f32 %v11519_v62, %v11519_v62 }
 0xd2f   :  { %v11525_v57 = vsub.f32 %v11455_v49, %v7555_v45  ;;  %v7593_v46 = vsel %vm43_vm0, %v7572_v31, 0.0 }
 0xd30   :  { %7594 = vadd.xlane.f32.xlu0 %v7593_v46 }
 0xd31   :  { %v7573_v14 = vmul.f32 %v11525_v57, %v11525_v57 }
 0xd33   :  { %v7596_v2 = vsel %vm43_vm0, %v7573_v14, 0.0 }
 0xd34   :  { %7597 = vadd.xlane.f32.xlu1 %v7596_v2 }
 0xd48   :  { %v7547_v55 = vpop.xlane.xlu0 %7546 }
 0xd49   :  { %v7556_v26 = vmul.f32 0.03125, %v7547_v55 }
 0xd4b   :  { %v11532_v43 = vsub.f32 %v11464_v36, %v7556_v26 }
 0xd4d   :  { %v7574_v47 = vmul.f32 %v11532_v43, %v11532_v43 }
 0xd4f   :  { %v7599_v3 = vsel %vm68_vm1, %v7574_v47, 0.0 }
 0xd50   :  { %7600 = vadd.xlane.f32.xlu0 %v7599_v3 }
 0xd81   :  { %v7577_v60 = vpop.xlane.xlu0 %7576 }
 0xd82   :  { %v7602_v21 = vmul.f32 0.03125, %v7577_v60 }
 0xd84   :  { %v7611_v48 = vadd.f32 1e-05, %v7602_v21 }
 0xd86   :  { %9284 = vrsqrt.f32 %v7611_v48 }
 0xd87   :  { %v7580_v61 = vpop.xlane.xlu0 %7579 }
 0xd88   :  { %v7603_v18 = vmul.f32 0.03125, %v7580_v61 }
 0xd8a   :  { %v7612_v6 = vadd.f32 1e-05, %v7603_v18 }
 0xd8b   :  { %v7583_v63 = vpop.xlane.xlu0 %7582 }
 0xd8c   :  { %9286 = vrsqrt.f32 %v7612_v6  ;;  %v7604_v41 = vmul.f32 0.03125, %v7583_v63 }
 0xd8e   :  { %v7613_v44 = vadd.f32 1e-05, %v7604_v41 }
 0xd90   :  { %9288 = vrsqrt.f32 %v7613_v44 }
 0xd92   :  { %v7586_v17 = vpop.xlane.xlu0 %7585 }
 0xd93   :  { %v9285_v29 = vpop.eup %9284  ;;  %v7605_v9 = vmul.f32 0.03125, %v7586_v17 }
 0xd94   :  { %v7629_v8 = vmul.f32 %v9285_v29, %v11469_v11 }
 0xd95   :  { %v7614_v10 = vadd.f32 1e-05, %v7605_v9  ;;  %v35_v9 = vld [vmem:[%s11705_s2 + $0x8] sm:$0xff] }
 0xd96   :  { %v7642_v52 = vmul.f32 %v11560_v7, %v7629_v8  ;;  %v34_v8 = vld [vmem:[%s11705_s2] sm:$0xff] }
 0xd97   :  { %9290 = vrsqrt.f32 %v7614_v10 }
 0xd98   :  { %v7655_v27 = vadd.f32 %v11563_v51, %v7642_v52 }
 0xd99   :  { %v9287_v12 = vpop.eup %9286 }
 0xd9a   :  { %9012 = vmatmul.mubr.msk.f32.vlgmr.msra.gmra.mxu0 %vm43_vm0, %v7655_v27  ;;  %v7630_v1 = vmul.f32 %v9287_v12, %v11475_v19 }
 0xd9b   :  { %9014 = vmatprep.mubr.msk.f32.mxu0 %vm9317_vm2, %v11712_v20 }
 0xd9c   :  { %v7643_v34 = vmul.f32 %v11560_v7, %v7630_v1  ;;  %v7666_v1 = vsub.s32 6, %v11720_v38 }
 0xd9d   :  { %v9289_v13 = vpop.eup %9288 }
 0xd9e   :  { %v7631_v28 = vmul.f32 %v9289_v13, %v11480_v50  ;;  %v7656_v11 = vadd.f32 %v11563_v51, %v7643_v34  ;;  %v7667_v34 = vrot.slane %v11382_v32, %v7666_v1 }
 0xda0   :  { %9015 = vmatmul.mubr.msk.f32.gmra.mxu0 %vm43_vm0, %v7656_v11  ;;  %v7644_v30 = vmul.f32 %v11560_v7, %v7631_v28 }
 0xda1   :  { %9017 = vmatprep.mubr.msk.f32.mxu0 %vm9317_vm2, %v11712_v20 }
 0xda2   :  { %v7657_v42 = vadd.f32 %v11563_v51, %v7644_v30 }
 0xda4   :  { %v9291_v22 = vpop.eup %9290  ;;  %9018 = vmatmul.mubr.msk.f32.gmra.mxu0 %vm43_vm0, %v7657_v42 }
 0xda5   :  { %v7632_v4 = vmul.f32 %v9291_v22, %v11487_v23  ;;  %9020 = vmatprep.mubr.msk.f32.mxu0 %vm9317_vm2, %v11712_v20 }
 0xda7   :  { %v7645_v19 = vmul.f32 %v11560_v7, %v7632_v4 }
 0xda9   :  { %v7658_v50 = vadd.f32 %v11563_v51, %v7645_v19 }
 0xdab   :  { %9021 = vmatmul.mubr.msk.f32.gmra.mxu0 %vm43_vm0, %v7658_v50 }
 0xdac   :  { %v7589_v45 = vpop.xlane.xlu0 %7588  ;;  %9023 = vmatprep.mubr.msk.f32.mxu0 %vm9317_vm2, %v11712_v20 }
 0xdad   :  { %v7606_v31 = vmul.f32 0.03125, %v7589_v45 }
 0xdaf   :  { %v7615_v46 = vadd.f32 1e-05, %v7606_v31 }
 0xdb1   :  { %9292 = vrsqrt.f32 %v7615_v46 }
 0xdb4   :  { %v7592_v14 = vpop.xlane.xlu1 %7591 }
 0xdb5   :  { %v7607_v23 = vmul.f32 0.03125, %v7592_v14 }
 0xdb7   :  { %v7616_v2 = vadd.f32 1e-05, %v7607_v23 }
 0xdb9   :  { %v7595_v55 = vpop.xlane.xlu0 %7594  ;;  %9294 = vrsqrt.f32 %v7616_v2 }
 0xdba   :  { %v7608_v26 = vmul.f32 0.03125, %v7595_v55 }
 0xdbc   :  { %v7617_v47 = vadd.f32 1e-05, %v7608_v26 }
 0xdbd   :  { %v7598_v54 = vpop.xlane.xlu1 %7597 }
 0xdbe   :  { %v9293_v3 = vpop.eup %9292  ;;  %9296 = vrsqrt.f32 %v7617_v47  ;;  %v7609_v16 = vmul.f32 0.03125, %v7598_v54 }
 0xdbf   :  { %v7633_v39 = vmul.f32 %v9293_v3, %v11493_v25 }
 0xdc0   :  { %v7618_v59 = vadd.f32 1e-05, %v7609_v16 }
 0xdc1   :  { %v7646_v56 = vmul.f32 %v11560_v7, %v7633_v39 }
 0xdc2   :  { %9298 = vrsqrt.f32 %v7618_v59 }
 0xdc3   :  { %v7659_v60 = vadd.f32 %v11563_v51, %v7646_v56 }
 0xdc5   :  { %9024 = vmatmul.mubr.msk.f32.gmra.mxu0 %vm43_vm0, %v7659_v60 }
 0xdc6   :  { %9026 = vmatprep.mubr.msk.f32.mxu0 %vm9317_vm2, %v11712_v20  ;;  %v9295_v21 = vpop.eup %9294 }
 0xdc7   :  { %v7634_v48 = vmul.f32 %v9295_v21, %v11513_v58 }
 0xdc9   :  { %v7647_v61 = vmul.f32 %v11560_v7, %v7634_v48 }
 0xdcb   :  { %v9297_v18 = vpop.eup %9296  ;;  %v7660_v6 = vadd.f32 %v11563_v51, %v7647_v61 }
 0xdcc   :  { %v7635_v25 = vmul.f32 %v9297_v18, %v11519_v62 }
 0xdcd   :  { %9027 = vmatmul.mubr.msk.f32.gmra.mxu0 %vm43_vm0, %v7660_v6 }
 0xdce   :  { %v7648_v63 = vmul.f32 %v11560_v7, %v7635_v25  ;;  %9029 = vmatprep.mubr.msk.f32.mxu0 %vm9317_vm2, %v11712_v20 }
 0xdcf   :  { %v9299_v33 = vpop.eup %9298 }
 0xdd0   :  { %v7636_v41 = vmul.f32 %v9299_v33, %v11525_v57  ;;  %v7661_v37 = vadd.f32 %v11563_v51, %v7648_v63  ;;  %v36_v57 = vld [vmem:[%s11705_s2 + $0x10] sm:$0xff] }
 0xdd1   :  { %9049 = vmatpush3.msra.mxu1 %v36_v57 }
 0xdd2   :  { %9030 = vmatmul.mubr.msk.f32.gmra.mxu0 %vm43_vm0, %v7661_v37  ;;  %v7649_v58 = vmul.f32 %v11560_v7, %v7636_v41  ;;  %9050 = vmatprep.subr.mxu1 %v11712_v20  ;;  %v7816_v41 = vsub.s32 7, %v11720_v38 }
 0xdd3   :  { %9032 = vmatprep.mubr.msk.f32.mxu0 %vm9317_vm2, %v11712_v20  ;;  %9051 = vmatpush3.msra.mxu1 %v35_v9 }
 0xdd4   :  { %v7662_v62 = vadd.f32 %v11563_v51, %v7649_v58  ;;  %9052 = vmatprep.subr.mxu1 %v11712_v20  ;;  %v7817_v37 = vrot.slane %v11382_v32, %v7816_v41 }
 0xdd5   :  { %9053 = vmatpush3.msra.mxu1 %v34_v8 }
 0xdd6   :  { %9033 = vmatmul.mubr.msk.f32.gmra.mxu0 %vm43_vm0, %v7662_v62 }
 0xdd7   :  { %9035 = vmatprep.mubr.msk.f32.mxu0 %vm9317_vm2, %v11712_v20 }
 0xdd9   :  { %v7601_v44 = vpop.xlane.xlu0 %7600 }
 0xdda   :  { %v7610_v17 = vmul.f32 0.03125, %v7601_v44 }
 0xddc   :  { %v7619_v29 = vadd.f32 1e-05, %v7610_v17 }
 0xdde   :  { %9300 = vrsqrt.f32 %v7619_v29 }
 0xdeb   :  { %v9301_v10 = vpop.eup %9300 }
 0xdec   :  { %v7637_v52 = vmul.f32 %v9301_v10, %v11532_v43 }
 0xdee   :  { %v7650_v27 = vmul.f32 %v11560_v7, %v7637_v52 }
 0xdf0   :  { %v7663_v12 = vadd.f32 %v11563_v51, %v7650_v27 }
 0xdf2   :  { %9036 = vmatmul.mubr.msk.f32.gmra.mxu0 %vm43_vm0, %v7663_v12 }
 0xe5a   :  { %v7761_v13 = vpop.f32.mrf.mxu0 }
 0xe5b   :  { %v7762_v28 = vadd.f32 %v7761_v13, %v7667_v34 }
 0xe5c   :  { %v9013_v11 = vpop.f32.mrf.mxu0 }
 0xe5d   :  { %v7805_v30 = vmax.f32 %v7762_v28, 0.0 }
 0xe5f   :  { %9055 = vmatmul.mubr.msk.f32.vlgmr.msra.gmra.mxu1 %vm7818_vm7, %v7805_v30 }
 0xe60   :  { %9057 = vmatprep.mubr.msk.f32.mxu1 %vm9317_vm2, %v11712_v20  ;;  %v7766_v43 = vpop.f32.mrf.mxu0 }
 0xe61   :  { %v7767_v7 = vadd.f32 %v7766_v43, %v7667_v34 }
 0xe62   :  { %v9016_v22 = vpop.f32.mrf.mxu0 }
 0xe63   :  { %v7806_v51 = vmax.f32 %v7767_v7, 0.0 }
 0xe64   :  { %v7771_v42 = vpop.f32.mrf.mxu0 }
 0xe65   :  { %v7772_v4 = vadd.f32 %v7771_v42, %v7667_v34  ;;  %9058 = vmatmul.mubr.msk.f32.gmra.mxu1 %vm7818_vm7, %v7806_v51 }
 0xe66   :  { %v9019_v19 = vpop.f32.mrf.mxu0  ;;  %9060 = vmatprep.mubr.msk.f32.mxu1 %vm9317_vm2, %v11712_v20 }
 0xe67   :  { %v7807_v50 = vmax.f32 %v7772_v4, 0.0 }
 0xe69   :  { %9061 = vmatmul.mubr.msk.f32.gmra.mxu1 %vm7818_vm7, %v7807_v50 }
 0xe6a   :  { %9063 = vmatprep.mubr.msk.f32.mxu1 %vm9317_vm2, %v11712_v20 }
 0xe6b   :  { %v7776_v45 = vpop.f32.mrf.mxu0 }
 0xe6c   :  { %v7777_v31 = vadd.f32 %v7776_v45, %v7667_v34 }
 0xe6d   :  { %v9022_v46 = vpop.f32.mrf.mxu0 }
 0xe6e   :  { %v7808_v14 = vmax.f32 %v7777_v31, 0.0 }
 0xe70   :  { %9064 = vmatmul.mubr.msk.f32.gmra.mxu1 %vm7818_vm7, %v7808_v14 }
 0xe71   :  { %9066 = vmatprep.mubr.msk.f32.mxu1 %vm9317_vm2, %v11712_v20 }
 0xe85   :  { %v7781_v23 = vpop.f32.mrf.mxu0 }
 0xe86   :  { %v7782_v2 = vadd.f32 %v7781_v23, %v7667_v34 }
 0xe87   :  { %v9025_v55 = vpop.f32.mrf.mxu0 }
 0xe88   :  { %v7809_v26 = vmax.f32 %v7782_v2, 0.0 }
 0xe8a   :  { %9067 = vmatmul.mubr.msk.f32.gmra.mxu1 %vm7818_vm7, %v7809_v26 }
 0xe8b   :  { %9069 = vmatprep.mubr.msk.f32.mxu1 %vm9317_vm2, %v11712_v20 }
 0xe8d   :  { %v7786_v47 = vpop.f32.mrf.mxu0 }
 0xe8e   :  { %v7787_v3 = vadd.f32 %v7786_v47, %v7667_v34 }
 0xe8f   :  { %v9028_v54 = vpop.f32.mrf.mxu0 }
 0xe90   :  { %v7810_v39 = vmax.f32 %v7787_v3, 0.0 }
 0xe92   :  { %v7791_v16 = vpop.f32.mrf.mxu0  ;;  %9070 = vmatmul.mubr.msk.f32.gmra.mxu1 %vm7818_vm7, %v7810_v39 }
 0xe93   :  { %v7792_v59 = vadd.f32 %v7791_v16, %v7667_v34  ;;  %9072 = vmatprep.mubr.msk.f32.mxu1 %vm9317_vm2, %v11712_v20 }
 0xe94   :  { %v9031_v56 = vpop.f32.mrf.mxu0 }
 0xe95   :  { %v7811_v60 = vmax.f32 %v7792_v59, 0.0 }
 0xe96   :  { %v7796_v21 = vpop.f32.mrf.mxu0 }
 0xe97   :  { %v7797_v48 = vadd.f32 %v7796_v21, %v7667_v34  ;;  %9073 = vmatmul.mubr.msk.f32.gmra.mxu1 %vm7818_vm7, %v7811_v60 }
 0xe98   :  { %v9034_v61 = vpop.f32.mrf.mxu0  ;;  %9075 = vmatprep.mubr.msk.f32.mxu1 %vm9317_vm2, %v11712_v20 }
 0xe99   :  { %v7812_v18 = vmax.f32 %v7797_v48, 0.0 }
 0xe9b   :  { %9076 = vmatmul.mubr.msk.f32.gmra.mxu1 %vm7818_vm7, %v7812_v18 }
 0xe9c   :  { %9078 = vmatprep.mubr.msk.f32.mxu1 %vm9317_vm2, %v11712_v20 }
 0xeb2   :  { %v7801_v25 = vpop.f32.mrf.mxu0 }
 0xeb3   :  { %v7802_v6 = vadd.f32 %v7801_v25, %v7667_v34 }
 0xeb4   :  { %v9037_v63 = vpop.f32.mrf.mxu0 }
 0xeb5   :  { %v7813_v33 = vmax.f32 %v7802_v6, 0.0 }
 0xeb7   :  { %9079 = vmatmul.mubr.msk.f32.gmra.mxu1 %vm7818_vm7, %v7813_v33 }
 0xf1f   :  { %v7912_v58 = vpop.f32.mrf.mxu1 }
 0xf20   :  { %v7913_v62 = vadd.f32 %v7912_v58, %v7817_v37 }
 0xf21   :  { %v9056_v44 = vpop.f32.mrf.mxu1 }
 0xf22   :  { %v7956_v17 = vadd.f32 %v7913_v62, %v11392_v5 }
 0xf24   :  { %7965 = vst.msk [vmem:[%s11706_s4] sm:$0xff] %vm43_vm0, %v7956_v17 }
 0xf25   :  { %v7917_v20 = vpop.f32.mrf.mxu1 }
 0xf26   :  { %v7918_v29 = vadd.f32 %v7917_v20, %v7817_v37 }
 0xf27   :  { %v9059_v57 = vpop.f32.mrf.mxu1 }
 0xf28   :  { %v7957_v9 = vadd.f32 %v7918_v29, %v11401_v40 }
 0xf29   :  { %v7922_v8 = vpop.f32.mrf.mxu1 }
 0xf2a   :  { %7966 = vst.msk [vmem:[%s11706_s4 + $0x8] sm:$0xff] %vm43_vm0, %v7957_v9  ;;  %v7923_v38 = vadd.f32 %v7922_v8, %v7817_v37 }
 0xf2b   :  { %v9062_v32 = vpop.f32.mrf.mxu1 }
 0xf2c   :  { %v7958_v5 = vadd.f32 %v7923_v38, %v11410_v35 }
 0xf2e   :  { %7967 = vst.msk [vmem:[%s11706_s4 + $0x10] sm:$0xff] %vm43_vm0, %v7958_v5 }
 0xf30   :  { %v7927_v10 = vpop.f32.mrf.mxu1 }
 0xf31   :  { %v7928_v52 = vadd.f32 %v7927_v10, %v7817_v37 }
 0xf32   :  { %v9065_v27 = vpop.f32.mrf.mxu1 }
 0xf33   :  { %v7959_v40 = vadd.f32 %v7928_v52, %v11419_v0 }
 0xf35   :  { %7968 = vst.msk [vmem:[%s11706_s4 + $0x18] sm:$0xff] %vm43_vm0, %v7959_v40 }
 0xf4a   :  { %v7932_v12 = vpop.f32.mrf.mxu1 }
 0xf4b   :  { %v7933_v1 = vadd.f32 %v7932_v12, %v7817_v37 }
 0xf4c   :  { %v9068_v34 = vpop.f32.mrf.mxu1 }
 0xf4d   :  { %v7960_v35 = vadd.f32 %v7933_v1, %v11428_v24 }
 0xf4f   :  { %7969 = vst.msk [vmem:[%s11706_s4 + $0x20] sm:$0xff] %vm43_vm0, %v7960_v35 }
 0xf52   :  { %v7937_v13 = vpop.f32.mrf.mxu1 }
 0xf53   :  { %v7938_v28 = vadd.f32 %v7937_v13, %v7817_v37 }
 0xf54   :  { %v9071_v11 = vpop.f32.mrf.mxu1 }
 0xf55   :  { %v7961_v0 = vadd.f32 %v7938_v28, %v11437_v53 }
 0xf57   :  { %v7942_v30 = vpop.f32.mrf.mxu1  ;;  %7970 = vst.msk [vmem:[%s11706_s4 + $0x28] sm:$0xff] %vm43_vm0, %v7961_v0 }
 0xf58   :  { %v7943_v43 = vadd.f32 %v7942_v30, %v7817_v37 }
 0xf59   :  { %v9074_v7 = vpop.f32.mrf.mxu1 }
 0xf5a   :  { %v7962_v24 = vadd.f32 %v7943_v43, %v11446_v15 }
 0xf5b   :  { %v7947_v22 = vpop.f32.mrf.mxu1 }
 0xf5c   :  { %7971 = vst.msk [vmem:[%s11706_s4 + $0x30] sm:$0xff] %vm43_vm0, %v7962_v24  ;;  %v7948_v51 = vadd.f32 %v7947_v22, %v7817_v37 }
 0xf5d   :  { %v9077_v42 = vpop.f32.mrf.mxu1 }
 0xf5e   :  { %v7963_v53 = vadd.f32 %v7948_v51, %v11455_v49 }
 0xf60   :  { %7972 = vst.msk [vmem:[%s11706_s4 + $0x38] sm:$0xff] %vm43_vm0, %v7963_v53 }
 0xf77   :  { %v7952_v4 = vpop.f32.mrf.mxu1 }
 0xf78   :  { %v7953_v19 = vadd.f32 %v7952_v4, %v7817_v37 }
 0xf79   :  { %v9080_v50 = vpop.f32.mrf.mxu1 }
 0xf7a   :  { %v7964_v15 = vadd.f32 %v7953_v19, %v11464_v36 }
 0xf7c   :  { %7973 = vst.msk [vmem:[%s11706_s4 + $0x40] sm:$0x3] %vm68_vm1, %v7964_v15 }

</bundles_post_ra>
